<compile_context>
chip_gen: v6e
topology: v6e:2x2x1
jax: 0.10.0
libtpu: 0.0.40
codegen_flags: <defaults>
</compile_context>

<pallas_src>
import functools

import jax
import jax.numpy as jnp
from jax.experimental import pallas as pl
from jax.experimental.pallas import tpu as pltpu


# ------------------------------ fused kernel ------------------------------- #

def _fused_classifier_kernel(
    patches_ref,                     # (Bt, m, 9*cin) f32  im2col'd stem input
    w_stem_ref, b_stem_ref,          # (9*cin, Cs) bf16, (1, Cs) f32
    w_exp_ref, b_exp_ref,            # (Cs, Ce) bf16,   (1, Ce) f32
    w_dw_ref, b_dw_ref,              # (9, 1, Ce) f32,  (1, Ce) f32
    dw_mask_ref,                     # (9, Bt*m, 1) f32 per-tap border masks
    w_proj_ref, b_proj_ref,          # (Ce, Cs) bf16,   (1, Cs) f32
    w_final_ref, b_final_ref,        # (Cs, Cl) bf16,   (1, Cl) f32
    pool_ref,                        # (Bt, Bt*m) bf16  per-image mean-pool matrix
    w_cls_ref, b_cls_ref,            # (Cl, K) bf16,    (1, K) f32
    logits_ref,                      # (Bt, 1, K) f32
    *, bt, m, wo, act_dtype):
  r = bt * m

  def relu6(v):                      # clip in f32, store activation in act_dtype
    return jnp.clip(v, 0.0, 6.0).astype(act_dtype)

  # ---- stem: Conv3x3 / stride 2 / pad 1 (folded BN) + ReLU6, one matmul ----
  patches = patches_ref[...].reshape(r, -1).astype(jnp.bfloat16)
  h0 = relu6(jnp.dot(patches, w_stem_ref[...],
                     preferred_element_type=jnp.float32) + b_stem_ref[...])

  # ---- inverted residual: 1x1 expand + ReLU6 -------------------------------
  e = relu6(jnp.dot(h0.astype(jnp.bfloat16), w_exp_ref[...],
                    preferred_element_type=jnp.float32) + b_exp_ref[...])

  # ---- depthwise 3x3 + ReLU6: roll (XLU) + precomputed border masks (VPU) --
  # shifted[p] = e[p + dy*wo + dx]; image- and row-boundary wraps are zeroed
  # by the masks, so the cyclic roll never leaks across images.
  e32 = e.astype(jnp.float32)
  acc = jnp.zeros_like(e32)
  for ky in range(3):
    for kx in range(3):
      k = ky * 3 + kx
      off = (ky - 1) * wo + (kx - 1)
      shifted = e32 if off == 0 else pltpu.roll(e32, shift=(-off) % r, axis=0)
      if off != 0:
        shifted = shifted * dw_mask_ref[k]
      acc = acc + shifted * w_dw_ref[k]
  d = relu6(acc + b_dw_ref[...])

  # ---- 1x1 project (linear bottleneck) + residual skip ---------------------
  p = (jnp.dot(d.astype(jnp.bfloat16), w_proj_ref[...],
               preferred_element_type=jnp.float32)
       + b_proj_ref[...] + h0.astype(jnp.float32))

  # ---- final 1x1 ConvBNReLU6 to last_channel -------------------------------
  f = relu6(jnp.dot(p.astype(jnp.bfloat16), w_final_ref[...],
                    preferred_element_type=jnp.float32) + b_final_ref[...])

  # ---- head: per-image avg-pool (matmul) -> Dropout(eval)=id -> Linear -----
  # softmax / top-1 are computed in the wrapper from the returned logits.
  feats = jnp.dot(pool_ref[...], f.astype(jnp.bfloat16),
                  preferred_element_type=jnp.float32)             # (Bt, Cl)
  logits = jnp.dot(feats.astype(jnp.bfloat16), w_cls_ref[...],
                   preferred_element_type=jnp.float32) + b_cls_ref[...]
  logits_ref[...] = logits.reshape(bt, 1, -1)


# ------------------------------- JAX wrapper -------------------------------- #

def _default_act_dtype():
  # bf16 inter-layer activations only on bf16-native VPUs (v6e / v7x);
  # f32 elementwise math on v5e (no bf16 VALU/EUP) and anything unknown.
  try:
    kind = jax.devices()[0].device_kind.lower()
  except Exception:
    return jnp.float32
  return jnp.bfloat16 if ("v6" in kind or "v7" in kind) else jnp.float32


def _pick_images_per_step(bsz, m, target_rows=128):
  # Fill the MXU: Bt*m rows per grid step, targeting a multiple of 128.
  bt = max(1, min(bsz, max(1, target_rows // m)))
  while bsz % bt:
    bt -= 1
  return bt


def _depthwise_border_masks(bt, ho, wo):
  # mask[k, b*m + i*wo + j] = 1 iff input pixel (i+dy, j+dx) of tap k=(ky,kx)
  # is inside the image (dy=ky-1, dx=kx-1).  Pure function of shapes.
  ii = jnp.arange(ho)
  jj = jnp.arange(wo)
  masks = []
  for ky in range(3):
    for kx in range(3):
      dy, dx = ky - 1, kx - 1
      mrow = ((ii + dy >= 0) & (ii + dy < ho)).astype(jnp.float32)
      mcol = ((jj + dx >= 0) & (jj + dx < wo)).astype(jnp.float32)
      masks.append(jnp.tile((mrow[:, None] * mcol[None, :]).reshape(-1), bt))
  return jnp.stack(masks).reshape(9, bt * ho * wo, 1)


def _mean_pool_matrix(bt, m):
  # (Bt, Bt*m) matrix averaging the m pixels of each image (1/m is exact bf16).
  pool = jnp.repeat(jnp.eye(bt, dtype=jnp.float32), m, axis=1) / float(m)
  return pool.astype(jnp.bfloat16)


def image_classifier_forward(x_nchw, kparams, *, images_per_step=None,
                             act_dtype=None):
  x = jnp.transpose(x_nchw, (0, 2, 3, 1)).astype(jnp.float32)     # NCHW -> NHWC
  bsz, h, w, cin = x.shape
  ho = (h + 2 - 3) // 2 + 1
  wo = (w + 2 - 3) // 2 + 1
  m = ho * wo
  num_classes = kparams['w_cls'].shape[1]

  bt = images_per_step or _pick_images_per_step(bsz, m)
  assert bsz % bt == 0, "toy wrapper assumes batch divisible by images_per_step"
  act_dtype = act_dtype or _default_act_dtype()

  # im2col for the stride-2 3x3 stem (pure layout plumbing on the input):
  # patches[b, i*wo+j, (ky*3+kx)*cin + c] = xpad[b, 2i+ky, 2j+kx, c].
  xpad = jnp.pad(x, ((0, 0), (1, 1), (1, 1), (0, 0)))
  taps = [xpad[:, ky:ky + 2 * ho:2, kx:kx + 2 * wo:2, :]
          for ky in range(3) for kx in range(3)]
  patches = jnp.stack(taps, axis=3).reshape(bsz, m, 9 * cin)

  dw_masks = _depthwise_border_masks(bt, ho, wo)
  pool = _mean_pool_matrix(bt, m)

  inputs = [patches,
            kparams['w_stem'], kparams['b_stem'],
            kparams['w_exp'], kparams['b_exp'],
            kparams['w_dw'], kparams['b_dw'],
            dw_masks,
            kparams['w_proj'], kparams['b_proj'],
            kparams['w_final'], kparams['b_final'],
            pool,
            kparams['w_cls'], kparams['b_cls']]

  def _resident_spec(arr):
    zeros = (0,) * arr.ndim
    return pl.BlockSpec(arr.shape, lambda b, _z=zeros: _z)   # resident in VMEM

  grid_spec = pltpu.PrefetchScalarGridSpec(
      num_scalar_prefetch=0,
      grid=(bsz // bt,),                                     # Bt images / step
      in_specs=[pl.BlockSpec((bt, m, 9 * cin), lambda b: (b, 0, 0))]
               + [_resident_spec(a) for a in inputs[1:]],
      out_specs=pl.BlockSpec((bt, 1, num_classes), lambda b: (b, 0, 0)),
  )

  logits3 = pl.pallas_call(
      functools.partial(_fused_classifier_kernel, bt=bt, m=m, wo=wo,
                        act_dtype=act_dtype),
      out_shape=jax.ShapeDtypeStruct((bsz, 1, num_classes), jnp.float32),
      grid_spec=grid_spec,
      compiler_params=pltpu.CompilerParams(
          dimension_semantics=("parallel",),                 # megacore-shardable
          vmem_limit_bytes=32 * 1024 * 1024),
  )(*inputs)

  logits = logits3[:, 0, :]
  probs_full = jax.nn.softmax(logits, axis=1)                # tiny; stays in XLA
  return dict(logits=logits,
              preds=jnp.argmax(logits, axis=1).astype(jnp.int32),
              probs=jnp.max(probs_full, axis=1))


# --------------------------- parameters & folding --------------------------- #

def fold_bn(w_conv, gamma, beta, mean, var, eps=1e-5):
  # Conv(bias=False) + BatchNorm(eval) == Conv(w*scale) + (beta - mean*scale)
  scale = gamma / jnp.sqrt(var + eps)
  return w_conv * scale[:, None, None, None], beta - mean * scale


def init_params(key, num_classes):
  c_stem, c_exp, c_last = 16, 32, 64
  keys = jax.random.split(key, 11)

  def bn(k, c):
    k1, k2, k3, k4 = jax.random.split(k, 4)
    gamma = 1.0 + 0.1 * jax.random.normal(k1, (c,), jnp.float32)
    beta = 0.1 * jax.random.normal(k2, (c,), jnp.float32)
    mean = 0.1 * jax.random.normal(k3, (c,), jnp.float32)
    var = 1.0 + 0.1 * jnp.abs(jax.random.normal(k4, (c,), jnp.float32))
    return gamma, beta, mean, var

  def conv_bn(kw, kb, cout, cin, ksz):
    w = 0.1 * jax.random.normal(kw, (cout, cin, ksz, ksz), jnp.float32)
    return fold_bn(w, *bn(kb, cout))

  stem_w, stem_b = conv_bn(keys[0], keys[1], c_stem, 3, 3)
  exp_w, exp_b = conv_bn(keys[2], keys[3], c_exp, c_stem, 1)
  dw_w, dw_b = conv_bn(keys[4], keys[5], c_exp, 1, 3)        # depthwise (C,1,3,3)
  proj_w, proj_b = conv_bn(keys[6], keys[7], c_stem, c_exp, 1)
  final_w, final_b = conv_bn(keys[8], keys[9], c_last, c_stem, 1)
  # Classifier init exactly as ImageClassifier.__init__: N(0, 0.01), zero bias.
  cls_w = 0.01 * jax.random.normal(keys[10], (num_classes, c_last), jnp.float32)
  cls_b = jnp.zeros((num_classes,), jnp.float32)
  return dict(stem_w=stem_w, stem_b=stem_b, exp_w=exp_w, exp_b=exp_b,
              dw_w=dw_w, dw_b=dw_b, proj_w=proj_w, proj_b=proj_b,
              final_w=final_w, final_b=final_b, cls_w=cls_w, cls_b=cls_b)


def _conv_w_to_mat(w_oihw):
  cout, cin, kh, kw = w_oihw.shape
  return jnp.transpose(w_oihw, (2, 3, 1, 0)).reshape(kh * kw * cin, cout)


def prepare_kernel_params(p):
  c_exp = p['dw_w'].shape[0]
  # bf16 weights feed the MXU (f32 accumulation in-kernel); depthwise weights
  # and all biases stay f32 for the VPU path.
  return dict(
      w_stem=_conv_w_to_mat(p['stem_w']).astype(jnp.bfloat16),    # (27, Cs)
      b_stem=p['stem_b'].reshape(1, -1),
      w_exp=_conv_w_to_mat(p['exp_w']).astype(jnp.bfloat16),
      b_exp=p['exp_b'].reshape(1, -1),
      w_dw=jnp.transpose(p['dw_w'], (2, 3, 1, 0)).reshape(
          9, 1, c_exp).astype(jnp.float32),
      b_dw=p['dw_b'].reshape(1, -1),
      w_proj=_conv_w_to_mat(p['proj_w']).astype(jnp.bfloat16),
      b_proj=p['proj_b'].reshape(1, -1),
      w_final=_conv_w_to_mat(p['final_w']).astype(jnp.bfloat16),
      b_final=p['final_b'].reshape(1, -1),
      w_cls=jnp.transpose(p['cls_w']).astype(jnp.bfloat16),       # (Cl, K)
      b_cls=p['cls_b'].reshape(1, -1),
  )


# --------------------------- pure-JAX reference ----------------------------- #

def _relu6(x):
  return jnp.clip(x, 0.0, 6.0)


def _conv(x_nhwc, w_oihw, b, *, stride, pad, groups=1):
  w_hwio = jnp.transpose(w_oihw, (2, 3, 1, 0))
  y = jax.lax.conv_general_dilated(
      x_nhwc, w_hwio, window_strides=(stride, stride),
      padding=((pad, pad), (pad, pad)),
      dimension_numbers=('NHWC', 'HWIO', 'NHWC'),
      feature_group_count=groups)
  return y + b


def reference_forward(x_nchw, p):
  """Pure-JAX (XLA) reference with identical forward semantics."""
  x = jnp.transpose(x_nchw, (0, 2, 3, 1)).astype(jnp.float32)
  h = _relu6(_conv(x, p['stem_w'], p['stem_b'], stride=2, pad=1))
  e = _relu6(_conv(h, p['exp_w'], p['exp_b'], stride=1, pad=0))
  d = _relu6(_conv(e, p['dw_w'], p['dw_b'], stride=1, pad=1, groups=e.shape[-1]))
  pr = _conv(d, p['proj_w'], p['proj_b'], stride=1, pad=0) + h
  f = _relu6(_conv(pr, p['final_w'], p['final_b'], stride=1, pad=0))
  feats = jnp.mean(f, axis=(1, 2))
  logits = feats @ p['cls_w'].T + p['cls_b']
  probs = jax.nn.softmax(logits, axis=1)
  return dict(logits=logits, preds=jnp.argmax(logits, axis=1),
              probs=jnp.max(probs, axis=1))


# ---------------------------------- main ------------------------------------ #

if __name__ == "__main__":
  key = jax.random.PRNGKey(0)
  k_x, k_p = jax.random.split(key)
  # PyTorch layout: (B, 3, H, W), values in [0, 1).  bsz=4 so that with 2
  # images per grid step (128 MXU rows) the parallel grid still has 2 blocks.
  x = jax.random.uniform(k_x, (4, 3, 16, 16), dtype=jnp.float32)
  params = init_params(k_p, num_classes=5)
  kparams = prepare_kernel_params(params)

  fwd = jax.jit(image_classifier_forward)
  outs = jax.block_until_ready(fwd(x, kparams))

  assert outs['logits'].shape == (4, 5) and outs['logits'].dtype == jnp.float32
  assert outs['preds'].shape == (4,) and outs['preds'].dtype == jnp.int32
  assert outs['probs'].shape == (4,) and outs['probs'].dtype == jnp.float32
  assert bool(jnp.all(outs['probs'] > 0.0) & jnp.all(outs['probs'] <= 1.0))

  # Numerics vs a pure-JAX reference (kernel matmuls use bf16 operands with
  # f32 accumulation, so allow a small tolerance).
  ref = reference_forward(x, params)
  assert bool(jnp.allclose(outs['logits'], ref['logits'], atol=2e-2, rtol=2e-2))
  assert bool(jnp.allclose(outs['probs'], ref['probs'], atol=2e-2, rtol=2e-2))

  print("KERNEL_OK")
</pallas_src>

<mosaic_0001>
module attributes {stable_mosaic.version = 11 : i64} {
  func.func @_fused_classifier_kernel(%arg0: i32, %arg1: memref<2x64x27xf32, #tpu.memory_space<vmem>>, %arg2: memref<27x16xbf16, #tpu.memory_space<vmem>>, %arg3: memref<1x16xf32, #tpu.memory_space<vmem>>, %arg4: memref<16x32xbf16, #tpu.memory_space<vmem>>, %arg5: memref<1x32xf32, #tpu.memory_space<vmem>>, %arg6: memref<9x1x32xf32, #tpu.memory_space<vmem>>, %arg7: memref<1x32xf32, #tpu.memory_space<vmem>>, %arg8: memref<9x128x1xf32, #tpu.memory_space<vmem>>, %arg9: memref<32x16xbf16, #tpu.memory_space<vmem>>, %arg10: memref<1x16xf32, #tpu.memory_space<vmem>>, %arg11: memref<16x64xbf16, #tpu.memory_space<vmem>>, %arg12: memref<1x64xf32, #tpu.memory_space<vmem>>, %arg13: memref<2x128xbf16, #tpu.memory_space<vmem>>, %arg14: memref<64x5xbf16, #tpu.memory_space<vmem>>, %arg15: memref<1x5xf32, #tpu.memory_space<vmem>>, %arg16: memref<2x1x5xf32, #tpu.memory_space<vmem>>) attributes {dimension_semantics = [#tpu.dimension_semantics<parallel>], iteration_bounds = array<i64: 2>, scalar_prefetch = 0 : i64, scratch_operands = 0 : i64, tpu.core_type = #tpu.core_type<tc>, window_params = [{transform_indices = @transform_0, window_bounds = array<i64: 2, 64, 27>}, {pipeline_mode = #tpu.pipeline_mode<synchronous>, transform_indices = @transform_1, window_bounds = array<i64: 27, 16>}, {pipeline_mode = #tpu.pipeline_mode<synchronous>, transform_indices = @transform_2, window_bounds = array<i64: 1, 16>}, {pipeline_mode = #tpu.pipeline_mode<synchronous>, transform_indices = @transform_3, window_bounds = array<i64: 16, 32>}, {pipeline_mode = #tpu.pipeline_mode<synchronous>, transform_indices = @transform_4, window_bounds = array<i64: 1, 32>}, {pipeline_mode = #tpu.pipeline_mode<synchronous>, transform_indices = @transform_5, window_bounds = array<i64: 9, 1, 32>}, {pipeline_mode = #tpu.pipeline_mode<synchronous>, transform_indices = @transform_6, window_bounds = array<i64: 1, 32>}, {pipeline_mode = #tpu.pipeline_mode<synchronous>, transform_indices = @transform_7, window_bounds = array<i64: 9, 128, 1>}, {pipeline_mode = #tpu.pipeline_mode<synchronous>, transform_indices = @transform_8, window_bounds = array<i64: 32, 16>}, {pipeline_mode = #tpu.pipeline_mode<synchronous>, transform_indices = @transform_9, window_bounds = array<i64: 1, 16>}, {pipeline_mode = #tpu.pipeline_mode<synchronous>, transform_indices = @transform_10, window_bounds = array<i64: 16, 64>}, {pipeline_mode = #tpu.pipeline_mode<synchronous>, transform_indices = @transform_11, window_bounds = array<i64: 1, 64>}, {pipeline_mode = #tpu.pipeline_mode<synchronous>, transform_indices = @transform_12, window_bounds = array<i64: 2, 128>}, {pipeline_mode = #tpu.pipeline_mode<synchronous>, transform_indices = @transform_13, window_bounds = array<i64: 64, 5>}, {pipeline_mode = #tpu.pipeline_mode<synchronous>, transform_indices = @transform_14, window_bounds = array<i64: 1, 5>}, {transform_indices = @transform_15, window_bounds = array<i64: 2, 1, 5>}]} {
    %c0 = arith.constant 0 : index
    %c0_0 = arith.constant 0 : index
    %c0_1 = arith.constant 0 : index
    %0 = vector.load %arg1[%c0, %c0_0, %c0_1] : memref<2x64x27xf32, #tpu.memory_space<vmem>>, vector<2x64x27xf32>
    %1 = vector.shape_cast %0 : vector<2x64x27xf32> to vector<128x27xf32>
    %2 = arith.truncf %1 : vector<128x27xf32> to vector<128x27xbf16>
    %c0_2 = arith.constant 0 : index
    %c0_3 = arith.constant 0 : index
    %3 = vector.load %arg2[%c0_2, %c0_3] : memref<27x16xbf16, #tpu.memory_space<vmem>>, vector<27x16xbf16>
    %cst = arith.constant dense<0.000000e+00> : vector<128x16xf32>
    %4 = tpu.matmul %2, %3, %cst {dimension_numbers = #tpu.dot_dimension_numbers<[1], [0], [0], [1], [0, 0, 1, 1], [], []>} : vector<128x27xbf16>, vector<27x16xbf16>, vector<128x16xf32> -> vector<128x16xf32>
    %c0_4 = arith.constant 0 : index
    %c0_5 = arith.constant 0 : index
    %5 = vector.load %arg3[%c0_4, %c0_5] : memref<1x16xf32, #tpu.memory_space<vmem>>, vector<1x16xf32>
    %6 = vector.broadcast %5 : vector<1x16xf32> to vector<128x16xf32>
    %7 = arith.addf %4, %6 : vector<128x16xf32>
    %cst_6 = arith.constant 0.000000e+00 : f32
    %cst_7 = arith.constant 6.000000e+00 : f32
    %8 = vector.broadcast %cst_6 : f32 to vector<128x16xf32>
    %9 = arith.maximumf %8, %7 : vector<128x16xf32>
    %10 = vector.broadcast %cst_7 : f32 to vector<128x16xf32>
    %11 = arith.minimumf %10, %9 : vector<128x16xf32>
    %12 = arith.truncf %11 : vector<128x16xf32> to vector<128x16xbf16>
    %c0_8 = arith.constant 0 : index
    %c0_9 = arith.constant 0 : index
    %13 = vector.load %arg4[%c0_8, %c0_9] : memref<16x32xbf16, #tpu.memory_space<vmem>>, vector<16x32xbf16>
    %cst_10 = arith.constant dense<0.000000e+00> : vector<128x32xf32>
    %14 = tpu.matmul %12, %13, %cst_10 {dimension_numbers = #tpu.dot_dimension_numbers<[1], [0], [0], [1], [0, 0, 1, 1], [], []>} : vector<128x16xbf16>, vector<16x32xbf16>, vector<128x32xf32> -> vector<128x32xf32>
    %c0_11 = arith.constant 0 : index
    %c0_12 = arith.constant 0 : index
    %15 = vector.load %arg5[%c0_11, %c0_12] : memref<1x32xf32, #tpu.memory_space<vmem>>, vector<1x32xf32>
    %16 = vector.broadcast %15 : vector<1x32xf32> to vector<128x32xf32>
    %17 = arith.addf %14, %16 : vector<128x32xf32>
    %cst_13 = arith.constant 0.000000e+00 : f32
    %cst_14 = arith.constant 6.000000e+00 : f32
    %18 = vector.broadcast %cst_13 : f32 to vector<128x32xf32>
    %19 = arith.maximumf %18, %17 : vector<128x32xf32>
    %20 = vector.broadcast %cst_14 : f32 to vector<128x32xf32>
    %21 = arith.minimumf %20, %19 : vector<128x32xf32>
    %cst_15 = arith.constant 0.000000e+00 : f32
    %22 = vector.broadcast %cst_15 : f32 to vector<128x32xf32>
    %c9_i32 = arith.constant 9 : i32
    %23 = tpu.dynamic_rotate %21 by %c9_i32 dim 0 : vector<128x32xf32>, i32 -> vector<128x32xf32>
    %c0_16 = arith.constant 0 : index
    %c0_17 = arith.constant 0 : index
    %c0_18 = arith.constant 0 : index
    %24 = vector.load %arg8[%c0_16, %c0_17, %c0_18] : memref<9x128x1xf32, #tpu.memory_space<vmem>>, vector<1x128x1xf32>
    %25 = vector.shape_cast %24 : vector<1x128x1xf32> to vector<128x1xf32>
    %26 = vector.broadcast %25 : vector<128x1xf32> to vector<128x32xf32>
    %27 = arith.mulf %23, %26 : vector<128x32xf32>
    %c0_19 = arith.constant 0 : index
    %c0_20 = arith.constant 0 : index
    %c0_21 = arith.constant 0 : index
    %28 = vector.load %arg6[%c0_19, %c0_20, %c0_21] : memref<9x1x32xf32, #tpu.memory_space<vmem>>, vector<1x1x32xf32>
    %29 = vector.shape_cast %28 : vector<1x1x32xf32> to vector<1x32xf32>
    %30 = vector.broadcast %29 : vector<1x32xf32> to vector<128x32xf32>
    %31 = arith.mulf %27, %30 : vector<128x32xf32>
    %32 = arith.addf %22, %31 : vector<128x32xf32>
    %c8_i32 = arith.constant 8 : i32
    %33 = tpu.dynamic_rotate %21 by %c8_i32 dim 0 : vector<128x32xf32>, i32 -> vector<128x32xf32>
    %c1 = arith.constant 1 : index
    %c0_22 = arith.constant 0 : index
    %c0_23 = arith.constant 0 : index
    %34 = vector.load %arg8[%c1, %c0_22, %c0_23] : memref<9x128x1xf32, #tpu.memory_space<vmem>>, vector<1x128x1xf32>
    %35 = vector.shape_cast %34 : vector<1x128x1xf32> to vector<128x1xf32>
    %36 = vector.broadcast %35 : vector<128x1xf32> to vector<128x32xf32>
    %37 = arith.mulf %33, %36 : vector<128x32xf32>
    %c1_24 = arith.constant 1 : index
    %c0_25 = arith.constant 0 : index
    %c0_26 = arith.constant 0 : index
    %38 = vector.load %arg6[%c1_24, %c0_25, %c0_26] : memref<9x1x32xf32, #tpu.memory_space<vmem>>, vector<1x1x32xf32>
    %39 = vector.shape_cast %38 : vector<1x1x32xf32> to vector<1x32xf32>
    %40 = vector.broadcast %39 : vector<1x32xf32> to vector<128x32xf32>
    %41 = arith.mulf %37, %40 : vector<128x32xf32>
    %42 = arith.addf %32, %41 : vector<128x32xf32>
    %c7_i32 = arith.constant 7 : i32
    %43 = tpu.dynamic_rotate %21 by %c7_i32 dim 0 : vector<128x32xf32>, i32 -> vector<128x32xf32>
    %c2 = arith.constant 2 : index
    %c0_27 = arith.constant 0 : index
    %c0_28 = arith.constant 0 : index
    %44 = vector.load %arg8[%c2, %c0_27, %c0_28] : memref<9x128x1xf32, #tpu.memory_space<vmem>>, vector<1x128x1xf32>
    %45 = vector.shape_cast %44 : vector<1x128x1xf32> to vector<128x1xf32>
    %46 = vector.broadcast %45 : vector<128x1xf32> to vector<128x32xf32>
    %47 = arith.mulf %43, %46 : vector<128x32xf32>
    %c2_29 = arith.constant 2 : index
    %c0_30 = arith.constant 0 : index
    %c0_31 = arith.constant 0 : index
    %48 = vector.load %arg6[%c2_29, %c0_30, %c0_31] : memref<9x1x32xf32, #tpu.memory_space<vmem>>, vector<1x1x32xf32>
    %49 = vector.shape_cast %48 : vector<1x1x32xf32> to vector<1x32xf32>
    %50 = vector.broadcast %49 : vector<1x32xf32> to vector<128x32xf32>
    %51 = arith.mulf %47, %50 : vector<128x32xf32>
    %52 = arith.addf %42, %51 : vector<128x32xf32>
    %c1_i32 = arith.constant 1 : i32
    %53 = tpu.dynamic_rotate %21 by %c1_i32 dim 0 : vector<128x32xf32>, i32 -> vector<128x32xf32>
    %c3 = arith.constant 3 : index
    %c0_32 = arith.constant 0 : index
    %c0_33 = arith.constant 0 : index
    %54 = vector.load %arg8[%c3, %c0_32, %c0_33] : memref<9x128x1xf32, #tpu.memory_space<vmem>>, vector<1x128x1xf32>
    %55 = vector.shape_cast %54 : vector<1x128x1xf32> to vector<128x1xf32>
    %56 = vector.broadcast %55 : vector<128x1xf32> to vector<128x32xf32>
    %57 = arith.mulf %53, %56 : vector<128x32xf32>
    %c3_34 = arith.constant 3 : index
    %c0_35 = arith.constant 0 : index
    %c0_36 = arith.constant 0 : index
    %58 = vector.load %arg6[%c3_34, %c0_35, %c0_36] : memref<9x1x32xf32, #tpu.memory_space<vmem>>, vector<1x1x32xf32>
    %59 = vector.shape_cast %58 : vector<1x1x32xf32> to vector<1x32xf32>
    %60 = vector.broadcast %59 : vector<1x32xf32> to vector<128x32xf32>
    %61 = arith.mulf %57, %60 : vector<128x32xf32>
    %62 = arith.addf %52, %61 : vector<128x32xf32>
    %c4 = arith.constant 4 : index
    %c0_37 = arith.constant 0 : index
    %c0_38 = arith.constant 0 : index
    %63 = vector.load %arg6[%c4, %c0_37, %c0_38] : memref<9x1x32xf32, #tpu.memory_space<vmem>>, vector<1x1x32xf32>
    %64 = vector.shape_cast %63 : vector<1x1x32xf32> to vector<1x32xf32>
    %65 = vector.broadcast %64 : vector<1x32xf32> to vector<128x32xf32>
    %66 = arith.mulf %21, %65 : vector<128x32xf32>
    %67 = arith.addf %62, %66 : vector<128x32xf32>
    %c127_i32 = arith.constant 127 : i32
    %68 = tpu.dynamic_rotate %21 by %c127_i32 dim 0 : vector<128x32xf32>, i32 -> vector<128x32xf32>
    %c5 = arith.constant 5 : index
    %c0_39 = arith.constant 0 : index
    %c0_40 = arith.constant 0 : index
    %69 = vector.load %arg8[%c5, %c0_39, %c0_40] : memref<9x128x1xf32, #tpu.memory_space<vmem>>, vector<1x128x1xf32>
    %70 = vector.shape_cast %69 : vector<1x128x1xf32> to vector<128x1xf32>
    %71 = vector.broadcast %70 : vector<128x1xf32> to vector<128x32xf32>
    %72 = arith.mulf %68, %71 : vector<128x32xf32>
    %c5_41 = arith.constant 5 : index
    %c0_42 = arith.constant 0 : index
    %c0_43 = arith.constant 0 : index
    %73 = vector.load %arg6[%c5_41, %c0_42, %c0_43] : memref<9x1x32xf32, #tpu.memory_space<vmem>>, vector<1x1x32xf32>
    %74 = vector.shape_cast %73 : vector<1x1x32xf32> to vector<1x32xf32>
    %75 = vector.broadcast %74 : vector<1x32xf32> to vector<128x32xf32>
    %76 = arith.mulf %72, %75 : vector<128x32xf32>
    %77 = arith.addf %67, %76 : vector<128x32xf32>
    %c121_i32 = arith.constant 121 : i32
    %78 = tpu.dynamic_rotate %21 by %c121_i32 dim 0 : vector<128x32xf32>, i32 -> vector<128x32xf32>
    %c6 = arith.constant 6 : index
    %c0_44 = arith.constant 0 : index
    %c0_45 = arith.constant 0 : index
    %79 = vector.load %arg8[%c6, %c0_44, %c0_45] : memref<9x128x1xf32, #tpu.memory_space<vmem>>, vector<1x128x1xf32>
    %80 = vector.shape_cast %79 : vector<1x128x1xf32> to vector<128x1xf32>
    %81 = vector.broadcast %80 : vector<128x1xf32> to vector<128x32xf32>
    %82 = arith.mulf %78, %81 : vector<128x32xf32>
    %c6_46 = arith.constant 6 : index
    %c0_47 = arith.constant 0 : index
    %c0_48 = arith.constant 0 : index
    %83 = vector.load %arg6[%c6_46, %c0_47, %c0_48] : memref<9x1x32xf32, #tpu.memory_space<vmem>>, vector<1x1x32xf32>
    %84 = vector.shape_cast %83 : vector<1x1x32xf32> to vector<1x32xf32>
    %85 = vector.broadcast %84 : vector<1x32xf32> to vector<128x32xf32>
    %86 = arith.mulf %82, %85 : vector<128x32xf32>
    %87 = arith.addf %77, %86 : vector<128x32xf32>
    %c120_i32 = arith.constant 120 : i32
    %88 = tpu.dynamic_rotate %21 by %c120_i32 dim 0 : vector<128x32xf32>, i32 -> vector<128x32xf32>
    %c7 = arith.constant 7 : index
    %c0_49 = arith.constant 0 : index
    %c0_50 = arith.constant 0 : index
    %89 = vector.load %arg8[%c7, %c0_49, %c0_50] : memref<9x128x1xf32, #tpu.memory_space<vmem>>, vector<1x128x1xf32>
    %90 = vector.shape_cast %89 : vector<1x128x1xf32> to vector<128x1xf32>
    %91 = vector.broadcast %90 : vector<128x1xf32> to vector<128x32xf32>
    %92 = arith.mulf %88, %91 : vector<128x32xf32>
    %c7_51 = arith.constant 7 : index
    %c0_52 = arith.constant 0 : index
    %c0_53 = arith.constant 0 : index
    %93 = vector.load %arg6[%c7_51, %c0_52, %c0_53] : memref<9x1x32xf32, #tpu.memory_space<vmem>>, vector<1x1x32xf32>
    %94 = vector.shape_cast %93 : vector<1x1x32xf32> to vector<1x32xf32>
    %95 = vector.broadcast %94 : vector<1x32xf32> to vector<128x32xf32>
    %96 = arith.mulf %92, %95 : vector<128x32xf32>
    %97 = arith.addf %87, %96 : vector<128x32xf32>
    %c119_i32 = arith.constant 119 : i32
    %98 = tpu.dynamic_rotate %21 by %c119_i32 dim 0 : vector<128x32xf32>, i32 -> vector<128x32xf32>
    %c8 = arith.constant 8 : index
    %c0_54 = arith.constant 0 : index
    %c0_55 = arith.constant 0 : index
    %99 = vector.load %arg8[%c8, %c0_54, %c0_55] : memref<9x128x1xf32, #tpu.memory_space<vmem>>, vector<1x128x1xf32>
    %100 = vector.shape_cast %99 : vector<1x128x1xf32> to vector<128x1xf32>
    %101 = vector.broadcast %100 : vector<128x1xf32> to vector<128x32xf32>
    %102 = arith.mulf %98, %101 : vector<128x32xf32>
    %c8_56 = arith.constant 8 : index
    %c0_57 = arith.constant 0 : index
    %c0_58 = arith.constant 0 : index
    %103 = vector.load %arg6[%c8_56, %c0_57, %c0_58] : memref<9x1x32xf32, #tpu.memory_space<vmem>>, vector<1x1x32xf32>
    %104 = vector.shape_cast %103 : vector<1x1x32xf32> to vector<1x32xf32>
    %105 = vector.broadcast %104 : vector<1x32xf32> to vector<128x32xf32>
    %106 = arith.mulf %102, %105 : vector<128x32xf32>
    %107 = arith.addf %97, %106 : vector<128x32xf32>
    %c0_59 = arith.constant 0 : index
    %c0_60 = arith.constant 0 : index
    %108 = vector.load %arg7[%c0_59, %c0_60] : memref<1x32xf32, #tpu.memory_space<vmem>>, vector<1x32xf32>
    %109 = vector.broadcast %108 : vector<1x32xf32> to vector<128x32xf32>
    %110 = arith.addf %107, %109 : vector<128x32xf32>
    %cst_61 = arith.constant 0.000000e+00 : f32
    %cst_62 = arith.constant 6.000000e+00 : f32
    %111 = vector.broadcast %cst_61 : f32 to vector<128x32xf32>
    %112 = arith.maximumf %111, %110 : vector<128x32xf32>
    %113 = vector.broadcast %cst_62 : f32 to vector<128x32xf32>
    %114 = arith.minimumf %113, %112 : vector<128x32xf32>
    %115 = arith.truncf %114 : vector<128x32xf32> to vector<128x32xbf16>
    %c0_63 = arith.constant 0 : index
    %c0_64 = arith.constant 0 : index
    %116 = vector.load %arg9[%c0_63, %c0_64] : memref<32x16xbf16, #tpu.memory_space<vmem>>, vector<32x16xbf16>
    %cst_65 = arith.constant dense<0.000000e+00> : vector<128x16xf32>
    %117 = tpu.matmul %115, %116, %cst_65 {dimension_numbers = #tpu.dot_dimension_numbers<[1], [0], [0], [1], [0, 0, 1, 1], [], []>} : vector<128x32xbf16>, vector<32x16xbf16>, vector<128x16xf32> -> vector<128x16xf32>
    %c0_66 = arith.constant 0 : index
    %c0_67 = arith.constant 0 : index
    %118 = vector.load %arg10[%c0_66, %c0_67] : memref<1x16xf32, #tpu.memory_space<vmem>>, vector<1x16xf32>
    %119 = vector.broadcast %118 : vector<1x16xf32> to vector<128x16xf32>
    %120 = arith.addf %117, %119 : vector<128x16xf32>
    %121 = arith.addf %120, %11 : vector<128x16xf32>
    %122 = arith.truncf %121 : vector<128x16xf32> to vector<128x16xbf16>
    %c0_68 = arith.constant 0 : index
    %c0_69 = arith.constant 0 : index
    %123 = vector.load %arg11[%c0_68, %c0_69] : memref<16x64xbf16, #tpu.memory_space<vmem>>, vector<16x64xbf16>
    %cst_70 = arith.constant dense<0.000000e+00> : vector<128x64xf32>
    %124 = tpu.matmul %122, %123, %cst_70 {dimension_numbers = #tpu.dot_dimension_numbers<[1], [0], [0], [1], [0, 0, 1, 1], [], []>} : vector<128x16xbf16>, vector<16x64xbf16>, vector<128x64xf32> -> vector<128x64xf32>
    %c0_71 = arith.constant 0 : index
    %c0_72 = arith.constant 0 : index
    %125 = vector.load %arg12[%c0_71, %c0_72] : memref<1x64xf32, #tpu.memory_space<vmem>>, vector<1x64xf32>
    %126 = vector.broadcast %125 : vector<1x64xf32> to vector<128x64xf32>
    %127 = arith.addf %124, %126 : vector<128x64xf32>
    %cst_73 = arith.constant 0.000000e+00 : f32
    %cst_74 = arith.constant 6.000000e+00 : f32
    %128 = vector.broadcast %cst_73 : f32 to vector<128x64xf32>
    %129 = arith.maximumf %128, %127 : vector<128x64xf32>
    %130 = vector.broadcast %cst_74 : f32 to vector<128x64xf32>
    %131 = arith.minimumf %130, %129 : vector<128x64xf32>
    %c0_75 = arith.constant 0 : index
    %c0_76 = arith.constant 0 : index
    %132 = vector.load %arg13[%c0_75, %c0_76] : memref<2x128xbf16, #tpu.memory_space<vmem>>, vector<2x128xbf16>
    %133 = arith.truncf %131 : vector<128x64xf32> to vector<128x64xbf16>
    %cst_77 = arith.constant dense<0.000000e+00> : vector<2x64xf32>
    %134 = tpu.matmul %132, %133, %cst_77 {dimension_numbers = #tpu.dot_dimension_numbers<[1], [0], [0], [1], [0, 0, 1, 1], [], []>} : vector<2x128xbf16>, vector<128x64xbf16>, vector<2x64xf32> -> vector<2x64xf32>
    %135 = arith.truncf %134 : vector<2x64xf32> to vector<2x64xbf16>
    %c0_78 = arith.constant 0 : index
    %c0_79 = arith.constant 0 : index
    %136 = vector.load %arg14[%c0_78, %c0_79] : memref<64x5xbf16, #tpu.memory_space<vmem>>, vector<64x5xbf16>
    %cst_80 = arith.constant dense<0.000000e+00> : vector<2x5xf32>
    %137 = tpu.matmul %135, %136, %cst_80 {dimension_numbers = #tpu.dot_dimension_numbers<[1], [0], [0], [1], [0, 0, 1, 1], [], []>} : vector<2x64xbf16>, vector<64x5xbf16>, vector<2x5xf32> -> vector<2x5xf32>
    %c0_81 = arith.constant 0 : index
    %c0_82 = arith.constant 0 : index
    %138 = vector.load %arg15[%c0_81, %c0_82] : memref<1x5xf32, #tpu.memory_space<vmem>>, vector<1x5xf32>
    %139 = vector.broadcast %138 : vector<1x5xf32> to vector<2x5xf32>
    %140 = arith.addf %137, %139 : vector<2x5xf32>
    %141 = vector.shape_cast %140 : vector<2x5xf32> to vector<2x1x5xf32>
    %c0_83 = arith.constant 0 : index
    %c0_84 = arith.constant 0 : index
    %c0_85 = arith.constant 0 : index
    %142 = vector.load %arg16[%c0_83, %c0_84, %c0_85] : memref<2x1x5xf32, #tpu.memory_space<vmem>>, vector<2x1x5xf32>
    tpu.vector_store %arg16[%c0_83, %c0_84, %c0_85], %141 {strides = array<i32>} : memref<2x1x5xf32, #tpu.memory_space<vmem>>, vector<2x1x5xf32>,
    return
  }
  func.func @transform_0(%arg0: i32) -> (i32, i32, i32) {
    %c0_i32 = arith.constant 0 : i32
    %c0_i32_0 = arith.constant 0 : i32
    %c0_i32_1 = arith.constant 0 : i32
    return %arg0, %c0_i32, %c0_i32_0 : i32, i32, i32
  }
  func.func @transform_1(%arg0: i32) -> (i32, i32) {
    %c0_i32 = arith.constant 0 : i32
    %c0_i32_0 = arith.constant 0 : i32
    %c0_i32_1 = arith.constant 0 : i32
    return %c0_i32, %c0_i32_0 : i32, i32
  }
  func.func @transform_2(%arg0: i32) -> (i32, i32) {
    %c0_i32 = arith.constant 0 : i32
    %c0_i32_0 = arith.constant 0 : i32
    %c0_i32_1 = arith.constant 0 : i32
    return %c0_i32, %c0_i32_0 : i32, i32
  }
  func.func @transform_3(%arg0: i32) -> (i32, i32) {
    %c0_i32 = arith.constant 0 : i32
    %c0_i32_0 = arith.constant 0 : i32
    %c0_i32_1 = arith.constant 0 : i32
    return %c0_i32, %c0_i32_0 : i32, i32
  }
  func.func @transform_4(%arg0: i32) -> (i32, i32) {
    %c0_i32 = arith.constant 0 : i32
    %c0_i32_0 = arith.constant 0 : i32
    %c0_i32_1 = arith.constant 0 : i32
    return %c0_i32, %c0_i32_0 : i32, i32
  }
  func.func @transform_5(%arg0: i32) -> (i32, i32, i32) {
    %c0_i32 = arith.constant 0 : i32
    %c0_i32_0 = arith.constant 0 : i32
    %c0_i32_1 = arith.constant 0 : i32
    %c0_i32_2 = arith.constant 0 : i32
    return %c0_i32, %c0_i32_0, %c0_i32_1 : i32, i32, i32
  }
  func.func @transform_6(%arg0: i32) -> (i32, i32) {
    %c0_i32 = arith.constant 0 : i32
    %c0_i32_0 = arith.constant 0 : i32
    %c0_i32_1 = arith.constant 0 : i32
    return %c0_i32, %c0_i32_0 : i32, i32
  }
  func.func @transform_7(%arg0: i32) -> (i32, i32, i32) {
    %c0_i32 = arith.constant 0 : i32
    %c0_i32_0 = arith.constant 0 : i32
    %c0_i32_1 = arith.constant 0 : i32
    %c0_i32_2 = arith.constant 0 : i32
    return %c0_i32, %c0_i32_0, %c0_i32_1 : i32, i32, i32
  }
  func.func @transform_8(%arg0: i32) -> (i32, i32) {
    %c0_i32 = arith.constant 0 : i32
    %c0_i32_0 = arith.constant 0 : i32
    %c0_i32_1 = arith.constant 0 : i32
    return %c0_i32, %c0_i32_0 : i32, i32
  }
  func.func @transform_9(%arg0: i32) -> (i32, i32) {
    %c0_i32 = arith.constant 0 : i32
    %c0_i32_0 = arith.constant 0 : i32
    %c0_i32_1 = arith.constant 0 : i32
    return %c0_i32, %c0_i32_0 : i32, i32
  }
  func.func @transform_10(%arg0: i32) -> (i32, i32) {
    %c0_i32 = arith.constant 0 : i32
    %c0_i32_0 = arith.constant 0 : i32
    %c0_i32_1 = arith.constant 0 : i32
    return %c0_i32, %c0_i32_0 : i32, i32
  }
  func.func @transform_11(%arg0: i32) -> (i32, i32) {
    %c0_i32 = arith.constant 0 : i32
    %c0_i32_0 = arith.constant 0 : i32
    %c0_i32_1 = arith.constant 0 : i32
    return %c0_i32, %c0_i32_0 : i32, i32
  }
  func.func @transform_12(%arg0: i32) -> (i32, i32) {
    %c0_i32 = arith.constant 0 : i32
    %c0_i32_0 = arith.constant 0 : i32
    %c0_i32_1 = arith.constant 0 : i32
    return %c0_i32, %c0_i32_0 : i32, i32
  }
  func.func @transform_13(%arg0: i32) -> (i32, i32) {
    %c0_i32 = arith.constant 0 : i32
    %c0_i32_0 = arith.constant 0 : i32
    %c0_i32_1 = arith.constant 0 : i32
    return %c0_i32, %c0_i32_0 : i32, i32
  }
  func.func @transform_14(%arg0: i32) -> (i32, i32) {
    %c0_i32 = arith.constant 0 : i32
    %c0_i32_0 = arith.constant 0 : i32
    %c0_i32_1 = arith.constant 0 : i32
    return %c0_i32, %c0_i32_0 : i32, i32
  }
  func.func @transform_15(%arg0: i32) -> (i32, i32, i32) {
    %c0_i32 = arith.constant 0 : i32
    %c0_i32_0 = arith.constant 0 : i32
    %c0_i32_1 = arith.constant 0 : i32
    return %arg0, %c0_i32, %c0_i32_0 : i32, i32, i32
  }
}

</mosaic_0001>

<bundles_post_ra>
// kernel: tile.38
= control target key start
LH: loop header
LB: loop body
LE: loop exit
PB: predicated region body
PF: predicated region fallthrough
CT: control target
= control target key end

     0   :  { %s22_s0 = inlined_call_operand.vmem [shape: f32[64], index: 0, kind: input, shape index: {}]   ;;  %s23_s1 = inlined_call_operand.vmem [shape: f32[2,64], index: 1, kind: output, shape index: {}]  }
   0x1   :  { %v4_v0 = vld [vmem:[%s22_s0] ss:$0 sm:$0xff] }
   0x2   :  { %5 = vst [vmem:[%s23_s1] sm:$0x3] %v4_v0 }

// kernel: tile.63
= control target key start
LH: loop header
LB: loop body
LE: loop exit
PB: predicated region body
PF: predicated region fallthrough
CT: control target
= control target key end

     0   :  { %vm8_vm0 = vcmask 523264   ;;  %vm14_vm1 = vcmask 1048064   ;;  %s42_s0 = inlined_call_operand.vmem [shape: f32[2,64], index: 0, kind: input, shape index: {}]   ;;  %s43_s1 = inlined_call_operand.vmem [shape: f32[1,128], index: 1, kind: output, shape index: {}]  }
   0x1   :  { %v5_v0 = vld [vmem:[%s42_s0] sm:$0x3]  ;;  %s25_s0 = smov 64  }
   0x2   :  { %6 = vst [vmem:[#allocation1] sm:$0x3] %v5_v0 }
   0x9   :  { %v11_v1 = vld [vmem:[#allocation1 + $0x1] sm:$0x1]   ;;  %v7_v2 = vld [vmem:[#allocation1] sm:$0x1]  }
   0xa   :  { %12 = vrot.lane.b32.xlu0 %v11_v1, %s25_s0  ;;  %9 = vst.msk [vmem:[#allocation0] sm:$0x1] %vm8_vm0, %v7_v2  }
  0x7c   :  { %v13_v3 = vpop.permute.xlu0 %12  }
  0x7d   :  { %15 = vst.msk [vmem:[#allocation0] sm:$0x1] %vm14_vm1, %v13_v3  }
  0x84   :  { %v20_v4 = vld [vmem:[#allocation0] sm:$0x1] }
  0x85   :  { %23 = vst [vmem:[%s43_s1] sm:$0x1] %v20_v4 }

// kernel: image_classifier_forward.1
= control target key start
LH: loop header
LB: loop body
LE: loop exit
PB: predicated region body
PF: predicated region fallthrough
CT: control target
= control target key end

     0   :  { %s3296_s18 = smov 0   ;;  %s5072_s0 = inlined_call_operand.vmem [shape: f32[4,64,27], index: 0, kind: input, shape index: {}]   ;;  %s5073_s1 = inlined_call_operand.vmem [shape: bf16[27,16], index: 1, kind: input, shape index: {}]   ;;  %s5074_s2 = inlined_call_operand.vmem [shape: f32[1,16], index: 2, kind: input, shape index: {}]   ;;  %s5075_s3 = inlined_call_operand.vmem [shape: bf16[16,32], index: 3, kind: input, shape index: {}]   ;;  %s5076_s4 = inlined_call_operand.vmem [shape: f32[1,32], index: 4, kind: input, shape index: {}]   ;;  %s5077_s5 = inlined_call_operand.vmem [shape: f32[9,1,32], index: 5, kind: input, shape index: {}]   ;;  %s5078_s6 = inlined_call_operand.vmem [shape: f32[1,32], index: 6, kind: input, shape index: {}]   ;;  %s5079_s7 = inlined_call_operand.vmem [shape: f32[9,128,1], index: 7, kind: input, shape index: {}]   ;;  %s5080_s8 = inlined_call_operand.vmem [shape: bf16[32,16], index: 8, kind: input, shape index: {}]   ;;  %s5081_s9 = inlined_call_operand.vmem [shape: f32[1,16], index: 9, kind: input, shape index: {}]   ;;  %s5082_s10 = inlined_call_operand.vmem [shape: bf16[16,64], index: 10, kind: input, shape index: {}]   ;;  %s5083_s11 = inlined_call_operand.vmem [shape: f32[1,64], index: 11, kind: input, shape index: {}]   ;;  %s5084_s12 = inlined_call_operand.vmem [shape: bf16[2,128], index: 12, kind: input, shape index: {}]   ;;  %s5085_s13 = inlined_call_operand.vmem [shape: bf16[64,5], index: 13, kind: input, shape index: {}]   ;;  %s5086_s14 = inlined_call_operand.vmem [shape: f32[1,5], index: 14, kind: input, shape index: {}]   ;;  %s5087_s15 = inlined_call_operand.vmem [shape: f32[4,1,5], index: 15, kind: output, shape index: {}]  }
   0x1 LB: > { %s2825_s19 = sadd.s32 4294967295, %s3209_s18   ;;  %p2829_p0 = scmp.ge.s32.totalorder %s3209_s18, 1  ;;  %s3209_s18 = sphi %s3296_s18, %s25_s18  }
   0x2   : > { %p439_p1 = scmp.lt.s32.totalorder %s3209_s18, 3 }
   0x4   : > { %p440_p2 = pnand %p2829_p0, %p439_p1 }
   0x6   : > { %443 = sbr.rel (%p440_p2) target bundleno = 1430 (0x596), region = 80 }
   0xb   : > { %v2856_v0 = vld [vmem:[%s5079_s7 + $0x80] sm:$0xff]  ;;  %vm571_vm0 = vcmask 1044480   ;;  %v3211_v2 = vmov 0   ;;  %v3190_v3 = vld [vmem:[%s5073_s1 + $0x8] sm:$0x3f]   ;;  %vm572_vm1 = vcmask 1045504  }
   0xc   : > { %v919_v1 = vld [vmem:[%s5079_s7] sm:$0xff]  ;;  %3189 = vset.pattern.permute.xlu1 %v3211_v2  ;;  %3188 = vset.pattern.permute.xlu0 %v3211_v2  ;;  %v3212_v4 = vmov 65535   ;;  %s2830_s26 = sshll.u32 %s2825_s19, 1  ;;  %v2857_v7 = vld [vmem:[%s5079_s7 + $0x88] sm:$0xff]  ;;  %v922_v11 = vld [vmem:[%s5079_s7 + $0x18] sm:$0xff]  ;;  %vm546_vm2 = vcmask 220160  }
   0xd   : > { %1089 = vperm.xlu1 %3189, %v2856_v0   ;;  %937 = vperm.xlu0 %3188, %v919_v1   ;;  %v573_v5 = vsel %vm571_vm0, 4294967295, %v3212_v4  ;;  %p488_p3 = scmp.lt.s32.totalorder %s2830_s26, 3  ;;  %v920_v9 = vld [vmem:[%s5079_s7 + $0x8] sm:$0xff]  ;;  %v3191_v10 = vld [vmem:[%s5073_s1] sm:$0xff]   ;;  %v921_v12 = vld [vmem:[%s5079_s7 + $0x10] sm:$0xff]  ;;  %vm730_vm3 = vcmask 130048  }
   0xe   : > { %v574_v6 = vsel %vm572_vm1, %v573_v5, 0  ;;  %v2859_v21 = vld [vmem:[%s5079_s7 + $0x98] sm:$0xff]  ;;  %v2858_v23 = vld [vmem:[%s5079_s7 + $0x90] sm:$0xff]  ;;  %v2875_v24 = vld [vmem:[%s5079_s7 + $0x108] sm:$0xff]  ;;  %vm2300_vm6 = vcmask 261120   ;;  %vm3214_vm7 = vmmov 0  }
   0xf   : > { %v576_v8 = vand.u32 %v3190_v3, %v574_v6  ;;  %s5448_s26 = smov (!%p488_p3, %s2830_s26), 3  ;;  %v2874_v27 = vld [vmem:[%s5079_s7 + $0x100] sm:$0xff]  ;;  %v2877_v31 = vld [vmem:[%s5079_s7 + $0x118] sm:$0xff]  ;;  %v2876_v33 = vld [vmem:[%s5079_s7 + $0x110] sm:$0xff]  ;;  %vm2703_vm8 = vcmask 523264   ;;  %vm2772_vm9 = vcmask 32768  }
  0x10   : > { %s3014_s21 = sshll.u32 %s5448_s26, 6  ;;  %v2893_v34 = vld [vmem:[%s5079_s7 + $0x188] sm:$0xff]  ;;  %v2892_v37 = vld [vmem:[%s5079_s7 + $0x180] sm:$0xff]  ;;  %v2895_v41 = vld [vmem:[%s5079_s7 + $0x198] sm:$0xff]  ;;  %s497_s16 = scalar_lea.vmem %s5087_s15, %s5448_s26 }
  0x11   : > { %3067 = vmatprep.subr.bf16.mxu0 %v576_v8  ;;  %1094 = vperm.xlu1 %3189, %v2857_v7   ;;  %s3334_s27 = scalar_lea.vmem %s5072_s0, %s3014_s21  ;;  %v2894_v43 = vld [vmem:[%s5079_s7 + $0x190] sm:$0xff]  ;;  %v924_v44 = vld [vmem:[%s5079_s7 + $0x28] sm:$0xff]  ;;  %v923_v47 = vld [vmem:[%s5079_s7 + $0x20] sm:$0xff] }
  0x12   : > { %942 = vperm.xlu0 %3188, %v920_v9   ;;  %3068 = vmatpush3.bf16.msra.mxu0 %v576_v8  ;;  %v500_v13 = vld [vmem:[%s3334_s27] sm:$0xff]  ;;  %v501_v14 = vld [vmem:[%s3334_s27 + $0x8] sm:$0xff]  ;;  %v502_v15 = vld [vmem:[%s3334_s27 + $0x10] sm:$0xff] }
  0x13   : > { %3069 = vmatprep.subr.bf16.mxu0 %v3191_v10  ;;  %v516_v16 = vpack.c.bf16 %v501_v14, %v500_v13  ;;  %v503_v17 = vld [vmem:[%s3334_s27 + $0x18] sm:$0xff]  ;;  %v504_v18 = vld [vmem:[%s3334_s27 + $0x20] sm:$0xff]  ;;  %v505_v19 = vld [vmem:[%s3334_s27 + $0x28] sm:$0xff] }
  0x14   : > { %v517_v20 = vpack.c.bf16 %v503_v17, %v502_v15  ;;  %v518_v22 = vpack.c.bf16 %v505_v19, %v504_v18  ;;  %v506_v25 = vld [vmem:[%s3334_s27 + $0x30] sm:$0xff]  ;;  %v507_v26 = vld [vmem:[%s3334_s27 + $0x38] sm:$0xff]  ;;  %v508_v28 = vld [vmem:[%s3334_s27 + $0x40] sm:$0xff] }
  0x15   : > { %952 = vperm.xlu1 %3189, %v922_v11   ;;  %3071 = vmatprep.mubr.msk.bf16.mxu0 %vm546_vm2, %v516_v16  ;;  %v509_v29 = vld [vmem:[%s3334_s27 + $0x48] sm:$0xff]  ;;  %v519_v30 = vpack.c.bf16 %v507_v26, %v506_v25  ;;  %v510_v35 = vld [vmem:[%s3334_s27 + $0x50] sm:$0xff]  ;;  %v511_v36 = vld [vmem:[%s3334_s27 + $0x58] sm:$0xff] }
  0x16   : > { %947 = vperm.xlu0 %3188, %v921_v12   ;;  %3070 = vmatpush3.bf16.msra.mxu0 %v3191_v10  ;;  %v520_v32 = vpack.c.bf16 %v509_v29, %v508_v28  ;;  %v512_v38 = vld [vmem:[%s3334_s27 + $0x60] sm:$0xff]  ;;  %v513_v39 = vld [vmem:[%s3334_s27 + $0x68] sm:$0xff]  ;;  %v521_v40 = vpack.c.bf16 %v511_v36, %v510_v35  ;;  %v514_v45 = vld [vmem:[%s3334_s27 + $0x70] sm:$0xff] }
  0x17   : > { %v522_v42 = vpack.c.bf16 %v513_v39, %v512_v38  ;;  %v515_v46 = vld [vmem:[%s3334_s27 + $0x78] sm:$0xff]  ;;  %v2861_v49 = vld [vmem:[%s5079_s7 + $0xa8] sm:$0xff]  ;;  %v2860_v50 = vld [vmem:[%s5079_s7 + $0xa0] sm:$0xff] }
  0x18   : > { %v523_v48 = vpack.c.bf16 %v515_v46, %v514_v45  ;;  %v2913_v51 = vld [vmem:[%s5079_s7 + $0x288] sm:$0xff]  ;;  %v2912_v52 = vld [vmem:[%s5079_s7 + $0x280] sm:$0xff]  ;;  %v926_v53 = vld [vmem:[%s5079_s7 + $0x38] sm:$0xff] }
  0x19   : > { %3072 = vmatmul.mubr.msk.bf16.vlgmr.msra.gmra.mxu0 %vm546_vm2, %v517_v20  ;;  %1104 = vperm.xlu1 %3189, %v2859_v21   ;;  %v925_v54 = vld [vmem:[%s5079_s7 + $0x30] sm:$0xff]  ;;  %v2863_v55 = vld [vmem:[%s5079_s7 + $0xb8] sm:$0xff]  ;;  %v2879_v59 = vld [vmem:[%s5079_s7 + $0x128] sm:$0xff] }
  0x1a   : > { %1099 = vperm.xlu0 %3188, %v2858_v23   ;;  %3075 = vmatprep.mubr.msk.bf16.mxu0 %vm546_vm2, %v518_v22  ;;  %v2862_v56 = vld [vmem:[%s5079_s7 + $0xb0] sm:$0xff]  ;;  %v2915_v57 = vld [vmem:[%s5079_s7 + $0x298] sm:$0xff]  ;;  %v2878_v60 = vld [vmem:[%s5079_s7 + $0x120] sm:$0xff] }
  0x1b   : > { %v2914_v58 = vld [vmem:[%s5079_s7 + $0x290] sm:$0xff]  ;;  %v2931_v61 = vld [vmem:[%s5079_s7 + $0x308] sm:$0xff]  ;;  %v2930_v62 = vld [vmem:[%s5079_s7 + $0x300] sm:$0xff] }
  0x1c   : > { %v2881_v63 = vld [vmem:[%s5079_s7 + $0x138] sm:$0xff]  ;;  %v2880_v0 = vld [vmem:[%s5079_s7 + $0x130] sm:$0xff]  ;;  %v2897_v3 = vld [vmem:[%s5079_s7 + $0x1a8] sm:$0xff] }
  0x1d   : > { %1280 = vperm.xlu1 %3189, %v2875_v24   ;;  %v2933_v1 = vld [vmem:[%s5079_s7 + $0x318] sm:$0xff]  ;;  %v2932_v2 = vld [vmem:[%s5079_s7 + $0x310] sm:$0xff]  ;;  %v2896_v4 = vld [vmem:[%s5079_s7 + $0x1a0] sm:$0xff] }
  0x1e   : > { %1275 = vperm.xlu0 %3188, %v2874_v27   ;;  %v2949_v5 = vld [vmem:[%s5079_s7 + $0x388] sm:$0xff]  ;;  %v2948_v6 = vld [vmem:[%s5079_s7 + $0x380] sm:$0xff]  ;;  %v2899_v7 = vld [vmem:[%s5079_s7 + $0x1b8] sm:$0xff] }
  0x1f   : > { %v2898_v8 = vld [vmem:[%s5079_s7 + $0x1b0] sm:$0xff]  ;;  %v2951_v9 = vld [vmem:[%s5079_s7 + $0x398] sm:$0xff]  ;;  %v2967_v11 = vld [vmem:[%s5079_s7 + $0x408] sm:$0xff] }
  0x20   : > { %v2950_v10 = vld [vmem:[%s5079_s7 + $0x390] sm:$0xff]  ;;  %v2966_v12 = vld [vmem:[%s5079_s7 + $0x400] sm:$0xff]  ;;  %v2969_v14 = vld [vmem:[%s5079_s7 + $0x418] sm:$0xff] }
  0x21   : > { %3076 = vmatmul.mubr.msk.bf16.gmra.mxu0 %vm546_vm2, %v519_v30  ;;  %1290 = vperm.xlu1 %3189, %v2877_v31   ;;  %v3192_v13 = vld [vmem:[%s5075_s3] sm:$0xff]   ;;  %v2968_v15 = vld [vmem:[%s5079_s7 + $0x410] sm:$0xff]  ;;  %v928_v16 = vld [vmem:[%s5079_s7 + $0x48] sm:$0xff] }
  0x22   : > { %1285 = vperm.xlu0 %3188, %v2876_v33   ;;  %3079 = vmatprep.mubr.msk.bf16.mxu0 %vm546_vm2, %v520_v32  ;;  %v927_v17 = vld [vmem:[%s5079_s7 + $0x40] sm:$0xff]  ;;  %v2865_v18 = vld [vmem:[%s5079_s7 + $0xc8] sm:$0xff]  ;;  %v930_v22 = vld [vmem:[%s5079_s7 + $0x58] sm:$0xff] }
  0x23   : > { %3087 = vmatprep.subr.bf16.mxu1 %v3192_v13  ;;  %v2864_v19 = vld [vmem:[%s5079_s7 + $0xc0] sm:$0xff]  ;;  %v2917_v20 = vld [vmem:[%s5079_s7 + $0x2a8] sm:$0xff]  ;;  %v929_v23 = vld [vmem:[%s5079_s7 + $0x50] sm:$0xff] }
  0x24   : > { %3088 = vmatpush3.bf16.msra.mxu1 %v3192_v13  ;;  %v2916_v21 = vld [vmem:[%s5079_s7 + $0x2a0] sm:$0xff]  ;;  %v2867_v24 = vld [vmem:[%s5079_s7 + $0xd8] sm:$0xff]  ;;  %v2866_v25 = vld [vmem:[%s5079_s7 + $0xd0] sm:$0xff] }
  0x25   : > { %1433 = vperm.xlu1 %3189, %v2893_v34   ;;  %v2919_v26 = vld [vmem:[%s5079_s7 + $0x2b8] sm:$0xff]  ;;  %v2918_v27 = vld [vmem:[%s5079_s7 + $0x2b0] sm:$0xff]  ;;  %v2883_v28 = vld [vmem:[%s5079_s7 + $0x148] sm:$0xff] }
  0x26   : > { %1428 = vperm.xlu0 %3188, %v2892_v37   ;;  %v2882_v29 = vld [vmem:[%s5079_s7 + $0x140] sm:$0xff]  ;;  %v2935_v30 = vld [vmem:[%s5079_s7 + $0x328] sm:$0xff]  ;;  %v2885_v33 = vld [vmem:[%s5079_s7 + $0x158] sm:$0xff] }
  0x27   : > { %v2934_v31 = vld [vmem:[%s5079_s7 + $0x320] sm:$0xff]  ;;  %v2884_v34 = vld [vmem:[%s5079_s7 + $0x150] sm:$0xff]  ;;  %v2937_v36 = vld [vmem:[%s5079_s7 + $0x338] sm:$0xff] }
  0x28   : > { %v2936_v37 = vld [vmem:[%s5079_s7 + $0x330] sm:$0xff]  ;;  %v2901_v39 = vld [vmem:[%s5079_s7 + $0x1c8] sm:$0xff]  ;;  %v2903_v46 = vld [vmem:[%s5079_s7 + $0x1d8] sm:$0xff] }
  0x29   : > { %3080 = vmatmul.mubr.msk.bf16.gmra.mxu0 %vm546_vm2, %v521_v40  ;;  %1443 = vperm.xlu1 %3189, %v2895_v41   ;;  %v2900_v40 = vld [vmem:[%s5079_s7 + $0x1c0] sm:$0xff]  ;;  %v2870_v13 = vld [vmem:[%s5079_s7 + $0xf0] sm:$0xff] }
  0x2a   : > { %1438 = vperm.xlu0 %3188, %v2894_v43   ;;  %3083 = vmatprep.mubr.msk.bf16.mxu0 %vm546_vm2, %v522_v42  ;;  %v2953_v43 = vld [vmem:[%s5079_s7 + $0x3a8] sm:$0xff] }
  0x2d   : > { %962 = vperm.xlu1 %3189, %v924_v44   ;;  %v2952_v44 = vld [vmem:[%s5079_s7 + $0x3a0] sm:$0xff] }
  0x2e   : > { %957 = vperm.xlu0 %3188, %v923_v47   ;;  %v2902_v47 = vld [vmem:[%s5079_s7 + $0x1d0] sm:$0xff] }
  0x31   : > { %3084 = vmatmul.mubr.msk.bf16.gmra.mxu0 %vm546_vm2, %v523_v48  ;;  %1114 = vperm.xlu1 %3189, %v2861_v49  }
  0x32   : > { %1109 = vperm.xlu0 %3188, %v2860_v50   ;;  %v2955_v50 = vld [vmem:[%s5079_s7 + $0x3b8] sm:$0xff] }
  0x35   : > { %1626 = vperm.xlu1 %3189, %v2913_v51   ;;  %v2954_v51 = vld [vmem:[%s5079_s7 + $0x3b0] sm:$0xff] }
  0x36   : > { %1621 = vperm.xlu0 %3188, %v2912_v52  }
  0x39   : > { %972 = vperm.xlu1 %3189, %v926_v53  }
  0x3a   : > { %967 = vperm.xlu0 %3188, %v925_v54   ;;  %v2971_v54 = vld [vmem:[%s5079_s7 + $0x428] sm:$0xff] }
  0x3d   : > { %1124 = vperm.xlu1 %3189, %v2863_v55   ;;  %v2970_v55 = vld [vmem:[%s5079_s7 + $0x420] sm:$0xff] }
  0x3e   : > { %1119 = vperm.xlu0 %3188, %v2862_v56  }
  0x41   : > { %1636 = vperm.xlu1 %3189, %v2915_v57   ;;  %v2973_v57 = vld [vmem:[%s5079_s7 + $0x438] sm:$0xff] }
  0x42   : > { %1631 = vperm.xlu0 %3188, %v2914_v58   ;;  %v2972_v58 = vld [vmem:[%s5079_s7 + $0x430] sm:$0xff] }
  0x45   : > { %1300 = vperm.xlu1 %3189, %v2879_v59  }
  0x46   : > { %1295 = vperm.xlu0 %3188, %v2878_v60  }
  0x49   : > { %1779 = vperm.xlu1 %3189, %v2931_v61   ;;  %v932_v61 = vld [vmem:[%s5079_s7 + $0x68] sm:$0xff] }
  0x4a   : > { %1774 = vperm.xlu0 %3188, %v2930_v62   ;;  %v931_v62 = vld [vmem:[%s5079_s7 + $0x60] sm:$0xff] }
  0x4d   : > { %1310 = vperm.xlu1 %3189, %v2881_v63  }
  0x4e   : > { %1305 = vperm.xlu0 %3188, %v2880_v0  }
  0x51   : > { %1789 = vperm.xlu1 %3189, %v2933_v1   ;;  %v2869_v1 = vld [vmem:[%s5079_s7 + $0xe8] sm:$0xff] }
  0x52   : > { %1784 = vperm.xlu0 %3188, %v2932_v2   ;;  %v2868_v2 = vld [vmem:[%s5079_s7 + $0xe0] sm:$0xff] }
  0x55   : > { %1453 = vperm.xlu1 %3189, %v2897_v3  }
  0x56   : > { %1448 = vperm.xlu0 %3188, %v2896_v4   ;;  %v2921_v4 = vld [vmem:[%s5079_s7 + $0x2c8] sm:$0xff] }
  0x59   : > { %1932 = vperm.xlu1 %3189, %v2949_v5   ;;  %v2920_v5 = vld [vmem:[%s5079_s7 + $0x2c0] sm:$0xff] }
  0x5a   : > { %1927 = vperm.xlu0 %3188, %v2948_v6  }
  0x5d   : > { %1463 = vperm.xlu1 %3189, %v2899_v7  }
  0x5e   : > { %1458 = vperm.xlu0 %3188, %v2898_v8   ;;  %v934_v8 = vld [vmem:[%s5079_s7 + $0x78] sm:$0xff] }
  0x61   : > { %1942 = vperm.xlu1 %3189, %v2951_v9   ;;  %v933_v9 = vld [vmem:[%s5079_s7 + $0x70] sm:$0xff] }
  0x62   : > { %1937 = vperm.xlu0 %3188, %v2950_v10  }
  0x65   : > { %2085 = vperm.xlu1 %3189, %v2967_v11  }
  0x66   : > { %2080 = vperm.xlu0 %3188, %v2966_v12   ;;  %v2871_v12 = vld [vmem:[%s5079_s7 + $0xf8] sm:$0xff] }
  0x69   : > { %2095 = vperm.xlu1 %3189, %v2969_v14  }
  0x6a   : > { %2090 = vperm.xlu0 %3188, %v2968_v15   ;;  %v2923_v15 = vld [vmem:[%s5079_s7 + $0x2d8] sm:$0xff] }
  0x6d   : > { %982 = vperm.xlu1 %3189, %v928_v16   ;;  %v2922_v16 = vld [vmem:[%s5079_s7 + $0x2d0] sm:$0xff] }
  0x6e   : > { %977 = vperm.xlu0 %3188, %v927_v17  }
  0x71   : > { %1134 = vperm.xlu1 %3189, %v2865_v18  }
  0x72   : > { %1129 = vperm.xlu0 %3188, %v2864_v19   ;;  %v2887_v19 = vld [vmem:[%s5079_s7 + $0x168] sm:$0xff] }
  0x75   : > { %1646 = vperm.xlu1 %3189, %v2917_v20   ;;  %v2886_v20 = vld [vmem:[%s5079_s7 + $0x160] sm:$0xff] }
  0x76   : > { %1641 = vperm.xlu0 %3188, %v2916_v21  }
  0x79   : > { %992 = vperm.xlu1 %3189, %v930_v22  }
  0x7a   : > { %987 = vperm.xlu0 %3188, %v929_v23   ;;  %v2939_v23 = vld [vmem:[%s5079_s7 + $0x348] sm:$0xff] }
  0x7d   : > { %1144 = vperm.xlu1 %3189, %v2867_v24   ;;  %v2938_v24 = vld [vmem:[%s5079_s7 + $0x340] sm:$0xff] }
  0x7e   : > { %1139 = vperm.xlu0 %3188, %v2866_v25  }
  0x81   : > { %1656 = vperm.xlu1 %3189, %v2919_v26   ;;  %v2889_v26 = vld [vmem:[%s5079_s7 + $0x178] sm:$0xff] }
  0x82   : > { %1651 = vperm.xlu0 %3188, %v2918_v27   ;;  %v2888_v27 = vld [vmem:[%s5079_s7 + $0x170] sm:$0xff] }
  0x85   : > { %1320 = vperm.xlu1 %3189, %v2883_v28  }
  0x86   : > { %1315 = vperm.xlu0 %3188, %v2882_v29  }
  0x88   : > { %v3537_v32 = vpop.permute.xlu1 %1089  ;;  %v3563_v42 = vpop.permute.xlu0 %937 }
  0x89   : > { %5127 = vst [vmem:[#allocation2_spill] sm:$0xff] %v3537_v32  ;;  %1799 = vperm.xlu1 %3189, %v2935_v30   ;;  %5128 = vst [vmem:[#allocation3_spill] sm:$0xff] %v3563_v42  ;;  %v2941_v30 = vld [vmem:[%s5079_s7 + $0x358] sm:$0xff] }
  0x8a   : > { %1794 = vperm.xlu0 %3188, %v2934_v31   ;;  %v2940_v31 = vld [vmem:[%s5079_s7 + $0x350] sm:$0xff] }
  0x8c   : > { %v3545_v35 = vpop.permute.xlu1 %1094 }
  0x8d   : > { %1330 = vperm.xlu1 %3189, %v2885_v33   ;;  %v3579_v48 = vpop.permute.xlu0 %942 }
  0x8e   : > { %1325 = vperm.xlu0 %3188, %v2884_v34   ;;  %5129 = vst [vmem:[#allocation4_spill] sm:$0xff] %v3579_v48 }
  0x90   : > { %v3553_v38 = vpop.permute.xlu1 %952 }
  0x91   : > { %1809 = vperm.xlu1 %3189, %v2937_v36   ;;  %v3591_v53 = vpop.permute.xlu0 %947  ;;  %v2905_v36 = vld [vmem:[%s5079_s7 + $0x1e8] sm:$0xff] }
  0x92   : > { %1804 = vperm.xlu0 %3188, %v2936_v37   ;;  %v2904_v37 = vld [vmem:[%s5079_s7 + $0x1e0] sm:$0xff] }
  0x94   : > { %v3561_v41 = vpop.permute.xlu1 %1104 }
  0x95   : > { %1473 = vperm.xlu1 %3189, %v2901_v39   ;;  %v3607_v59 = vpop.permute.xlu0 %1099 }
  0x96   : > { %1468 = vperm.xlu0 %3188, %v2900_v40   ;;  %v2957_v40 = vld [vmem:[%s5079_s7 + $0x3c8] sm:$0xff] }
  0x98   : > { %v3571_v45 = vpop.permute.xlu1 %1280 }
  0x99   : > { %1952 = vperm.xlu1 %3189, %v2953_v43   ;;  %v3619_v0 = vpop.permute.xlu0 %1275  ;;  %v2956_v43 = vld [vmem:[%s5079_s7 + $0x3c0] sm:$0xff] }
  0x9a   : > { %1947 = vperm.xlu0 %3188, %v2952_v44   ;;  %5130 = vst [vmem:[#allocation5_spill] sm:$0xff] %v3619_v0 }
  0x9c   : > { %v3581_v49 = vpop.permute.xlu1 %1290 }
  0x9d   : > { %1483 = vperm.xlu1 %3189, %v2903_v46   ;;  %v3635_v6 = vpop.permute.xlu0 %1285 }
  0x9e   : > { %1478 = vperm.xlu0 %3188, %v2902_v47  }
  0xa0   : > { %v3589_v52 = vpop.permute.xlu1 %1433 }
  0xa1   : > { %1962 = vperm.xlu1 %3189, %v2955_v50   ;;  %v3647_v11 = vpop.permute.xlu0 %1428  ;;  %v3726_v50 = vld [vmem:[%s5074_s2] ss:$0 sm:$0xff] }
  0xa2   : > { %1957 = vperm.xlu0 %3188, %v2954_v51   ;;  %5132 = vst [vmem:[#allocation7_spill] sm:$0xff] %v3647_v11  ;;  %v2907_v51 = vld [vmem:[%s5079_s7 + $0x1f8] sm:$0xff] }
  0xa4   : > { %v3599_v56 = vpop.permute.xlu1 %1443 }
  0xa5   : > { %2105 = vperm.xlu1 %3189, %v2971_v54   ;;  %v3663_v17 = vpop.permute.xlu0 %1438 }
  0xa6   : > { %2100 = vperm.xlu0 %3188, %v2970_v55   ;;  %v2906_v55 = vld [vmem:[%s5079_s7 + $0x1f0] sm:$0xff] }
  0xa8   : > { %v3609_v60 = vpop.permute.xlu1 %962 }
  0xa9   : > { %2115 = vperm.xlu1 %3189, %v2973_v57   ;;  %v3675_v22 = vpop.permute.xlu0 %957 }
  0xaa   : > { %2110 = vperm.xlu0 %3188, %v2972_v58  }
  0xac   : > { %v3617_v63 = vpop.permute.xlu1 %1114 }
  0xad   : > { %1002 = vperm.xlu1 %3189, %v932_v61   ;;  %v3691_v28 = vpop.permute.xlu0 %1109 }
  0xae   : > { %997 = vperm.xlu0 %3188, %v931_v62  }
  0xb0   : > { %v3627_v3 = vpop.permute.xlu1 %1626 }
  0xb1   : > { %1154 = vperm.xlu1 %3189, %v2869_v1   ;;  %v3703_v34 = vpop.permute.xlu0 %1621 }
  0xb2   : > { %1149 = vperm.xlu0 %3188, %v2868_v2  }
  0xb4   : > { %v3637_v7 = vpop.permute.xlu1 %972 }
  0xb5   : > { %5131 = vst [vmem:[#allocation6_spill] sm:$0xff] %v3637_v7  ;;  %1666 = vperm.xlu1 %3189, %v2921_v4   ;;  %v3719_v44 = vpop.permute.xlu0 %967  ;;  %v2959_v4 = vld [vmem:[%s5079_s7 + $0x3d8] sm:$0xff] }
  0xb6   : > { %1661 = vperm.xlu0 %3188, %v2920_v5   ;;  %5136 = vst [vmem:[#allocation11_spill] sm:$0xff] %v3719_v44 }
  0xb8   : > { %v3645_v10 = vpop.permute.xlu1 %1124 }
  0xb9   : > { %1012 = vperm.xlu1 %3189, %v934_v8   ;;  %v3738_v1 = vpop.permute.xlu0 %1119  ;;  %v2958_v8 = vld [vmem:[%s5079_s7 + $0x3d0] sm:$0xff] }
  0xba   : > { %1007 = vperm.xlu0 %3188, %v933_v9   ;;  %5137 = vst [vmem:[#allocation12_spill] sm:$0xff] %v3738_v1 }
  0xbc   : > { %v3655_v14 = vpop.permute.xlu1 %1636 }
  0xbd   : > { %1164 = vperm.xlu1 %3189, %v2871_v12  }
  0xbe   : > { %1159 = vperm.xlu0 %3188, %v2870_v13  }
  0xc0   : > { %v3665_v18 = vpop.permute.xlu1 %1300 }
  0xc1   : > { %5133 = vst [vmem:[#allocation8_spill] sm:$0xff] %v3665_v18  ;;  %1676 = vperm.xlu1 %3189, %v2923_v15  }
  0xc2   : > { %1671 = vperm.xlu0 %3188, %v2922_v16  }
  0xc4   : > { %v3673_v21 = vpop.permute.xlu1 %1779 }
  0xc5   : > { %5134 = vst [vmem:[#allocation9_spill] sm:$0xff] %v3673_v21  ;;  %1340 = vperm.xlu1 %3189, %v2887_v19  }
  0xc6   : > { %1335 = vperm.xlu0 %3188, %v2886_v20  }
  0xc8   : > { %v3683_v25 = vpop.permute.xlu1 %1310 }
  0xc9   : > { %1819 = vperm.xlu1 %3189, %v2939_v23   ;;  %v2975_v23 = vld [vmem:[%s5079_s7 + $0x448] sm:$0xff] }
  0xca   : > { %1814 = vperm.xlu0 %3188, %v2938_v24  }
  0xcc   : > { %v3693_v29 = vpop.permute.xlu1 %1789 }
  0xcd   : > { %1350 = vperm.xlu1 %3189, %v2889_v26  }
  0xce   : > { %1345 = vperm.xlu0 %3188, %v2888_v27   ;;  %v2974_v27 = vld [vmem:[%s5079_s7 + $0x440] sm:$0xff] }
  0xd0   : > { %v3701_v33 = vpop.permute.xlu1 %1453 }
  0xd1   : > { %5135 = vst [vmem:[#allocation10_spill] sm:$0xff] %v3701_v33  ;;  %1829 = vperm.xlu1 %3189, %v2941_v30   ;;  %v3758_v30 = vpop.permute.xlu0 %1631 }
  0xd2   : > { %1824 = vperm.xlu0 %3188, %v2940_v31  }
  0xd4   : > { %v3711_v39 = vpop.permute.xlu1 %1932 }
  0xd5   : > { %1493 = vperm.xlu1 %3189, %v2905_v36  }
  0xd6   : > { %1488 = vperm.xlu0 %3188, %v2904_v37  }
  0xd8   : > { %v3721_v46 = vpop.permute.xlu1 %1463 }
  0xd9   : > { %v3073_v47 = vpop.f32.mrf.mxu0  ;;  %1972 = vperm.xlu1 %3189, %v2957_v40  }
  0xda   : > { %1967 = vperm.xlu0 %3188, %v2956_v43   ;;  %v621_v61 = vadd.f32 %v3073_v47, %v3726_v50 }
  0xdb   : > { %v612_v54 = vpop.f32.mrf.mxu0 }
  0xdc   : > { %v613_v57 = vadd.f32 %v3726_v50, %v612_v54  ;;  %v3735_v58 = vpop.permute.xlu1 %1942  ;;  %v677_v16 = vmax.f32 %v621_v61, 0.0 }
  0xdd   : > { %v3074_v62 = vpop.f32.mrf.mxu0  ;;  %1503 = vperm.xlu1 %3189, %v2907_v51  }
  0xde   : > { %v624_v2 = vadd.f32 %v3074_v62, %v3726_v50  ;;  %1498 = vperm.xlu0 %3188, %v2906_v55   ;;  %v675_v9 = vmax.f32 %v613_v57, 0.0  ;;  %v3767_v43 = vmin.f32 %v677_v16, 6.0  ;;  %v2977_v57 = vld [vmem:[%s5079_s7 + $0x458] sm:$0xff]  ;;  %v3786_v16 = vpop.permute.xlu0 %1295 }
  0xdf   : > { %v615_v5 = vpop.f32.mrf.mxu0 }
  0xe0   : > { %v678_v12 = vmax.f32 %v624_v2, 0.0  ;;  %v616_v13 = vadd.f32 %v3726_v50, %v615_v5  ;;  %v3748_v15 = vpop.permute.xlu1 %2085  ;;  %v3760_v31 = vmin.f32 %v675_v9, 6.0  ;;  %5143 = vst [vmem:[#allocation18_spill] sm:$0xff] %v3767_v43  ;;  %v2976_v2 = vld [vmem:[%s5079_s7 + $0x450] sm:$0xff] }
  0xe1   : > { %5138 = vst [vmem:[#allocation13_spill] sm:$0xff] %v3748_v15  ;;  %v3077_v19 = vpop.f32.mrf.mxu0  ;;  %1982 = vperm.xlu1 %3189, %v2959_v4  }
  0xe2   : > { %v676_v20 = vmax.f32 %v616_v13, 0.0  ;;  %1977 = vperm.xlu0 %3188, %v2958_v8   ;;  %v3753_v24 = vmin.f32 %v678_v12, 6.0  ;;  %5140 = vst [vmem:[#allocation15_spill] sm:$0xff] %v3760_v31  ;;  %v637_v47 = vadd.f32 %v3077_v19, %v3726_v50 }
  0xe3   : > { %v628_v26 = vpop.f32.mrf.mxu0 }
  0xe4   : > { %5139 = vst [vmem:[#allocation14_spill] sm:$0xff] %v3753_v24  ;;  %v3762_v36 = vmin.f32 %v676_v20, 6.0  ;;  %v629_v37 = vadd.f32 %v3726_v50, %v628_v26  ;;  %v3765_v40 = vpop.permute.xlu1 %2095  ;;  %v708_v61 = vpack.c.bf16 %v3753_v24, %v3767_v43  ;;  %v681_v12 = vmax.f32 %v637_v47, 0.0  ;;  %v2925_v20 = vld [vmem:[%s5079_s7 + $0x2e8] sm:$0xff] }
  0xe5   : > { %5142 = vst [vmem:[#allocation17_spill] sm:$0xff] %v3765_v40  ;;  %v3078_v51 = vpop.f32.mrf.mxu0  ;;  %2125 = vperm.xlu1 %3189, %v2975_v23  }
  0xe6   : > { %5141 = vst [vmem:[#allocation16_spill] sm:$0xff] %v3762_v36  ;;  %v640_v54 = vadd.f32 %v3078_v51, %v3726_v50  ;;  %2120 = vperm.xlu0 %3188, %v2974_v27   ;;  %v707_v55 = vpack.c.bf16 %v3762_v36, %v3760_v31  ;;  %v679_v4 = vmax.f32 %v629_v37, 0.0  ;;  %v2924_v27 = vld [vmem:[%s5079_s7 + $0x2e0] sm:$0xff] }
  0xe7   : > { %v631_v62 = vpop.f32.mrf.mxu0 }
  0xe8   : > { %v682_v5 = vmax.f32 %v640_v54, 0.0  ;;  %v632_v8 = vadd.f32 %v3726_v50, %v631_v62  ;;  %3089 = vmatprep.mubr.msk.bf16.mxu1 %vm730_vm3, %v707_v55  ;;  %v3783_v9 = vpop.permute.xlu1 %982  ;;  %v3796_v37 = vmin.f32 %v679_v4, 6.0  ;;  %v3803_v55 = vmin.f32 %v681_v12, 6.0  ;;  %v2927_v4 = vld [vmem:[%s5079_s7 + $0x2f8] sm:$0xff]  ;;  %v2926_v12 = vld [vmem:[%s5079_s7 + $0x2f0] sm:$0xff] }
  0xe9   : > { %5144 = vst [vmem:[#allocation19_spill] sm:$0xff] %v3783_v9  ;;  %v3081_v13 = vpop.f32.mrf.mxu0  ;;  %3090 = vmatmul.mubr.msk.bf16.vlgmr.msra.gmra.mxu1 %vm730_vm3, %v708_v61  ;;  %2135 = vperm.xlu1 %3189, %v2977_v57  }
  0xea   : > { %v680_v19 = vmax.f32 %v632_v8, 0.0  ;;  %2130 = vperm.xlu0 %3188, %v2976_v2   ;;  %v3791_v23 = vmin.f32 %v682_v5, 6.0  ;;  %5146 = vst [vmem:[#allocation21_spill] sm:$0xff] %v3796_v37  ;;  %5149 = vst [vmem:[#allocation24_spill] sm:$0xff] %v3803_v55  ;;  %v653_v57 = vadd.f32 %v3081_v13, %v3726_v50  ;;  %v3817_v13 = vpop.permute.xlu0 %1774 }
  0xeb   : > { %v644_v26 = vpop.f32.mrf.mxu0  ;;  %5150 = vst [vmem:[#allocation25_spill] sm:$0xff] %v3817_v13 }
  0xec   : > { %5145 = vst [vmem:[#allocation20_spill] sm:$0xff] %v3791_v23  ;;  %v3798_v47 = vmin.f32 %v680_v19, 6.0  ;;  %v645_v51 = vadd.f32 %v3726_v50, %v644_v26  ;;  %v3801_v54 = vpop.permute.xlu1 %1134  ;;  %v710_v5 = vpack.c.bf16 %v3791_v23, %v3803_v55 }
  0xed   : > { %5148 = vst [vmem:[#allocation23_spill] sm:$0xff] %v3801_v54  ;;  %v3082_v61 = vpop.f32.mrf.mxu0  ;;  %1686 = vperm.xlu1 %3189, %v2925_v20  }
  0xee   : > { %5147 = vst [vmem:[#allocation22_spill] sm:$0xff] %v3798_v47  ;;  %v709_v62 = vpack.c.bf16 %v3798_v47, %v3796_v37  ;;  %v656_v2 = vadd.f32 %v3082_v61, %v3726_v50  ;;  %1681 = vperm.xlu0 %3188, %v2924_v27   ;;  %v683_v19 = vmax.f32 %v645_v51, 0.0  ;;  %v685_v61 = vmax.f32 %v653_v57, 0.0  ;;  %v2943_v37 = vld [vmem:[%s5079_s7 + $0x368] sm:$0xff] }
  0xef   : > { %v647_v8 = vpop.f32.mrf.mxu0 }
  0xf0   : > { %v686_v20 = vmax.f32 %v656_v2, 0.0  ;;  %v648_v26 = vadd.f32 %v3726_v50, %v647_v8  ;;  %3093 = vmatprep.mubr.msk.bf16.mxu1 %vm730_vm3, %v709_v62  ;;  %v3821_v27 = vpop.permute.xlu1 %1646  ;;  %v2942_v62 = vld [vmem:[%s5079_s7 + $0x360] sm:$0xff]  ;;  %v3832_v2 = vmin.f32 %v683_v19, 6.0  ;;  %v3839_v8 = vmin.f32 %v685_v61, 6.0 }
  0xf1   : > { %5151 = vst [vmem:[#allocation26_spill] sm:$0xff] %v3821_v27  ;;  %v3085_v47 = vpop.f32.mrf.mxu0  ;;  %3094 = vmatmul.mubr.msk.bf16.gmra.mxu1 %vm730_vm3, %v710_v5  ;;  %1696 = vperm.xlu1 %3189, %v2927_v4  }
  0xf2   : > { %v684_v55 = vmax.f32 %v648_v26, 0.0  ;;  %1691 = vperm.xlu0 %3188, %v2926_v12   ;;  %v3827_v23 = vmin.f32 %v686_v20, 6.0  ;;  %5153 = vst [vmem:[#allocation28_spill] sm:$0xff] %v3832_v2  ;;  %5156 = vst [vmem:[#allocation31_spill] sm:$0xff] %v3839_v8  ;;  %v669_v12 = vadd.f32 %v3085_v47, %v3726_v50  ;;  %v3842_v20 = vpop.permute.xlu0 %1305 }
  0xf3   : > { %v660_v51 = vpop.f32.mrf.mxu0  ;;  %5157 = vst [vmem:[#allocation32_spill] sm:$0xff] %v3842_v20 }
  0xf4   : > { %5152 = vst [vmem:[#allocation27_spill] sm:$0xff] %v3827_v23  ;;  %v3834_v57 = vmin.f32 %v684_v55, 6.0  ;;  %v661_v5 = vadd.f32 %v3726_v50, %v660_v51  ;;  %v3837_v4 = vpop.permute.xlu1 %992  ;;  %v2945_v55 = vld [vmem:[%s5079_s7 + $0x378] sm:$0xff]  ;;  %v712_v61 = vpack.c.bf16 %v3827_v23, %v3839_v8  ;;  %v2961_v8 = vld [vmem:[%s5079_s7 + $0x3e8] sm:$0xff] }
  0xf5   : > { %5155 = vst [vmem:[#allocation30_spill] sm:$0xff] %v3837_v4  ;;  %v3086_v26 = vpop.f32.mrf.mxu0  ;;  %1839 = vperm.xlu1 %3189, %v2943_v37   ;;  %v2944_v37 = vld [vmem:[%s5079_s7 + $0x370] sm:$0xff] }
  0xf6   : > { %5154 = vst [vmem:[#allocation29_spill] sm:$0xff] %v3834_v57  ;;  %v711_v43 = vpack.c.bf16 %v3834_v57, %v3832_v2  ;;  %v672_v19 = vadd.f32 %v3086_v26, %v3726_v50  ;;  %1834 = vperm.xlu0 %3188, %v2942_v62   ;;  %v687_v47 = vmax.f32 %v661_v5, 0.0  ;;  %v689_v62 = vmax.f32 %v669_v12, 0.0  ;;  %v3868_v5 = vpop.permute.xlu0 %1784 }
  0xf7   : > { %v663_v51 = vpop.f32.mrf.mxu0 }
  0xf8   : > { %v690_v36 = vmax.f32 %v672_v19, 0.0  ;;  %v664_v31 = vadd.f32 %v3726_v50, %v663_v51  ;;  %3097 = vmatprep.mubr.msk.bf16.mxu1 %vm730_vm3, %v711_v43  ;;  %v3857_v26 = vpop.permute.xlu1 %1144  ;;  %v2960_v50 = vld [vmem:[%s5079_s7 + $0x3e0] sm:$0xff]  ;;  %v3870_v43 = vmin.f32 %v687_v47, 6.0 }
  0xf9   : > { %5158 = vst [vmem:[#allocation33_spill] sm:$0xff] %v3857_v26  ;;  %3098 = vmatmul.mubr.msk.bf16.gmra.mxu1 %vm730_vm3, %v712_v61  ;;  %1849 = vperm.xlu1 %3189, %v2945_v55   ;;  %v2978_v47 = vld [vmem:[%s5079_s7 + $0x460] sm:$0xff] }
  0xfa   : > { %v688_v57 = vmax.f32 %v664_v31, 0.0  ;;  %1844 = vperm.xlu0 %3188, %v2944_v37   ;;  %v3863_v2 = vmin.f32 %v690_v36, 6.0  ;;  %5160 = vst [vmem:[#allocation35_spill] sm:$0xff] %v3870_v43  ;;  %v3876_v31 = vmin.f32 %v689_v62, 6.0  ;;  %v2963_v36 = vld [vmem:[%s5079_s7 + $0x3f8] sm:$0xff]  ;;  %v2979_v37 = vld [vmem:[%s5079_s7 + $0x468] sm:$0xff] }
  0xfc   : > { %5159 = vst [vmem:[#allocation34_spill] sm:$0xff] %v3863_v2  ;;  %v3872_v12 = vmin.f32 %v688_v57, 6.0  ;;  %v3874_v19 = vpop.permute.xlu1 %1656  ;;  %5163 = vst [vmem:[#allocation38_spill] sm:$0xff] %v3876_v31  ;;  %v714_v61 = vpack.c.bf16 %v3863_v2, %v3876_v31  ;;  %v2962_v57 = vld [vmem:[%s5079_s7 + $0x3f0] sm:$0xff] }
  0xfd   : > { %5162 = vst [vmem:[#allocation37_spill] sm:$0xff] %v3874_v19  ;;  %1992 = vperm.xlu1 %3189, %v2961_v8   ;;  %v3892_v8 = vpop.permute.xlu0 %1448 }
  0xfe   : > { %5161 = vst [vmem:[#allocation36_spill] sm:$0xff] %v3872_v12  ;;  %v713_v55 = vpack.c.bf16 %v3872_v12, %v3870_v43  ;;  %1987 = vperm.xlu0 %3188, %v2960_v50   ;;  %v2981_v50 = vld [vmem:[%s5079_s7 + $0x478] sm:$0xff] }
 0x100   : > { %3101 = vmatprep.mubr.msk.bf16.mxu1 %vm730_vm3, %v713_v55  ;;  %v3889_v51 = vpop.permute.xlu1 %1320  ;;  %v2980_v55 = vld [vmem:[%s5079_s7 + $0x470] sm:$0xff] }
 0x101   : > { %5164 = vst [vmem:[#allocation39_spill] sm:$0xff] %v3889_v51  ;;  %3102 = vmatmul.mubr.msk.bf16.gmra.mxu1 %vm730_vm3, %v714_v61  ;;  %2002 = vperm.xlu1 %3189, %v2963_v36   ;;  %v3908_v36 = vpop.permute.xlu0 %1927 }
 0x102   : > { %1997 = vperm.xlu0 %3188, %v2962_v57  }
 0x104   : > { %v3900_v62 = vpop.permute.xlu1 %1799 }
 0x105   : > { %5165 = vst [vmem:[#allocation40_spill] sm:$0xff] %v3900_v62  ;;  %2145 = vperm.xlu1 %3189, %v2979_v37   ;;  %v3914_v31 = vpop.permute.xlu0 %1458 }
 0x106   : > { %2140 = vperm.xlu0 %3188, %v2978_v47   ;;  %5168 = vst [vmem:[#allocation43_spill] sm:$0xff] %v3914_v31 }
 0x108   : > { %v3910_v61 = vpop.permute.xlu1 %1330 }
 0x109   : > { %5166 = vst [vmem:[#allocation41_spill] sm:$0xff] %v3910_v61  ;;  %2155 = vperm.xlu1 %3189, %v2981_v50   ;;  %v3918_v47 = vpop.permute.xlu0 %1937 }
 0x10a   : > { %2150 = vperm.xlu0 %3188, %v2980_v55  }
 0x10c   : > { %v3912_v57 = vpop.permute.xlu1 %1809 }
 0x10d   : > { %5167 = vst [vmem:[#allocation42_spill] sm:$0xff] %v3912_v57  ;;  %v3922_v43 = vpop.permute.xlu0 %2080 }
 0x10e   : > { %5170 = vst [vmem:[#allocation45_spill] sm:$0xff] %v3922_v43 }
 0x110   : > { %v3916_v37 = vpop.permute.xlu1 %1473 }
 0x111   : > { %5169 = vst [vmem:[#allocation44_spill] sm:$0xff] %v3916_v37  ;;  %v3926_v23 = vpop.permute.xlu0 %2090 }
 0x114   : > { %v3920_v12 = vpop.permute.xlu1 %1952 }
 0x115   : > { %v3930_v50 = vpop.permute.xlu0 %977 }
 0x118   : > { %v3924_v2 = vpop.permute.xlu1 %1483 }
 0x119   : > { %5171 = vst [vmem:[#allocation46_spill] sm:$0xff] %v3924_v2  ;;  %v3934_v57 = vpop.permute.xlu0 %1129 }
 0x11c   : > { %v3928_v24 = vpop.permute.xlu1 %1962 }
 0x11d   : > { %5172 = vst [vmem:[#allocation47_spill] sm:$0xff] %v3928_v24  ;;  %v3938_v15 = vpop.permute.xlu0 %1641 }
 0x11e   : > { %5175 = vst [vmem:[#allocation50_spill] sm:$0xff] %v3938_v15 }
 0x120   : > { %v3932_v55 = vpop.permute.xlu1 %2105 }
 0x121   : > { %5173 = vst [vmem:[#allocation48_spill] sm:$0xff] %v3932_v55  ;;  %v3942_v11 = vpop.permute.xlu0 %987 }
 0x122   : > { %5177 = vst [vmem:[#allocation52_spill] sm:$0xff] %v3942_v11 }
 0x124   : > { %v3936_v62 = vpop.permute.xlu1 %2115 }
 0x125   : > { %5174 = vst [vmem:[#allocation49_spill] sm:$0xff] %v3936_v62  ;;  %v3946_v42 = vpop.permute.xlu0 %1139 }
 0x126   : > { %5179 = vst [vmem:[#allocation54_spill] sm:$0xff] %v3946_v42 }
 0x128   : > { %v3940_v0 = vpop.permute.xlu1 %1002 }
 0x129   : > { %5176 = vst [vmem:[#allocation51_spill] sm:$0xff] %v3940_v0  ;;  %v3950_v43 = vpop.permute.xlu0 %1651 }
 0x12a   : > { %5181 = vst [vmem:[#allocation56_spill] sm:$0xff] %v3950_v43 }
 0x12c   : > { %v3944_v48 = vpop.permute.xlu1 %1154 }
 0x12d   : > { %5178 = vst [vmem:[#allocation53_spill] sm:$0xff] %v3944_v48  ;;  %v3954_v55 = vpop.permute.xlu0 %1315 }
 0x12e   : > { %5183 = vst [vmem:[#allocation58_spill] sm:$0xff] %v3954_v55 }
 0x130   : > { %v3948_v32 = vpop.permute.xlu1 %1666 }
 0x131   : > { %5180 = vst [vmem:[#allocation55_spill] sm:$0xff] %v3948_v32  ;;  %v3958_v62 = vpop.permute.xlu0 %1794 }
 0x132   : > { %5185 = vst [vmem:[#allocation60_spill] sm:$0xff] %v3958_v62 }
 0x134   : > { %v3952_v21 = vpop.permute.xlu1 %1012 }
 0x135   : > { %5182 = vst [vmem:[#allocation57_spill] sm:$0xff] %v3952_v21  ;;  %v3962_v0 = vpop.permute.xlu0 %1325 }
 0x136   : > { %5187 = vst [vmem:[#allocation62_spill] sm:$0xff] %v3962_v0 }
 0x138   : > { %v3956_v13 = vpop.permute.xlu1 %1164 }
 0x139   : > { %5184 = vst [vmem:[#allocation59_spill] sm:$0xff] %v3956_v13  ;;  %v3966_v48 = vpop.permute.xlu0 %1804 }
 0x13a   : > { %5189 = vst [vmem:[#allocation64_spill] sm:$0xff] %v3966_v48 }
 0x13c   : > { %v3960_v51 = vpop.permute.xlu1 %1676 }
 0x13d   : > { %5186 = vst [vmem:[#allocation61_spill] sm:$0xff] %v3960_v51  ;;  %v3970_v32 = vpop.permute.xlu0 %1468 }
 0x13e   : > { %5191 = vst [vmem:[#allocation66_spill] sm:$0xff] %v3970_v32 }
 0x140   : > { %v3964_v37 = vpop.permute.xlu1 %1340 }
 0x141   : > { %5188 = vst [vmem:[#allocation63_spill] sm:$0xff] %v3964_v37  ;;  %v3974_v21 = vpop.permute.xlu0 %1947 }
 0x142   : > { %5193 = vst [vmem:[#allocation68_spill] sm:$0xff] %v3974_v21 }
 0x144   : > { %v3968_v4 = vpop.permute.xlu1 %1819 }
 0x145   : > { %5190 = vst [vmem:[#allocation65_spill] sm:$0xff] %v3968_v4  ;;  %v3978_v13 = vpop.permute.xlu0 %1478 }
 0x146   : > { %5195 = vst [vmem:[#allocation70_spill] sm:$0xff] %v3978_v13 }
 0x148   : > { %v3972_v11 = vpop.permute.xlu1 %1350 }
 0x149   : > { %5192 = vst [vmem:[#allocation67_spill] sm:$0xff] %v3972_v11  ;;  %v3982_v51 = vpop.permute.xlu0 %1957 }
 0x14c   : > { %v3976_v42 = vpop.permute.xlu1 %1829 }
 0x14d   : > { %5194 = vst [vmem:[#allocation69_spill] sm:$0xff] %v3976_v42  ;;  %v3986_v37 = vpop.permute.xlu0 %2100 }
 0x14e   : > { %5198 = vst [vmem:[#allocation73_spill] sm:$0xff] %v3986_v37  ;;  %v3193_v37 = vld [vmem:[%s5080_s8 + $0x8] sm:$0xff]  }
 0x14f   : > { %3105 = vmatprep.subr.bf16.mxu1 %v3193_v37 }
 0x150   : > { %v3980_v62 = vpop.permute.xlu1 %1493  ;;  %3106 = vmatpush3.bf16.msra.mxu1 %v3193_v37 }
 0x151   : > { %5196 = vst [vmem:[#allocation71_spill] sm:$0xff] %v3980_v62  ;;  %v3990_v4 = vpop.permute.xlu0 %2110 }
 0x152   : > { %5200 = vst [vmem:[#allocation75_spill] sm:$0xff] %v3990_v4  ;;  %v3194_v4 = vld [vmem:[%s5080_s8] sm:$0xff]  }
 0x153   : > { %3107 = vmatprep.subr.bf16.mxu1 %v3194_v4 }
 0x154   : > { %v3984_v0 = vpop.permute.xlu1 %1972  ;;  %3108 = vmatpush3.bf16.msra.mxu1 %v3194_v4 }
 0x155   : > { %5197 = vst [vmem:[#allocation72_spill] sm:$0xff] %v3984_v0  ;;  %v3994_v11 = vpop.permute.xlu0 %997 }
 0x156   : > { %5202 = vst [vmem:[#allocation77_spill] sm:$0xff] %v3994_v11 }
 0x158   : > { %v3988_v48 = vpop.permute.xlu1 %1503 }
 0x159   : > { %5199 = vst [vmem:[#allocation74_spill] sm:$0xff] %v3988_v48  ;;  %v3998_v42 = vpop.permute.xlu0 %1149 }
 0x15a   : > { %5204 = vst [vmem:[#allocation79_spill] sm:$0xff] %v3998_v42  ;;  %v4025_v42 = vld [vmem:[%s5076_s4] ss:$0 sm:$0xff] }
 0x15c   : > { %v3992_v2 = vpop.permute.xlu1 %1982 }
 0x15d   : > { %5201 = vst [vmem:[#allocation76_spill] sm:$0xff] %v3992_v2  ;;  %v4002_v62 = vpop.permute.xlu0 %1661 }
 0x15e   : > { %5206 = vst [vmem:[#allocation81_spill] sm:$0xff] %v4002_v62 }
 0x160   : > { %v3996_v61 = vpop.permute.xlu1 %2125 }
 0x161   : > { %5203 = vst [vmem:[#allocation78_spill] sm:$0xff] %v3996_v61  ;;  %v4012_v61 = vpop.permute.xlu0 %1007 }
 0x162   : > { %5208 = vst [vmem:[#allocation83_spill] sm:$0xff] %v4012_v61  ;;  %v900_v61 = vlaneseq }
 0x164   : > { %v4000_v13 = vpop.permute.xlu1 %2135  ;;  %v4038_v54 = vshrl.u32 %v900_v61, 7 }
 0x165   : > { %5205 = vst [vmem:[#allocation80_spill] sm:$0xff] %v4000_v13  ;;  %v4016_v13 = vpop.permute.xlu0 %1159 }
 0x166   : > { %5210 = vst [vmem:[#allocation85_spill] sm:$0xff] %v4016_v13  ;;  %vm902_vm4 = vcmp.lt.s32.totalorder %v4038_v54, 1  ;;  %vm1239_vm5 = vcmp.lt.s32.totalorder %v4038_v54, 7 }
 0x168   : > { %v4010_v48 = vpop.permute.xlu1 %1686 }
 0x169   : > { %5207 = vst [vmem:[#allocation82_spill] sm:$0xff] %v4010_v48  ;;  %v4020_v11 = vpop.permute.xlu0 %1671 }
 0x16a   : > { %5212 = vst [vmem:[#allocation87_spill] sm:$0xff] %v4020_v11 }
 0x16c   : > { %v4014_v2 = vpop.permute.xlu1 %1696 }
 0x16d   : > { %5209 = vst [vmem:[#allocation84_spill] sm:$0xff] %v4014_v2  ;;  %v4029_v48 = vpop.permute.xlu0 %1335 }
 0x16e   : > { %5214 = vst [vmem:[#allocation89_spill] sm:$0xff] %v4029_v48 }
 0x170   : > { %v4018_v62 = vpop.permute.xlu1 %1839 }
 0x171   : > { %5211 = vst [vmem:[#allocation86_spill] sm:$0xff] %v4018_v62  ;;  %v4040_v0 = vpop.permute.xlu0 %1814 }
 0x172   : > { %5216 = vst [vmem:[#allocation91_spill] sm:$0xff] %v4040_v0 }
 0x174   : > { %v4027_v19 = vpop.permute.xlu1 %1849 }
 0x175   : > { %5213 = vst [vmem:[#allocation88_spill] sm:$0xff] %v4027_v19  ;;  %v4092_v20 = vpop.permute.xlu0 %1345 }
 0x176   : > { %5220 = vst [vmem:[#allocation95_spill] sm:$0xff] %v4092_v20 }
 0x178   : > { %v4033_v55 = vpop.permute.xlu1 %1992 }
 0x179   : > { %5215 = vst [vmem:[#allocation90_spill] sm:$0xff] %v4033_v55  ;;  %v4163_v1 = vpop.permute.xlu0 %1824 }
 0x17a   : > { %5225 = vst [vmem:[#allocation98_spill] sm:$0xff] %v4163_v1 }
 0x17c   : > { %v2003_v40 = vpop.permute.xlu1 %2002 }
 0x1a9   : > { %v3091_v37 = vpop.f32.mrf.mxu1 }
 0x1aa   : > { %v798_v4 = vadd.f32 %v3091_v37, %v4025_v42 }
 0x1ab   : > { %v789_v2 = vpop.f32.mrf.mxu1 }
 0x1ac   : > { %v854_v32 = vmax.f32 %v798_v4, 0.0  ;;  %v790_v13 = vadd.f32 %v4025_v42, %v789_v2  ;;  %v4047_v2 = vld [vmem:[%s5077_s5 + $0x1] ss:$0 sm:$0xff] }
 0x1ad   : > { %v3092_v62 = vpop.f32.mrf.mxu1 }
 0x1ae   : > { %v4035_v11 = vmin.f32 %v854_v32, 6.0  ;;  %v852_v9 = vmax.f32 %v790_v13, 0.0  ;;  %v801_v24 = vadd.f32 %v3092_v62, %v4025_v42  ;;  %v4052_v32 = vld [vmem:[%s5077_s5 + $0x4] ss:$0 sm:$0xff]  ;;  %v4059_v62 = vld [vmem:[%s5077_s5 + $0x7] ss:$0 sm:$0xff] }
 0x1af   : > { %v792_v19 = vpop.f32.mrf.mxu1 }
 0x1b0   : > { %v1170_v37 = vmul.f32 %v3561_v41, %v4035_v11  ;;  %v2006_v13 = vmul.f32 %v3711_v39, %v4035_v11  ;;  %v4061_v61 = vmin.f32 %v852_v9, 6.0  ;;  %v855_v41 = vmax.f32 %v801_v24, 0.0 }
 0x1b1   : > { %v793_v4 = vadd.f32 %v4025_v42, %v792_v19  ;;  %v3095_v0 = vpop.f32.mrf.mxu1  ;;  %v886_v48 = vrot.slane %v4035_v11, 7  ;;  %v1225_v26 = vrot.slane %v4035_v11, 1  ;;  %v4074_v9 = vmul.f32 %v4052_v32, %v4035_v11 }
 0x1b2   : > { %v814_v55 = vadd.f32 %v3095_v0, %v4025_v42  ;;  %v4069_v39 = vmul.f32 %v4047_v2, %v1170_v37  ;;  %v1168_v24 = vmul.f32 %v3545_v35, %v4061_v61  ;;  %v4079_v15 = vmul.f32 %v4059_v62, %v2006_v13 }
 0x1b3   : > { %v805_v19 = vpop.f32.mrf.mxu1  ;;  %v4082_v0 = vmin.f32 %v855_v41, 6.0  ;;  %v853_v37 = vmax.f32 %v793_v4, 0.0  ;;  %v4087_v33 = vmul.f32 %v4052_v32, %v4061_v61  ;;  %v4090_v11 = vmul.f32 %v2003_v40, %v4061_v61  ;;  %v4107_v40 = vld [vmem:[%s5077_s5] ss:$0 sm:$0xff] }
 0x1b4   : > { %5217 = vst [vmem:[#allocation92_spill] sm:$0xff] %v4079_v15  ;;  %v858_v35 = vmax.f32 %v814_v55, 0.0  ;;  %v4099_v4 = vadd.f32 %v4025_v42, %v805_v19  ;;  %v4102_v31 = vmul.f32 %v4047_v2, %v1168_v24 }
 0x1b5   : > { %5218 = vst [vmem:[#allocation93_spill] sm:$0xff] %v4087_v33  ;;  %5219 = vst [vmem:[#allocation94_spill] sm:$0xff] %v4090_v11  ;;  %v1171_v27 = vmul.f32 %v3691_v28, %v4082_v0  ;;  %v4111_v55 = vmul.f32 %v4052_v32, %v4082_v0  ;;  %v2007_v28 = vmul.f32 %v3918_v47, %v4082_v0  ;;  %v869_v13 = vmin.f32 %v853_v37, 6.0  ;;  %v4129_v33 = vld [vmem:[%s5077_s5 + $0x2] ss:$0 sm:$0xff]  ;;  %v3096_v21 = vpop.f32.mrf.mxu1 }
 0x1b6   : > { %5221 = vst [vmem:[#allocation96_spill] sm:$0xff] %v4102_v31  ;;  %v5222_v41 = vrot.slane %v4082_v0, 7  ;;  %v5223_v11 = vrot.slane %v4082_v0, 1  ;;  %v4134_v47 = vld [vmem:[%s5077_s5 + $0x3] ss:$0 sm:$0xff]  ;;  %v4136_v37 = vmin.f32 %v858_v35, 6.0 }
 0x1b7   : > { %v1195_v24 = vmul.f32 %v4047_v2, %v1171_v27  ;;  %v4147_v31 = vld [vmem:[%s5077_s5 + $0x5] ss:$0 sm:$0xff]  ;;  %v4152_v35 = vld [vmem:[%s5077_s5 + $0x6] ss:$0 sm:$0xff]  ;;  %v885_v18 = vrot.slane %v869_v13, 7  ;;  %v4161_v44 = vmul.f32 %v4059_v62, %v2007_v28 }
 0x1b8   : > { %v915_v19 = vsel %vm902_vm4, %v886_v48, %v5222_v41  ;;  %v4124_v15 = vsel %vm1239_vm5, %v1225_v26, %v5223_v11 }
 0x1b9   : > { %5224 = vst [vmem:[#allocation97_spill] sm:$0xff] %v4124_v15  ;;  %v1019_v27 = vmul.f32 %v3675_v22, %v915_v19  ;;  %v1356_v41 = vmul.f32 %v3581_v49, %v4124_v15  ;;  %v1509_v11 = vmul.f32 %v3599_v56, %v915_v19  ;;  %v1701_v20 = vmul.f32 %v3758_v30, %v4124_v15 }
 0x1ba   : > { %v1854_v22 = vmul.f32 %v3868_v5, %v915_v19  ;;  %v1169_v49 = vmul.f32 %v3607_v59, %v869_v13  ;;  %v856_v56 = vmax.f32 %v4099_v4, 0.0  ;;  %v4171_v59 = vsel %vm902_vm4, %v885_v18, %v886_v48 }
 0x1bb   : > { %v1042_v7 = vmul.f32 %v4107_v40, %v1019_v27  ;;  %v1380_v30 = vmul.f32 %v4129_v33, %v1356_v41  ;;  %v1533_v15 = vmul.f32 %v4134_v47, %v1509_v11  ;;  %v1725_v43 = vmul.f32 %v4147_v31, %v1701_v20 }
 0x1bc   : > { %v4167_v5 = vmul.f32 %v4152_v35, %v1854_v22  ;;  %v5226_v4 = vrot.slane %v4061_v61, 7  ;;  %v1018_v27 = vmul.f32 %v3553_v38, %v4171_v59  ;;  %v1193_v20 = vmul.f32 %v4047_v2, %v1169_v49 }
 0x1bd   : > { %v1224_v41 = vrot.slane %v869_v13, 1  ;;  %v4184_v11 = vadd.f32 %v1195_v24, %v1042_v7  ;;  %v1508_v22 = vmul.f32 %v3663_v17, %v4171_v59  ;;  %v5227_v49 = vrot.slane %v4061_v61, 1 }
 0x1be   : > { %v4177_v19 = vsel %vm902_vm4, %v5226_v4, %v885_v18  ;;  %v2005_v18 = vmul.f32 %v3908_v36, %v869_v13 }
 0x1bf   : > { %v1017_v28 = vmul.f32 %v3591_v53, %v4177_v19  ;;  %v1507_v48 = vmul.f32 %v3589_v52, %v4177_v19  ;;  %v1041_v53 = vmul.f32 %v4107_v40, %v1018_v27  ;;  %v4195_v38 = vsel %vm1239_vm5, %v1224_v41, %v1225_v26  ;;  %v808_v52 = vpop.f32.mrf.mxu1 }
 0x1c0   : > { %v4201_v7 = vsel %vm1239_vm5, %v5227_v49, %v1224_v41  ;;  %v1355_v36 = vmul.f32 %v3635_v6, %v4195_v38  ;;  %v1532_v1 = vmul.f32 %v4134_v47, %v1508_v22  ;;  %v4219_v49 = vpop.permute.xlu0 %1488 }
 0x1c1   : > { %v1040_v4 = vmul.f32 %v4107_v40, %v1017_v28  ;;  %5228 = vst [vmem:[#allocation99_spill] sm:$0xff] %v4201_v7  ;;  %v1354_v17 = vmul.f32 %v3571_v45, %v4201_v7  ;;  %v4208_v24 = vmul.f32 %v4134_v47, %v1507_v48  ;;  %v4211_v28 = vmul.f32 %v4052_v32, %v869_v13 }
 0x1c2   : > { %v1210_v27 = vadd.f32 %v4069_v39, %v1041_v53  ;;  %v4217_v41 = vmul.f32 %v3703_v34, %v4201_v7  ;;  %v1379_v6 = vmul.f32 %v4129_v33, %v1355_v36  ;;  %v4227_v13 = vmul.f32 %v3627_v3, %v4195_v38 }
 0x1c3   : > { %v1209_v26 = vadd.f32 %v1193_v20, %v1040_v4  ;;  %v4222_v45 = vmul.f32 %v4129_v33, %v1354_v17  ;;  %v4230_v20 = vmul.f32 %v4059_v62, %v2005_v18  ;;  %v1174_v34 = vmul.f32 %v3645_v10, %v4136_v37  ;;  %v3099_v4 = vpop.f32.mrf.mxu1 }
 0x1c4   : > { %v1396_v39 = vadd.f32 %v1380_v30, %v1210_v27  ;;  %v2010_v17 = vmul.f32 %v3920_v12, %v4136_v37  ;;  %v4238_v36 = vmin.f32 %v856_v56, 6.0  ;;  %v817_v3 = vadd.f32 %v3096_v21, %v4025_v42 }
 0x1c5   : > { %5229 = vst [vmem:[#allocation100_spill] sm:$0xff] %v4230_v20  ;;  %v1395_v53 = vadd.f32 %v1379_v6, %v1209_v26  ;;  %v4242_v18 = vmul.f32 %v4047_v2, %v1174_v34  ;;  %v4246_v30 = vmul.f32 %v4052_v32, %v4136_v37  ;;  %v809_v10 = vadd.f32 %v4025_v42, %v808_v52  ;;  %v4266_v52 = vpop.permute.xlu0 %1967 }
 0x1c6   : > { %v1549_v27 = vadd.f32 %v1533_v15, %v1396_v39  ;;  %v888_v26 = vrot.slane %v4238_v36, 7  ;;  %v1172_v12 = vmul.f32 %v3617_v63, %v4238_v36  ;;  %v4253_v56 = vadd.f32 %v3099_v4, %v4025_v42 }
 0x1c7   : > { %5230 = vst [vmem:[#allocation101_spill] sm:$0xff] %v4246_v30  ;;  %v1548_v22 = vadd.f32 %v1532_v1, %v1395_v53  ;;  %v4256_v21 = vmul.f32 %v4059_v62, %v2010_v17  ;;  %v5108_v6 = vrot.slane %v4238_v36, 1  ;;  %v1574_v34 = vmul.f32 %v4052_v32, %v4238_v36  ;;  %v3195_v1 = vld [vmem:[%s5082_s10] sm:$0xff]  }
 0x1c8   : > { %v2008_v15 = vmul.f32 %v3735_v58, %v4238_v36  ;;  %v5232_v39 = vrot.slane %v4082_v0, 7  ;;  %v1589_v53 = vadd.f32 %v4111_v55, %v1549_v27  ;;  %v859_v17 = vmax.f32 %v817_v3, 0.0  ;;  %3125 = vmatprep.subr.bf16.mxu0 %v3195_v1  ;;  %v4299_v27 = vld [vmem:[%s5077_s5 + $0x8] ss:$0 sm:$0xff] }
 0x1c9   : > { %5231 = vst [vmem:[#allocation102_spill] sm:$0xff] %v4256_v21  ;;  %v1588_v63 = vadd.f32 %v4074_v9, %v1548_v22  ;;  %v5233_v48 = vrot.slane %v4082_v0, 1  ;;  %3126 = vmatpush3.bf16.msra.mxu0 %v3195_v1  ;;  %v5259_v21 = vld [vmem:[#allocation26_spill] sm:$0xff] }
 0x1ca   : > { %v914_v4 = vsel %vm902_vm4, %v5232_v39, %v888_v26  ;;  %v1196_v39 = vmul.f32 %v4047_v2, %v1172_v12  ;;  %v821_v12 = vpop.f32.mrf.mxu1 }
 0x1cb   : > { %v1020_v58 = vmul.f32 %v3609_v60, %v914_v4  ;;  %v1251_v7 = vsel %vm1239_vm5, %v5233_v48, %v5108_v6  ;;  %v1510_v9 = vmul.f32 %v3892_v8, %v914_v4  ;;  %v1855_v22 = vmul.f32 %v3693_v29, %v914_v4 }
 0x1cc   : > { %v4285_v30 = vadd.f32 %v1725_v43, %v1588_v63  ;;  %v1357_v55 = vmul.f32 %v3786_v16, %v1251_v7  ;;  %v1702_v60 = vmul.f32 %v3655_v14, %v1251_v7  ;;  %v2032_v48 = vmul.f32 %v4059_v62, %v2008_v15 }
 0x1cd   : > { %v1043_v3 = vmul.f32 %v4107_v40, %v1020_v58  ;;  %v1534_v0 = vmul.f32 %v4134_v47, %v1510_v9  ;;  %v2160_v8 = vmul.f32 %v3926_v23, %v1251_v7  ;;  %v4301_v16 = vmin.f32 %v859_v17, 6.0  ;;  %v4308_v7 = vpop.permute.xlu0 %1498 }
 0x1ce   : > { %v1381_v29 = vmul.f32 %v4129_v33, %v1357_v55  ;;  %v1726_v43 = vmul.f32 %v4147_v31, %v1702_v60  ;;  %v857_v14 = vmax.f32 %v809_v10, 0.0  ;;  %v1879_v63 = vmul.f32 %v4152_v35, %v1855_v22 }
 0x1cf   : > { %v1212_v1 = vadd.f32 %v1196_v39, %v1043_v3  ;;  %v4305_v15 = vmul.f32 %v4299_v27, %v2160_v8  ;;  %v862_v23 = vmax.f32 %v4253_v56, 0.0  ;;  %v5107_v9 = vrot.slane %v4301_v16, 7 }
 0x1d0   : > { %v1397_v4 = vadd.f32 %v1381_v29, %v4184_v11  ;;  %v1742_v58 = vadd.f32 %v1726_v43, %v1589_v53  ;;  %v1175_v17 = vmul.f32 %v3934_v57, %v4301_v16  ;;  %v5106_v10 = vrot.slane %v4301_v16, 1  ;;  %v3100_v43 = vpop.f32.mrf.mxu1 }
 0x1d1   : > { %5234 = vst [vmem:[#allocation103_spill] sm:$0xff] %v4305_v15  ;;  %v2011_v22 = vmul.f32 %v3982_v51, %v4301_v16  ;;  %v873_v39 = vmin.f32 %v857_v14, 6.0  ;;  %v4318_v55 = vadd.f32 %v4025_v42, %v821_v12  ;;  %v5235_v11 = vrot.slane %v4136_v37, 7 }
 0x1d2   : > { %v1550_v56 = vadd.f32 %v1534_v0, %v1397_v4  ;;  %v1895_v60 = vadd.f32 %v1879_v63, %v1742_v58  ;;  %v4330_v57 = vmul.f32 %v4052_v32, %v4301_v16  ;;  %v1199_v3 = vmul.f32 %v4047_v2, %v1175_v17  ;;  %v5242_v17 = vld [vmem:[#allocation56_spill] sm:$0xff] }
 0x1d3   : > { %v4326_v53 = vsel %vm902_vm4, %v5235_v11, %v5107_v9  ;;  %v5238_v0 = vrot.slane %v4136_v37, 1  ;;  %v4352_v63 = vmul.f32 %v4059_v62, %v2011_v22  ;;  %v1575_v22 = vmul.f32 %v4052_v32, %v873_v39  ;;  %v5250_v9 = vld [vmem:[#allocation11_spill] sm:$0xff] }
 0x1d4   : > { %5236 = vst [vmem:[#allocation104_spill] sm:$0xff] %v4326_v53  ;;  %5237 = vst [vmem:[#allocation105_spill] sm:$0xff] %v4330_v57  ;;  %v1023_v51 = vmul.f32 %v3930_v50, %v4326_v53  ;;  %v1513_v29 = vmul.f32 %v3721_v46, %v4326_v53  ;;  %v4345_v14 = vadd.f32 %v1574_v34, %v1550_v56  ;;  %v889_v46 = vrot.slane %v873_v39, 7  ;;  %v4362_v34 = vpop.permute.xlu0 %1977  ;;  %v5245_v56 = vld [vmem:[#allocation12_spill] sm:$0xff] }
 0x1d5   : > { %v4341_v8 = vsel %vm1239_vm5, %v5238_v0, %v5106_v10  ;;  %v4347_v12 = vadd.f32 %v2032_v48, %v1895_v60  ;;  %5240 = vst [vmem:[#allocation107_spill] sm:$0xff] %v4352_v63  ;;  %v1228_v60 = vrot.slane %v873_v39, 1  ;;  %v5252_v63 = vrot.slane %v4136_v37, 1 }
 0x1d6   : > { %5239 = vst [vmem:[#allocation106_spill] sm:$0xff] %v4341_v8  ;;  %v1360_v50 = vmul.f32 %v3683_v25, %v4341_v8  ;;  %v1046_v4 = vmul.f32 %v4107_v40, %v1023_v51  ;;  %v4356_v58 = vmul.f32 %v4134_v47, %v1513_v29  ;;  %v4360_v11 = vmul.f32 %v5242_v17, %v4341_v8 }
 0x1d7   : > { %v1173_v25 = vmul.f32 %v5245_v56, %v873_v39  ;;  %v5246_v51 = vrot.slane %v4136_v37, 7  ;;  %v4381_v17 = vsel %vm902_vm4, %v888_v26, %v889_v46  ;;  %v824_v56 = vpop.f32.mrf.mxu1  ;;  %v5254_v53 = vrot.slane %v4238_v36, 1 }
 0x1d8   : > { %5241 = vst [vmem:[#allocation108_spill] sm:$0xff] %v4356_v58  ;;  %5243 = vst [vmem:[#allocation56_spill] sm:$0xff] %v4360_v11  ;;  %v4365_v48 = vmul.f32 %v4129_v33, %v1360_v50  ;;  %v4369_v0 = vadd.f32 %v1199_v3, %v1046_v4  ;;  %v5249_v50 = vld [vmem:[#allocation68_spill] sm:$0xff]  ;;  %v1021_v6 = vmul.f32 %v5250_v9, %v4381_v17  ;;  %v5251_v3 = vld [vmem:[#allocation6_spill] sm:$0xff] }
 0x1d9   : > { %v4375_v29 = vsel %vm902_vm4, %v889_v46, %v5246_v51  ;;  %5248 = vst [vmem:[#allocation110_spill] sm:$0xff] %v4381_v17  ;;  %v2009_v10 = vmul.f32 %v5249_v50, %v873_v39  ;;  %v4392_v51 = vsel %vm1239_vm5, %v1228_v60, %v5252_v63  ;;  %v1250_v26 = vsel %vm1239_vm5, %v5254_v53, %v1228_v60  ;;  %v5255_v46 = vld [vmem:[#allocation8_spill] sm:$0xff]  ;;  %v5257_v9 = vld [vmem:[#allocation10_spill] sm:$0xff]  ;;  %v3103_v8 = vpop.f32.mrf.mxu1 }
 0x1da   : > { %5244 = vst [vmem:[#allocation109_spill] sm:$0xff] %v4365_v48  ;;  %5247 = vst [vmem:[#allocation12_spill] sm:$0xff] %v4375_v29  ;;  %v1022_v4 = vmul.f32 %v5251_v3, %v4375_v29  ;;  %v1358_v39 = vmul.f32 %v5255_v46, %v1250_v26  ;;  %v5256_v50 = vld [vmem:[#allocation32_spill] sm:$0xff]  ;;  %v1511_v11 = vmul.f32 %v5257_v9, %v4381_v17  ;;  %v5258_v3 = vld [vmem:[#allocation43_spill] sm:$0xff] }
 0x1db   : > { %5253 = vst [vmem:[#allocation68_spill] sm:$0xff] %v4392_v51  ;;  %v1359_v57 = vmul.f32 %v5256_v50, %v4392_v51  ;;  %v1512_v37 = vmul.f32 %v5258_v3, %v4375_v29  ;;  %v1044_v58 = vmul.f32 %v4107_v40, %v1021_v6  ;;  %v1197_v36 = vmul.f32 %v4047_v2, %v1173_v25  ;;  %v5260_v48 = vld [vmem:[#allocation50_spill] sm:$0xff]  ;;  %v4416_v3 = vpop.permute.xlu0 %2120 }
 0x1dc   : > { %v1045_v63 = vmul.f32 %v4107_v40, %v1022_v4  ;;  %v1704_v53 = vmul.f32 %v5259_v21, %v4392_v51  ;;  %v1382_v60 = vmul.f32 %v4129_v33, %v1358_v39  ;;  %v1535_v50 = vmul.f32 %v4134_v47, %v1511_v11  ;;  %5261 = vst [vmem:[#allocation11_spill] sm:$0xff] %v4416_v3  ;;  %v5263_v39 = vld [vmem:[#allocation17_spill] sm:$0xff] }
 0x1dd   : > { %v1383_v46 = vmul.f32 %v4129_v33, %v1359_v57  ;;  %v4414_v9 = vmul.f32 %v5260_v48, %v1250_v26  ;;  %v1213_v6 = vadd.f32 %v1197_v36, %v1044_v58  ;;  %v1536_v25 = vmul.f32 %v4134_v47, %v1512_v37 }
 0x1de   : > { %v4419_v4 = vadd.f32 %v4242_v18, %v1045_v63  ;;  %v1728_v21 = vmul.f32 %v4147_v31, %v1704_v53  ;;  %v1398_v51 = vadd.f32 %v1382_v60, %v1212_v1  ;;  %v2161_v15 = vmul.f32 %v5263_v39, %v1250_v26  ;;  %v5265_v1 = vld [vmem:[#allocation33_spill] sm:$0xff] }
 0x1df   : > { %v4424_v57 = vmin.f32 %v862_v23, 6.0  ;;  %v860_v11 = vmax.f32 %v4318_v55, 0.0  ;;  %v1399_v48 = vadd.f32 %v1383_v46, %v1213_v6  ;;  %v833_v20 = vadd.f32 %v3100_v43, %v4025_v42  ;;  %v4448_v60 = vpop.permute.xlu0 %2130 }
 0x1e0   : > { %5262 = vst [vmem:[#allocation6_spill] sm:$0xff] %v4419_v4  ;;  %v825_v3 = vadd.f32 %v4025_v42, %v824_v56  ;;  %v846_v58 = vadd.f32 %v3103_v8, %v4025_v42  ;;  %v1551_v18 = vadd.f32 %v1535_v50, %v1398_v51  ;;  %v4431_v63 = vmul.f32 %v4059_v62, %v2009_v10  ;;  %v5267_v56 = vld [vmem:[#allocation72_spill] sm:$0xff]  ;;  %v837_v8 = vpop.f32.mrf.mxu1 }
 0x1e1   : > { %v4434_v37 = vmul.f32 %v4299_v27, %v2161_v15  ;;  %v1178_v23 = vmul.f32 %v5265_v1, %v4424_v57  ;;  %v4438_v26 = vadd.f32 %v1536_v25, %v1399_v48  ;;  %v894_v55 = vrot.slane %v4424_v57, 7  ;;  %5269 = vst [vmem:[#allocation43_spill] sm:$0xff] %v4448_v60  ;;  %v5271_v48 = vld [vmem:[#allocation23_spill] sm:$0xff]  ;;  %v5280_v60 = vld [vmem:[#allocation66_spill] sm:$0xff] }
 0x1e2   : > { %5264 = vst [vmem:[#allocation8_spill] sm:$0xff] %v4431_v63  ;;  %v2014_v36 = vmul.f32 %v5267_v56, %v4424_v57  ;;  %v1591_v51 = vadd.f32 %v1575_v22, %v1551_v18  ;;  %v4446_v10 = vmul.f32 %v4052_v32, %v4424_v57  ;;  %v876_v15 = vmin.f32 %v860_v11, 6.0  ;;  %v5273_v11 = vld [vmem:[#allocation47_spill] sm:$0xff] }
 0x1e3   : > { %5266 = vst [vmem:[#allocation32_spill] sm:$0xff] %v4438_v26  ;;  %v863_v53 = vmax.f32 %v833_v20, 0.0  ;;  %v4451_v46 = vmul.f32 %v4047_v2, %v1178_v23  ;;  %v861_v6 = vmax.f32 %v825_v3, 0.0  ;;  %v866_v25 = vmax.f32 %v846_v58, 0.0 }
 0x1e4   : > { %5268 = vst [vmem:[#allocation10_spill] sm:$0xff] %v4446_v10  ;;  %v4454_v50 = vmul.f32 %v4059_v62, %v2014_v36  ;;  %v892_v39 = vrot.slane %v876_v15, 7  ;;  %v1176_v1 = vmul.f32 %v5271_v48, %v876_v15  ;;  %v1231_v22 = vrot.slane %v876_v15, 1 }
 0x1e5   : > { %v4458_v18 = vadd.f32 %v4025_v42, %v837_v8  ;;  %v4460_v56 = vadd.f32 %v1728_v21, %v1591_v51  ;;  %v1578_v20 = vmul.f32 %v4052_v32, %v876_v15  ;;  %v2012_v43 = vmul.f32 %v5273_v11, %v876_v15  ;;  %v5278_v51 = vld [vmem:[#allocation19_spill] sm:$0xff] }
 0x1e6   : > { %5270 = vst [vmem:[#allocation26_spill] sm:$0xff] %v4454_v50  ;;  %v4464_v23 = vmin.f32 %v863_v53, 6.0  ;;  %v5274_v36 = vrot.slane %v4301_v16, 7  ;;  %v1200_v58 = vmul.f32 %v4047_v2, %v1176_v1  ;;  %v5276_v48 = vrot.slane %v4301_v16, 1  ;;  %v5279_v53 = vld [vmem:[#allocation58_spill] sm:$0xff]  ;;  %v5281_v1 = vld [vmem:[#allocation37_spill] sm:$0xff] }
 0x1e7   : > { %5272 = vst [vmem:[#allocation50_spill] sm:$0xff] %v4460_v56  ;;  %v877_v8 = vmin.f32 %v861_v6, 6.0  ;;  %v5292_v56 = vld [vmem:[#allocation87_spill] sm:$0xff] }
 0x1e8   : > { %v4470_v3 = vsel %vm902_vm4, %v5274_v36, %v892_v39  ;;  %v4477_v21 = vsel %vm1239_vm5, %v5276_v48, %v1231_v22  ;;  %v4485_v36 = vmin.f32 %v866_v25, 6.0  ;;  %v5112_v16 = vrot.slane %v4464_v23, 7  ;;  %v5283_v48 = vld [vmem:[#allocation79_spill] sm:$0xff] }
 0x1e9   : > { %5275 = vst [vmem:[#allocation17_spill] sm:$0xff] %v4470_v3  ;;  %5277 = vst [vmem:[#allocation33_spill] sm:$0xff] %v4477_v21  ;;  %v1024_v15 = vmul.f32 %v5278_v51, %v4470_v3  ;;  %v1361_v11 = vmul.f32 %v5279_v53, %v4477_v21  ;;  %v1514_v50 = vmul.f32 %v5280_v60, %v4470_v3  ;;  %v5115_v26 = vrot.slane %v4464_v23, 1  ;;  %v4495_v51 = vpop.permute.xlu0 %1681  ;;  %v5290_v3 = vld [vmem:[#allocation41_spill] sm:$0xff] }
 0x1ea   : > { %v4489_v10 = vmul.f32 %v5281_v1, %v4477_v21  ;;  %v1179_v6 = vmul.f32 %v5283_v48, %v4464_v23  ;;  %v4501_v25 = vmul.f32 %v4059_v62, %v2012_v43  ;;  %v4507_v1 = vsel %vm902_vm4, %v894_v55, %v5112_v16  ;;  %v5289_v16 = vld [vmem:[#allocation77_spill] sm:$0xff] }
 0x1eb   : > { %v1047_v53 = vmul.f32 %v4107_v40, %v1024_v15  ;;  %v1385_v63 = vmul.f32 %v4129_v33, %v1361_v11  ;;  %v1538_v60 = vmul.f32 %v4134_v47, %v1514_v50  ;;  %5285 = vst [vmem:[#allocation47_spill] sm:$0xff] %v4507_v1  ;;  %v5286_v48 = vrot.slane %v4424_v57, 1 }
 0x1ec   : > { %5282 = vst [vmem:[#allocation72_spill] sm:$0xff] %v4489_v10  ;;  %5284 = vst [vmem:[#allocation23_spill] sm:$0xff] %v4501_v25  ;;  %v4519_v50 = vmul.f32 %v4052_v32, %v4464_v23  ;;  %v2015_v43 = vmul.f32 %v4362_v34, %v4464_v23  ;;  %v1027_v25 = vmul.f32 %v5289_v16, %v4507_v1  ;;  %v893_v29 = vrot.slane %v877_v8, 7  ;;  %v5295_v16 = vld [vmem:[#allocation54_spill] sm:$0xff] }
 0x1ed   : > { %v4515_v15 = vsel %vm1239_vm5, %v5286_v48, %v5115_v26  ;;  %v1401_v11 = vadd.f32 %v1385_v63, %v4369_v0  ;;  %v1203_v21 = vmul.f32 %v4047_v2, %v1179_v6  ;;  %v1216_v4 = vadd.f32 %v1200_v58, %v1047_v53  ;;  %v5291_v48 = vld [vmem:[#allocation46_spill] sm:$0xff]  ;;  %v4551_v53 = vpop.permute.xlu0 %1691 }
 0x1ee   : > { %5287 = vst [vmem:[#allocation19_spill] sm:$0xff] %v4515_v15  ;;  %5288 = vst [vmem:[#allocation58_spill] sm:$0xff] %v4519_v50  ;;  %v1364_v10 = vmul.f32 %v5290_v3, %v4515_v15  ;;  %v1517_v26 = vmul.f32 %v5291_v48, %v4507_v1  ;;  %v4533_v50 = vmul.f32 %v5292_v56, %v4515_v15  ;;  %v1232_v58 = vrot.slane %v877_v8, 1  ;;  %v3104_v1 = vpop.f32.mrf.mxu1 }
 0x1ef   : > { %v1554_v34 = vadd.f32 %v1538_v60, %v1401_v11  ;;  %v1050_v0 = vmul.f32 %v4107_v40, %v1027_v25  ;;  %v4537_v63 = vmul.f32 %v4059_v62, %v2015_v43  ;;  %v1177_v6 = vmul.f32 %v5295_v16, %v877_v8  ;;  %v5300_v43 = vld [vmem:[#allocation52_spill] sm:$0xff]  ;;  %v5301_v11 = vld [vmem:[#allocation30_spill] sm:$0xff] }
 0x1f0   : > { %5293 = vst [vmem:[#allocation66_spill] sm:$0xff] %v4533_v50  ;;  %v4541_v17 = vmul.f32 %v4129_v33, %v1364_v10  ;;  %v4545_v3 = vsel %vm902_vm4, %v893_v29, %v894_v55  ;;  %v4549_v56 = vsel %vm902_vm4, %v892_v39, %v893_v29  ;;  %v4556_v25 = vmul.f32 %v4134_v47, %v1517_v26  ;;  %v5304_v26 = vld [vmem:[#allocation44_spill] sm:$0xff]  ;;  %v5307_v50 = vld [vmem:[#allocation70_spill] sm:$0xff] }
 0x1f1   : > { %5294 = vst [vmem:[#allocation37_spill] sm:$0xff] %v4537_v63  ;;  %5297 = vst [vmem:[#allocation77_spill] sm:$0xff] %v4545_v3  ;;  %v4553_v60 = vadd.f32 %v1578_v20, %v1554_v34  ;;  %v1025_v10 = vmul.f32 %v5300_v43, %v4549_v56  ;;  %v1026_v48 = vmul.f32 %v5301_v11, %v4545_v3  ;;  %v5302_v16 = vrot.slane %v4424_v57, 1  ;;  %v5305_v11 = vld [vmem:[#allocation39_spill] sm:$0xff]  ;;  %v5306_v57 = vld [vmem:[#allocation62_spill] sm:$0xff]  ;;  %v4600_v15 = vpop.permute.xlu0 %1834 }
 0x1f2   : > { %5296 = vst [vmem:[#allocation79_spill] sm:$0xff] %v4541_v17  ;;  %5298 = vst [vmem:[#allocation41_spill] sm:$0xff] %v4549_v56  ;;  %v1201_v55 = vmul.f32 %v4047_v2, %v1177_v6  ;;  %v4571_v39 = vsel %vm1239_vm5, %v1231_v22, %v1232_v58  ;;  %v1515_v20 = vmul.f32 %v5304_v26, %v4549_v56 }
 0x1f3   : > { %5299 = vst [vmem:[#allocation46_spill] sm:$0xff] %v4556_v25  ;;  %v4567_v29 = vsel %vm1239_vm5, %v1232_v58, %v5302_v16  ;;  %v1048_v34 = vmul.f32 %v4107_v40, %v1025_v10  ;;  %v1049_v43 = vmul.f32 %v4107_v40, %v1026_v48  ;;  %v1362_v6 = vmul.f32 %v5305_v11, %v4571_v39  ;;  %v5308_v11 = vld [vmem:[#allocation81_spill] sm:$0xff] }
 0x1f4   : > { %5303 = vst [vmem:[#allocation87_spill] sm:$0xff] %v4567_v29  ;;  %v1363_v63 = vmul.f32 %v5306_v57, %v4567_v29  ;;  %v4581_v16 = vadd.f32 %v1203_v21, %v1050_v0  ;;  %v1516_v22 = vmul.f32 %v5307_v50, %v4545_v3  ;;  %v1539_v58 = vmul.f32 %v4134_v47, %v1515_v20  ;;  %v5310_v50 = vld [vmem:[#allocation55_spill] sm:$0xff]  ;;  %v840_v3 = vpop.f32.mrf.mxu1 }
 0x1f5   : > { %v1579_v26 = vmul.f32 %v4052_v32, %v877_v8  ;;  %v1217_v25 = vadd.f32 %v1201_v55, %v1048_v34  ;;  %v1386_v10 = vmul.f32 %v4129_v33, %v1362_v6  ;;  %v4591_v17 = vmul.f32 %v5308_v11, %v4571_v39  ;;  %5311 = vst [vmem:[#allocation52_spill] sm:$0xff] %v4600_v15  ;;  %v5312_v6 = vld [vmem:[#allocation59_spill] sm:$0xff] }
 0x1f6   : > { %v1387_v48 = vmul.f32 %v4129_v33, %v1363_v63  ;;  %v4594_v57 = vadd.f32 %v4451_v46, %v1049_v43  ;;  %v1540_v21 = vmul.f32 %v4134_v47, %v1516_v22  ;;  %v1708_v0 = vmul.f32 %v5310_v50, %v4567_v29  ;;  %v5314_v50 = vld [vmem:[#allocation90_spill] sm:$0xff] }
 0x1f7   : > { %v2013_v20 = vmul.f32 %v4266_v52, %v877_v8  ;;  %v1402_v55 = vadd.f32 %v1386_v10, %v1216_v4  ;;  %v1182_v11 = vmul.f32 %v5312_v6, %v4485_v36  ;;  %v2018_v52 = vmul.f32 %v5314_v50, %v4485_v36 }
 0x1f8   : > { %5309 = vst [vmem:[#allocation54_spill] sm:$0xff] %v4594_v57  ;;  %v1403_v34 = vadd.f32 %v1387_v48, %v1217_v25  ;;  %v1732_v46 = vmul.f32 %v4147_v31, %v1708_v0  ;;  %v4616_v4 = vmul.f32 %v4052_v32, %v4485_v36  ;;  %v864_v25 = vmax.f32 %v4458_v18, 0.0 }
 0x1f9   : > { %v4607_v43 = vmul.f32 %v4059_v62, %v2013_v20  ;;  %v1555_v8 = vadd.f32 %v1539_v58, %v1402_v55  ;;  %v4620_v10 = vmul.f32 %v4047_v2, %v1182_v11  ;;  %v4623_v48 = vmul.f32 %v4059_v62, %v2018_v52  ;;  %v5318_v11 = vld [vmem:[#allocation25_spill] sm:$0xff] }
 0x1fa   : > { %v4612_v15 = vadd.f32 %v1540_v21, %v1403_v34  ;;  %5316 = vst [vmem:[#allocation39_spill] sm:$0xff] %v4616_v4  ;;  %v849_v0 = vadd.f32 %v3104_v1, %v4025_v42  ;;  %v841_v20 = vadd.f32 %v4025_v42, %v840_v3  ;;  %v4627_v58 = vmin.f32 %v864_v25, 6.0  ;;  %v5319_v1 = vld [vmem:[#allocation9_spill] sm:$0xff]  ;;  %v4643_v42 = vpop.permute.xlu0 %1844 }
 0x1fb   : > { %5313 = vst [vmem:[#allocation30_spill] sm:$0xff] %v4607_v43  ;;  %5317 = vst [vmem:[#allocation62_spill] sm:$0xff] %v4623_v48  ;;  %v1595_v6 = vadd.f32 %v1579_v26, %v1555_v8  ;;  %v4631_v21 = vmul.f32 %v4147_v31, %v4217_v41  ;;  %v4635_v18 = vmul.f32 %v4147_v31, %v4227_v13  ;;  %v5321_v41 = vld [vmem:[#allocation53_spill] sm:$0xff] }
 0x1fc   : > { %5315 = vst [vmem:[#allocation44_spill] sm:$0xff] %v4612_v15  ;;  %v867_v55 = vmax.f32 %v849_v0, 0.0  ;;  %v865_v34 = vmax.f32 %v841_v20, 0.0  ;;  %v1852_v50 = vmul.f32 %v5318_v11, %v4177_v19  ;;  %v4641_v52 = vmul.f32 %v5319_v1, %v4171_v59  ;;  %5320 = vst [vmem:[#allocation70_spill] sm:$0xff] %v4643_v42  ;;  %v5322_v13 = vld [vmem:[#allocation45_spill] sm:$0xff]  ;;  %v5324_v59 = vld [vmem:[#allocation76_spill] sm:$0xff] }
 0x1fd   : > { %v896_v3 = vrot.slane %v4627_v58, 7  ;;  %v1180_v26 = vmul.f32 %v5321_v41, %v4627_v58  ;;  %v5121_v8 = vrot.slane %v4627_v58, 1  ;;  %v4651_v25 = vmul.f32 %v5322_v13, %v4195_v38  ;;  %v5329_v13 = vld [vmem:[#allocation51_spill] sm:$0xff]  ;;  %v5331_v42 = vld [vmem:[#allocation61_spill] sm:$0xff] }
 0x1fe   : > { %v4653_v0 = vadd.f32 %v1732_v46, %v1595_v6  ;;  %v1582_v19 = vmul.f32 %v4052_v32, %v4627_v58  ;;  %v2016_v20 = vmul.f32 %v5324_v59, %v4627_v58  ;;  %v883_v11 = vmin.f32 %v867_v55, 6.0  ;;  %v5330_v59 = vld [vmem:[#allocation89_spill] sm:$0xff] }
 0x1ff   : > { %v5325_v1 = vrot.slane %v4464_v23, 7  ;;  %v1204_v22 = vmul.f32 %v4047_v2, %v1180_v26  ;;  %v5327_v38 = vrot.slane %v4464_v23, 1  ;;  %v881_v6 = vmin.f32 %v865_v34, 6.0 }
 0x200   : > { %5323 = vst [vmem:[#allocation81_spill] sm:$0xff] %v4653_v0  ;;  %v4681_v26 = vmul.f32 %v4152_v35, %v1852_v50  ;;  %v899_v48 = vrot.slane %v883_v11, 7  ;;  %v1238_v34 = vrot.slane %v883_v11, 1  ;;  %v4692_v43 = vmul.f32 %v4059_v62, %v2016_v20 }
 0x201   : > { %v4663_v41 = vsel %vm902_vm4, %v5325_v1, %v896_v3  ;;  %v4672_v46 = vsel %vm1239_vm5, %v5327_v38, %v5121_v8  ;;  %v5333_v38 = vld [vmem:[#allocation2_spill] sm:$0xff]  ;;  %v5335_v50 = vrot.slane %v4485_v36, 7  ;;  %v4713_v20 = vmul.f32 %v4052_v32, %v883_v11 }
 0x202   : > { %5326 = vst [vmem:[#allocation55_spill] sm:$0xff] %v4663_v41  ;;  %5328 = vst [vmem:[#allocation59_spill] sm:$0xff] %v4672_v46  ;;  %v1028_v55 = vmul.f32 %v5329_v13, %v4663_v41  ;;  %v1365_v63 = vmul.f32 %v5330_v59, %v4672_v46  ;;  %v1518_v1 = vmul.f32 %v4219_v49, %v4663_v41  ;;  %v1988_v49 = vpop.permute.xlu0 %1987  ;;  %v5341_v41 = vld [vmem:[#allocation4_spill] sm:$0xff] }
 0x203   : > { %v4685_v23 = vmul.f32 %v5331_v42, %v4672_v46  ;;  %v1167_v8 = vmul.f32 %v5333_v38, %v883_v11  ;;  %5334 = vst [vmem:[#allocation25_spill] sm:$0xff] %v4692_v43  ;;  %v4698_v42 = vsel %vm902_vm4, %v5335_v50, %v899_v48  ;;  %v5336_v46 = vrot.slane %v4061_v61, 7  ;;  %5339 = vst [vmem:[#allocation53_spill] sm:$0xff] %v4713_v20  ;;  %v5340_v50 = vld [vmem:[#allocation3_spill] sm:$0xff] }
 0x204   : > { %v1051_v4 = vmul.f32 %v4107_v40, %v1028_v55  ;;  %v1389_v13 = vmul.f32 %v4129_v33, %v1365_v63  ;;  %v1542_v59 = vmul.f32 %v4134_v47, %v1518_v1  ;;  %v5338_v63 = vrot.slane %v4485_v36, 1  ;;  %v5344_v20 = vld [vmem:[#allocation7_spill] sm:$0xff] }
 0x205   : > { %5332 = vst [vmem:[#allocation90_spill] sm:$0xff] %v4685_v23  ;;  %v4704_v38 = vsel %vm902_vm4, %v899_v48, %v5336_v46  ;;  %v1015_v43 = vmul.f32 %v5340_v50, %v4698_v42  ;;  %v1191_v48 = vmul.f32 %v4047_v2, %v1167_v8  ;;  %v5342_v46 = vrot.slane %v4061_v61, 1  ;;  %v5346_v61 = vld [vmem:[#allocation5_spill] sm:$0xff] }
 0x206   : > { %5337 = vst [vmem:[#allocation9_spill] sm:$0xff] %v4704_v38  ;;  %v4710_v55 = vsel %vm1239_vm5, %v5338_v63, %v1238_v34  ;;  %v1405_v1 = vadd.f32 %v1389_v13, %v4581_v16  ;;  %v1016_v23 = vmul.f32 %v5341_v41, %v4704_v38  ;;  %v5343_v63 = vld [vmem:[#allocation67_spill] sm:$0xff]  ;;  %v1506_v16 = vmul.f32 %v5344_v20, %v4704_v38  ;;  %v5345_v13 = vld [vmem:[#allocation74_spill] sm:$0xff] }
 0x207   : > { %v4725_v0 = vsel %vm1239_vm5, %v1238_v34, %v5342_v46  ;;  %v1368_v15 = vmul.f32 %v5343_v63, %v4710_v55  ;;  %v1521_v50 = vmul.f32 %v5345_v13, %v4698_v42  ;;  %v1038_v41 = vmul.f32 %v4107_v40, %v1015_v43 }
 0x208   : > { %v1558_v57 = vadd.f32 %v1542_v59, %v1405_v1  ;;  %v1039_v8 = vmul.f32 %v4107_v40, %v1016_v23  ;;  %v1353_v29 = vmul.f32 %v5346_v61, %v4725_v0  ;;  %v1220_v56 = vadd.f32 %v1204_v22, %v1051_v4  ;;  %v1998_v23 = vpop.permute.xlu0 %1997  ;;  %v5347_v1 = vld [vmem:[#allocation96_spill] sm:$0xff]  ;;  %v5349_v61 = vld [vmem:[#allocation85_spill] sm:$0xff] }
 0x209   : > { %v4738_v34 = vmul.f32 %v4129_v33, %v1368_v15  ;;  %v1530_v46 = vmul.f32 %v4134_v47, %v1506_v16  ;;  %v4742_v63 = vmul.f32 %v4134_v47, %v1521_v50  ;;  %v1207_v13 = vadd.f32 %v1191_v48, %v1038_v41  ;;  %v5348_v15 = vld [vmem:[#allocation84_spill] sm:$0xff] }
 0x20a   : > { %v4744_v20 = vadd.f32 %v1582_v19, %v1558_v57  ;;  %v1377_v59 = vmul.f32 %v4129_v33, %v1353_v29  ;;  %v4749_v43 = vmul.f32 %v4551_v53, %v4710_v55  ;;  %v1208_v22 = vadd.f32 %v5347_v1, %v1039_v8 }
 0x20b   : > { %v4754_v4 = vmul.f32 %v5348_v15, %v4725_v0  ;;  %v897_v16 = vrot.slane %v881_v6, 7  ;;  %v1181_v50 = vmul.f32 %v5349_v61, %v881_v6  ;;  %v4757_v57 = vmul.f32 %v1998_v23, %v883_v11  ;;  %v5351_v11 = vld [vmem:[#allocation83_spill] sm:$0xff] }
 0x20c   : > { %v1393_v38 = vadd.f32 %v1377_v59, %v1207_v13  ;;  %v1236_v19 = vrot.slane %v881_v6, 1  ;;  %v1583_v29 = vmul.f32 %v4052_v32, %v881_v6  ;;  %v5350_v48 = vrot.slane %v4485_v36, 7  ;;  %v5352_v59 = vld [vmem:[#allocation57_spill] sm:$0xff] }
 0x20d   : > { %v4768_v41 = vsel %vm902_vm4, %v896_v3, %v897_v16  ;;  %v1205_v8 = vmul.f32 %v4047_v2, %v1181_v50  ;;  %v2017_v1 = vmul.f32 %v1988_v49, %v881_v6  ;;  %v5353_v23 = vrot.slane %v4485_v36, 1  ;;  %v5355_v2 = vld [vmem:[#allocation95_spill] sm:$0xff] }
 0x20e   : > { %v4764_v53 = vsel %vm902_vm4, %v897_v16, %v5350_v48  ;;  %v1546_v15 = vadd.f32 %v1530_v46, %v1393_v38  ;;  %v1029_v13 = vmul.f32 %v5351_v11, %v4768_v41  ;;  %v5354_v48 = vrot.slane %v4627_v58, 1  ;;  %v5356_v49 = vld [vmem:[#allocation71_spill] sm:$0xff] }
 0x20f   : > { %v1030_v32 = vmul.f32 %v5352_v59, %v4764_v53  ;;  %v4779_v61 = vsel %vm1239_vm5, %v1236_v19, %v5353_v23  ;;  %v1519_v38 = vmul.f32 %v5356_v49, %v4768_v41  ;;  %v1520_v46 = vmul.f32 %v4308_v7, %v4764_v53  ;;  %v5357_v50 = vld [vmem:[#allocation63_spill] sm:$0xff]  ;;  %v5359_v49 = vld [vmem:[#allocation93_spill] sm:$0xff] }
 0x210   : > { %v4785_v3 = vsel %vm1239_vm5, %v5354_v48, %v1236_v19  ;;  %v1367_v6 = vmul.f32 %v5355_v2, %v4779_v61  ;;  %v1052_v36 = vmul.f32 %v4107_v40, %v1029_v13  ;;  %v5358_v48 = vld [vmem:[#allocation82_spill] sm:$0xff] }
 0x211   : > { %v1053_v16 = vmul.f32 %v4107_v40, %v1030_v32  ;;  %v1366_v58 = vmul.f32 %v5357_v50, %v4785_v3  ;;  %v4799_v19 = vmul.f32 %v4495_v51, %v4785_v3  ;;  %v1543_v59 = vmul.f32 %v4134_v47, %v1519_v38 }
 0x212   : > { %v1391_v11 = vmul.f32 %v4129_v33, %v1367_v6  ;;  %v1544_v23 = vmul.f32 %v4134_v47, %v1520_v46  ;;  %v1712_v7 = vmul.f32 %v5358_v48, %v4779_v61  ;;  %v1221_v2 = vadd.f32 %v1205_v8, %v1052_v36  ;;  %v5360_v8 = vld [vmem:[#allocation97_spill] sm:$0xff]  ;;  %v5365_v48 = vld [vmem:[#allocation40_spill] sm:$0xff] }
 0x213   : > { %v4807_v13 = vadd.f32 %v4620_v10, %v1053_v16  ;;  %v1390_v40 = vmul.f32 %v4129_v33, %v1366_v58  ;;  %v4811_v32 = vmul.f32 %v4059_v62, %v2017_v1  ;;  %v1394_v6 = vadd.f32 %v4222_v45, %v1208_v22  ;;  %v5361_v36 = vld [vmem:[#allocation13_spill] sm:$0xff]  ;;  %v4825_v62 = vld [vmem:[%s5078_s6] ss:$0 sm:$0xff] }
 0x214   : > { %v1736_v51 = vmul.f32 %v4147_v31, %v1712_v7  ;;  %v1586_v38 = vadd.f32 %v5359_v49, %v1546_v15  ;;  %v1877_v47 = vmul.f32 %v4152_v35, %v4641_v52  ;;  %v1407_v50 = vadd.f32 %v1391_v11, %v1221_v2 }
 0x215   : > { %v1406_v46 = vadd.f32 %v1390_v40, %v1220_v56  ;;  %v2159_v10 = vmul.f32 %v5361_v36, %v5360_v8  ;;  %v2182_v33 = vmul.f32 %v4299_v27, %v4651_v25  ;;  %v1547_v45 = vadd.f32 %v4208_v24, %v1394_v6 }
 0x216   : > { %v1739_v22 = vadd.f32 %v4631_v21, %v1586_v38  ;;  %v1894_v52 = vadd.f32 %v4167_v5, %v4285_v30  ;;  %v2201_v56 = vadd.f32 %v4434_v37, %v4347_v12  ;;  %v4833_v15 = vadd.f32 %v1544_v23, %v1407_v50  ;;  %v5362_v12 = vld [vmem:[#allocation110_spill] sm:$0xff]  ;;  %v5363_v37 = vld [vmem:[#allocation60_spill] sm:$0xff]  ;;  %v5369_v38 = vld [vmem:[#allocation73_spill] sm:$0xff] }
 0x217   : > { %v1559_v1 = vadd.f32 %v1543_v59, %v1406_v46  ;;  %v2183_v25 = vmul.f32 %v4299_v27, %v2159_v10  ;;  %v1727_v16 = vmul.f32 %v4147_v31, %v4414_v9  ;;  %v1587_v58 = vadd.f32 %v4211_v28, %v1547_v45  ;;  %v5364_v23 = vld [vmem:[#allocation12_spill] sm:$0xff]  ;;  %v5367_v28 = vld [vmem:[#allocation103_spill] sm:$0xff]  ;;  %v5370_v45 = vld [vmem:[#allocation50_spill] sm:$0xff] }
 0x218   : > { %v1892_v24 = vadd.f32 %v4681_v26, %v1739_v22  ;;  %v2047_v21 = vadd.f32 %v4161_v44, %v1894_v52  ;;  %v2224_v11 = vadd.f32 %v4825_v62, %v2201_v56  ;;  %v1856_v59 = vmul.f32 %v5363_v37, %v5362_v12  ;;  %v5366_v9 = vld [vmem:[#allocation100_spill] sm:$0xff]  ;;  %v5371_v52 = vld [vmem:[#allocation106_spill] sm:$0xff] }
 0x219   : > { %v1599_v5 = vadd.f32 %v1583_v29, %v1559_v1  ;;  %v1743_v30 = vadd.f32 %v1727_v16, %v4345_v14  ;;  %v1857_v7 = vmul.f32 %v5365_v48, %v5364_v23  ;;  %v1740_v2 = vadd.f32 %v4635_v18, %v1587_v58  ;;  %v5368_v14 = vld [vmem:[#allocation68_spill] sm:$0xff]  ;;  %v5377_v37 = vld [vmem:[#allocation102_spill] sm:$0xff]  ;;  %v5379_v48 = vld [vmem:[#allocation101_spill] sm:$0xff] }
 0x21a   : > { %v2045_v40 = vadd.f32 %v5366_v9, %v1892_v24  ;;  %v2200_v6 = vadd.f32 %v5367_v28, %v2047_v21  ;;  %v2240_v26 = vmax.f32 %v2224_v11, 0.0  ;;  %v1880_v44 = vmul.f32 %v4152_v35, %v1856_v59  ;;  %v5372_v56 = vld [vmem:[#allocation48_spill] sm:$0xff]  ;;  %v5374_v11 = vld [vmem:[#allocation6_spill] sm:$0xff] }
 0x21b   : > { %v4850_v49 = vadd.f32 %v1736_v51, %v1599_v5  ;;  %v1881_v29 = vmul.f32 %v4152_v35, %v1857_v7  ;;  %v2162_v46 = vmul.f32 %v5369_v38, %v5368_v14  ;;  %v1893_v50 = vadd.f32 %v1877_v47, %v1740_v2  ;;  %v5373_v16 = vld [vmem:[#allocation92_spill] sm:$0xff]  ;;  %v5375_v5 = vld [vmem:[#allocation109_spill] sm:$0xff] }
 0x21c   : > { %v2198_v8 = vadd.f32 %v2182_v33, %v2045_v40  ;;  %v2223_v36 = vadd.f32 %v4825_v62, %v2200_v6  ;;  %v2256_v10 = vmin.f32 %v2240_v26, 6.0  ;;  %v1896_v18 = vadd.f32 %v1880_v44, %v1743_v30  ;;  %v5376_v33 = vld [vmem:[#allocation8_spill] sm:$0xff] }
 0x21d   : > { %v1897_v22 = vadd.f32 %v1881_v29, %v5370_v45  ;;  %v2163_v1 = vmul.f32 %v5372_v56, %v5371_v52  ;;  %v2186_v51 = vmul.f32 %v4299_v27, %v2162_v46  ;;  %v2046_v58 = vadd.f32 %v5373_v16, %v1893_v50  ;;  %v5378_v23 = vld [vmem:[#allocation32_spill] sm:$0xff] }
 0x21e   : > { %v2221_v24 = vadd.f32 %v4825_v62, %v2198_v8  ;;  %v2239_v21 = vmax.f32 %v2223_v36, 0.0  ;;  %v1400_v47 = vadd.f32 %v5375_v5, %v5374_v11  ;;  %v2049_v12 = vadd.f32 %v5376_v33, %v1896_v18  ;;  %v5380_v28 = vld [vmem:[#allocation108_spill] sm:$0xff]  ;;  %v5383_v18 = vld [vmem:[#allocation105_spill] sm:$0xff] }
 0x21f   : > { %v2050_v30 = vadd.f32 %v5377_v37, %v1897_v22  ;;  %v2187_v59 = vmul.f32 %v4299_v27, %v2163_v1  ;;  %v1592_v7 = vadd.f32 %v5379_v48, %v5378_v23  ;;  %v2199_v2 = vadd.f32 %v2183_v25, %v2046_v58  ;;  %v5381_v29 = vld [vmem:[#allocation56_spill] sm:$0xff]  ;;  %v5388_v5 = vld [vmem:[#allocation33_spill] sm:$0xff] }
 0x220   : > { %v2237_v9 = vmax.f32 %v2221_v24, 0.0  ;;  %v2255_v40 = vmin.f32 %v2239_v21, 6.0  ;;  %v1553_v6 = vadd.f32 %v5380_v28, %v1400_v47  ;;  %v2202_v26 = vadd.f32 %v2186_v51, %v2049_v12  ;;  %v5382_v38 = vld [vmem:[#allocation72_spill] sm:$0xff]  ;;  %v5386_v24 = vld [vmem:[#allocation17_spill] sm:$0xff]  ;;  %v5387_v21 = vld [vmem:[#allocation42_spill] sm:$0xff] }
 0x221   : > { %v2203_v44 = vadd.f32 %v2187_v59, %v2050_v30  ;;  %v1729_v14 = vmul.f32 %v4147_v31, %v5381_v29  ;;  %v1730_v46 = vmul.f32 %v4147_v31, %v5382_v38  ;;  %v2222_v50 = vadd.f32 %v4825_v62, %v2199_v2  ;;  %v5384_v56 = vld [vmem:[#allocation104_spill] sm:$0xff]  ;;  %v5389_v47 = vld [vmem:[#allocation75_spill] sm:$0xff]  ;;  %v5390_v30 = vld [vmem:[#allocation49_spill] sm:$0xff] }
 0x222   : > { %v2253_v8 = vmin.f32 %v2237_v9, 6.0  ;;  %v2270_v36 = vpack.c.bf16 %v2256_v10, %v2255_v40  ;;  %v1593_v45 = vadd.f32 %v5383_v18, %v1553_v6  ;;  %v2225_v25 = vadd.f32 %v4825_v62, %v2202_v26  ;;  %v5385_v1 = vld [vmem:[#allocation64_spill] sm:$0xff]  ;;  %v5392_v38 = vld [vmem:[#allocation91_spill] sm:$0xff] }
 0x223   : > { %v2226_v22 = vadd.f32 %v4825_v62, %v2203_v44  ;;  %v1745_v52 = vadd.f32 %v1729_v14, %v1592_v7  ;;  %v1858_v51 = vmul.f32 %v5385_v1, %v5384_v56  ;;  %v2238_v16 = vmax.f32 %v2222_v50, 0.0  ;;  %v5391_v14 = vld [vmem:[#allocation41_spill] sm:$0xff]  ;;  %v5393_v50 = vld [vmem:[#allocation107_spill] sm:$0xff] }
 0x224   : > { %v1746_v58 = vadd.f32 %v1730_v46, %v1593_v45  ;;  %v1859_v11 = vmul.f32 %v5387_v21, %v5386_v24  ;;  %v2164_v33 = vmul.f32 %v5389_v47, %v5388_v5  ;;  %v2241_v12 = vmax.f32 %v2225_v25, 0.0  ;;  %v5394_v45 = vld [vmem:[#allocation77_spill] sm:$0xff]  ;;  %v5396_v56 = vld [vmem:[#allocation87_spill] sm:$0xff]  ;;  %v5401_v24 = vld [vmem:[#allocation54_spill] sm:$0xff] }
 0x225   : > { %v2242_v10 = vmax.f32 %v2226_v22, 0.0  ;;  %v1882_v37 = vmul.f32 %v4152_v35, %v1858_v51  ;;  %v2165_v59 = vmul.f32 %v5390_v30, %v4571_v39  ;;  %v2254_v23 = vmin.f32 %v2238_v16, 6.0  ;;  %v5395_v25 = vld [vmem:[#allocation65_spill] sm:$0xff]  ;;  %v5399_v16 = vld [vmem:[#allocation19_spill] sm:$0xff] }
 0x226   : > { %v1883_v48 = vmul.f32 %v4152_v35, %v1859_v11  ;;  %v2188_v7 = vmul.f32 %v4299_v27, %v2164_v33  ;;  %v1731_v2 = vmul.f32 %v4147_v31, %v4591_v17  ;;  %v2257_v9 = vmin.f32 %v2241_v12, 6.0  ;;  %v5397_v17 = vld [vmem:[#allocation11_spill] sm:$0xff]  ;;  %v5403_v12 = vld [vmem:[#allocation44_spill] sm:$0xff] }
 0x227   : > { %v2258_v40 = vmin.f32 %v2242_v10, 6.0  ;;  %v1898_v28 = vadd.f32 %v1882_v37, %v1745_v52  ;;  %v2189_v6 = vmul.f32 %v4299_v27, %v2165_v59  ;;  %v2269_v26 = vpack.c.bf16 %v2254_v23, %v2253_v8  ;;  %v5398_v52 = vld [vmem:[#allocation23_spill] sm:$0xff]  ;;  %v5404_v10 = vld [vmem:[#allocation10_spill] sm:$0xff] }
 0x228   : > { %v1899_v44 = vadd.f32 %v1883_v48, %v1746_v58  ;;  %v1747_v29 = vadd.f32 %v1731_v2, %v4553_v60  ;;  %v1860_v39 = vmul.f32 %v5392_v38, %v5391_v14  ;;  %v1861_v22 = vmul.f32 %v5395_v25, %v5394_v45  ;;  %v5400_v60 = vld [vmem:[#allocation78_spill] sm:$0xff]  ;;  %v5402_v21 = vld [vmem:[#allocation79_spill] sm:$0xff] }
 0x229   : > { %v2271_v46 = vpack.c.bf16 %v2258_v40, %v2257_v9  ;;  %v2051_v18 = vadd.f32 %v5393_v50, %v1898_v28  ;;  %v2166_v1 = vmul.f32 %v5397_v17, %v5396_v56  ;;  %3109 = vmatprep.mubr.msk.bf16.mxu1 %vm2300_vm6, %v2269_v26  ;;  %v2167_v58 = vmul.f32 %v5400_v60, %v5399_v16  ;;  %v5405_v48 = vld [vmem:[#allocation46_spill] sm:$0xff]  ;;  %v5406_v40 = vld [vmem:[#allocation81_spill] sm:$0xff]  ;;  %v5414_v17 = vld [vmem:[#allocation55_spill] sm:$0xff] }
 0x22a   : > { %v2052_v51 = vadd.f32 %v5398_v52, %v1899_v44  ;;  %v1884_v8 = vmul.f32 %v4152_v35, %v1860_v39  ;;  %v1404_v11 = vadd.f32 %v5402_v21, %v5401_v24  ;;  %3110 = vmatmul.mubr.msk.bf16.vlgmr.msra.gmra.mxu1 %vm2300_vm6, %v2270_v36  ;;  %v1885_v47 = vmul.f32 %v4152_v35, %v1861_v22  ;;  %v5408_v26 = vld [vmem:[#allocation90_spill] sm:$0xff] }
 0x22b   : > { %v2204_v5 = vadd.f32 %v2188_v7, %v2051_v18  ;;  %v2190_v33 = vmul.f32 %v4299_v27, %v2166_v1  ;;  %v1596_v37 = vadd.f32 %v5404_v10, %v5403_v12  ;;  %3113 = vmatprep.mubr.msk.bf16.mxu1 %vm2300_vm6, %v2271_v46  ;;  %v2191_v23 = vmul.f32 %v4299_v27, %v2167_v58  ;;  %v5407_v7 = vld [vmem:[#allocation66_spill] sm:$0xff]  ;;  %v5411_v46 = vld [vmem:[#allocation47_spill] sm:$0xff]  ;;  %v5415_v1 = vld [vmem:[#allocation69_spill] sm:$0xff] }
 0x22c   : > { %v2205_v30 = vadd.f32 %v2189_v6, %v2052_v51  ;;  %v1900_v59 = vadd.f32 %v1884_v8, %v1747_v29  ;;  %v1557_v2 = vadd.f32 %v5405_v48, %v1404_v11  ;;  %v1901_v36 = vadd.f32 %v1885_v47, %v5406_v40  ;;  %v5409_v38 = vld [vmem:[#allocation30_spill] sm:$0xff]  ;;  %v5416_v11 = vld [vmem:[#allocation59_spill] sm:$0xff] }
 0x22d   : > { %v2227_v9 = vadd.f32 %v4825_v62, %v2204_v5  ;;  %v1733_v28 = vmul.f32 %v4147_v31, %v5407_v7  ;;  %v1734_v44 = vmul.f32 %v4147_v31, %v5408_v26  ;;  %v5410_v6 = vld [vmem:[#allocation58_spill] sm:$0xff]  ;;  %v1863_v52 = vmul.f32 %v5415_v1, %v5414_v17  ;;  %v5417_v5 = vld [vmem:[#allocation43_spill] sm:$0xff]  ;;  %v2141_v26 = vpop.permute.xlu0 %2140 }
 0x22e   : > { %v2228_v14 = vadd.f32 %v4825_v62, %v2205_v30  ;;  %v2053_v39 = vadd.f32 %v5409_v38, %v1900_v59  ;;  %v1597_v29 = vadd.f32 %v5410_v6, %v1557_v2  ;;  %v5412_v50 = vld [vmem:[#allocation98_spill] sm:$0xff]  ;;  %v2168_v47 = vmul.f32 %v5417_v5, %v5416_v11 }
 0x22f   : > { %v1862_v18 = vmul.f32 %v5412_v50, %v5411_v46  ;;  %v2243_v45 = vmax.f32 %v2227_v9, 0.0  ;;  %v5413_v25 = vld [vmem:[#allocation26_spill] sm:$0xff]  ;;  %v1749_v56 = vadd.f32 %v1733_v28, %v1596_v37  ;;  %v1887_v21 = vmul.f32 %v4152_v35, %v1863_v52  ;;  %v5418_v37 = vld [vmem:[#allocation80_spill] sm:$0xff] }
 0x230   : > { %v2054_v22 = vadd.f32 %v5413_v25, %v1901_v36  ;;  %v2244_v51 = vmax.f32 %v2228_v14, 0.0  ;;  %v2206_v8 = vadd.f32 %v2190_v33, %v2053_v39  ;;  %v1750_v16 = vadd.f32 %v1734_v44, %v1597_v29  ;;  %v5419_v36 = vld [vmem:[#allocation37_spill] sm:$0xff]  ;;  %v5421_v39 = vld [vmem:[#allocation52_spill] sm:$0xff]  ;;  %v2146_v29 = vpop.permute.xlu1 %2145 }
 0x231   : > { %v1886_v60 = vmul.f32 %v4152_v35, %v1862_v18  ;;  %v2259_v58 = vmin.f32 %v2243_v45, 6.0  ;;  %v2169_v59 = vmul.f32 %v5418_v37, %v4785_v3  ;;  %v2192_v2 = vmul.f32 %v4299_v27, %v2168_v47  ;;  %v5420_v14 = vld [vmem:[#allocation25_spill] sm:$0xff] }
 0x232   : > { %v2207_v24 = vadd.f32 %v2191_v23, %v2054_v22  ;;  %v2260_v12 = vmin.f32 %v2244_v51, 6.0  ;;  %v2229_v10 = vadd.f32 %v4825_v62, %v2206_v8  ;;  %v1903_v33 = vadd.f32 %v1887_v21, %v1750_v16 }
 0x233   : > { %v1902_v30 = vadd.f32 %v1886_v60, %v1749_v56  ;;  %v1735_v23 = vmul.f32 %v4147_v31, %v4799_v19  ;;  %v2193_v28 = vmul.f32 %v4299_v27, %v2169_v59  ;;  %v1864_v6 = vmul.f32 %v5421_v39, %v4768_v41  ;;  %v5422_v19 = vld [vmem:[#allocation86_spill] sm:$0xff]  ;;  %v5423_v60 = vld [vmem:[#allocation39_spill] sm:$0xff]  ;;  %v5427_v59 = vld [vmem:[#allocation9_spill] sm:$0xff] }
 0x234   : > { %v2230_v48 = vadd.f32 %v4825_v62, %v2207_v24  ;;  %v2272_v9 = vpack.c.bf16 %v2260_v12, %v2259_v58  ;;  %v2245_v40 = vmax.f32 %v2229_v10, 0.0  ;;  %v2056_v38 = vadd.f32 %v5420_v14, %v1903_v33  ;;  %v2151_v10 = vpop.permute.xlu0 %2150  ;;  %v5430_v39 = vld [vmem:[#allocation94_spill] sm:$0xff] }
 0x235   : > { %v2055_v7 = vadd.f32 %v5419_v36, %v1902_v30  ;;  %v1751_v3 = vadd.f32 %v1735_v23, %v4744_v20  ;;  %v1865_v50 = vmul.f32 %v5422_v19, %v4764_v53  ;;  %v2170_v18 = vmul.f32 %v2141_v26, %v4779_v61 }
 0x236   : > { %v2246_v44 = vmax.f32 %v2230_v48, 0.0  ;;  %3114 = vmatmul.mubr.msk.bf16.gmra.mxu1 %vm2300_vm6, %v2272_v9  ;;  %v2261_v46 = vmin.f32 %v2245_v40, 6.0  ;;  %v2209_v25 = vadd.f32 %v2193_v28, %v2056_v38  ;;  %v1888_v22 = vmul.f32 %v4152_v35, %v1864_v6  ;;  %v5428_v48 = vld [vmem:[#allocation88_spill] sm:$0xff]  ;;  %v5429_v28 = vld [vmem:[#allocation99_spill] sm:$0xff] }
 0x237   : > { %v2208_v31 = vadd.f32 %v2192_v2, %v2055_v7  ;;  %v2171_v56 = vmul.f32 %v2146_v29, %v4710_v55  ;;  %v1889_v41 = vmul.f32 %v4152_v35, %v1865_v50  ;;  %v2194_v17 = vmul.f32 %v4299_v27, %v2170_v18  ;;  %v2156_v2 = vpop.permute.xlu1 %2155 }
 0x238   : > { %v2262_v45 = vmin.f32 %v2246_v44, 6.0  ;;  %v1408_v1 = vadd.f32 %v4738_v34, %v4807_v13  ;;  %v2232_v53 = vadd.f32 %v4825_v62, %v2209_v25  ;;  %v1904_v51 = vadd.f32 %v1888_v22, %v1751_v3  ;;  %v3200_v34 = vld [vmem:[%s5077_s5 + $0x5] ss:$0 sm:$0xff]  ;;  %v3202_v44 = vld [vmem:[%s5077_s5 + $0x7] ss:$0 sm:$0xff] }
 0x239   : > { %v2231_v20 = vadd.f32 %v4825_v62, %v2208_v31  ;;  %v2195_v61 = vmul.f32 %v4299_v27, %v2171_v56  ;;  %v1905_v16 = vadd.f32 %v1889_v41, %v4850_v49  ;;  %v1600_v58 = vadd.f32 %v5423_v60, %v4833_v15  ;;  %v5424_v49 = vld [vmem:[#allocation62_spill] sm:$0xff] }
 0x23a   : > { %v2273_v52 = vpack.c.bf16 %v2262_v45, %v2261_v46  ;;  %v1561_v55 = vadd.f32 %v4742_v63, %v1408_v1  ;;  %v2248_v35 = vmax.f32 %v2232_v53, 0.0  ;;  %v2057_v24 = vadd.f32 %v4811_v32, %v1904_v51  ;;  %v5425_v63 = vld [vmem:[#allocation53_spill] sm:$0xff]  ;;  %v5426_v15 = vld [vmem:[#allocation70_spill] sm:$0xff] }
 0x23b   : > { %v2247_v8 = vmax.f32 %v2231_v20, 0.0  ;;  %v1737_v13 = vmul.f32 %v3200_v34, %v4749_v43  ;;  %v1738_v21 = vmul.f32 %v3200_v34, %v4754_v4  ;;  %v2058_v5 = vadd.f32 %v5424_v49, %v1905_v16  ;;  %v3201_v4 = vld [vmem:[%s5077_s5 + $0x6] ss:$0 sm:$0xff] }
 0x23c   : > { %3117 = vmatprep.mubr.msk.bf16.mxu1 %vm2300_vm6, %v2273_v52  ;;  %v1601_v47 = vadd.f32 %v5425_v63, %v1561_v55  ;;  %v1866_v12 = vmul.f32 %v5426_v15, %v4698_v42  ;;  %v2264_v30 = vmin.f32 %v2248_v35, 6.0  ;;  %v2210_v37 = vadd.f32 %v2194_v17, %v2057_v24  ;;  %v5431_v24 = vld [vmem:[#allocation14_spill] sm:$0xff] }
 0x23d   : > { %v2263_v11 = vmin.f32 %v2247_v8, 6.0  ;;  %v1753_v32 = vadd.f32 %v1737_v13, %v1600_v58  ;;  %v1867_v33 = vmul.f32 %v5428_v48, %v5427_v59  ;;  %v2211_v23 = vadd.f32 %v2195_v61, %v2058_v5  ;;  %v2985_v8 = vld [vmem:[%s5081_s9] ss:$0 sm:$0xff]  ;;  %v5432_v13 = vld [vmem:[#allocation15_spill] sm:$0xff] }
 0x23e   : > { %v1754_v43 = vadd.f32 %v1738_v21, %v1601_v47  ;;  %v1890_v9 = vmul.f32 %v3201_v4, %v1866_v12  ;;  %v2172_v40 = vmul.f32 %v2151_v10, %v4725_v0  ;;  %v2233_v42 = vadd.f32 %v4825_v62, %v2210_v37  ;;  %v5434_v5 = vld [vmem:[#allocation18_spill] sm:$0xff] }
 0x23f   : > { %v2274_v36 = vpack.c.bf16 %v2264_v30, %v2263_v11  ;;  %v1891_v7 = vmul.f32 %v3201_v4, %v1867_v33  ;;  %v2173_v26 = vmul.f32 %v2156_v2, %v5429_v28  ;;  %v2043_v14 = vmul.f32 %v3202_v44, %v4757_v57  ;;  %v5433_v11 = vld [vmem:[#allocation16_spill] sm:$0xff] }
 0x240   : > { %v2234_v38 = vadd.f32 %v4825_v62, %v2211_v23  ;;  %v1906_v3 = vadd.f32 %v1890_v9, %v1753_v32  ;;  %v2044_v6 = vmul.f32 %v3202_v44, %v5430_v39  ;;  %v2249_v0 = vmax.f32 %v2233_v42, 0.0  ;;  %v5435_v2 = vld [vmem:[#allocation20_spill] sm:$0xff]  ;;  %v5437_v9 = vld [vmem:[#allocation22_spill] sm:$0xff] }
 0x241   : > { %3118 = vmatmul.mubr.msk.bf16.gmra.mxu1 %vm2300_vm6, %v2274_v36  ;;  %v1907_v29 = vadd.f32 %v1891_v7, %v1754_v43  ;;  %v2196_v19 = vmul.f32 %v4299_v27, %v2172_v40  ;;  %v2197_v18 = vmul.f32 %v4299_v27, %v2173_v26  ;;  %v5436_v43 = vld [vmem:[#allocation21_spill] sm:$0xff]  ;;  %v5438_v36 = vld [vmem:[#allocation24_spill] sm:$0xff] }
 0x242   : > { %v2250_v46 = vmax.f32 %v2234_v38, 0.0  ;;  %v2059_v31 = vadd.f32 %v2043_v14, %v1906_v3  ;;  %v2265_v45 = vmin.f32 %v2249_v0, 6.0 }
 0x243   : > { %v2060_v50 = vadd.f32 %v2044_v6, %v1907_v29  ;;  %v5439_v29 = vld [vmem:[#allocation27_spill] sm:$0xff] }
 0x244   : > { %v2266_v25 = vmin.f32 %v2250_v46, 6.0  ;;  %v2212_v22 = vadd.f32 %v2196_v19, %v2059_v31  ;;  %v5440_v31 = vld [vmem:[#allocation28_spill] sm:$0xff] }
 0x245   : > { %v2213_v57 = vadd.f32 %v2197_v18, %v2060_v50  ;;  %v5441_v50 = vld [vmem:[#allocation29_spill] sm:$0xff] }
 0x246   : > { %v2275_v56 = vpack.c.bf16 %v2266_v25, %v2265_v45  ;;  %v2235_v20 = vadd.f32 %v4825_v62, %v2212_v22  ;;  %v5442_v45 = vld [vmem:[#allocation31_spill] sm:$0xff] }
 0x247   : > { %v2236_v41 = vadd.f32 %v4825_v62, %v2213_v57 }
 0x248   : > { %3121 = vmatprep.mubr.msk.bf16.mxu1 %vm2300_vm6, %v2275_v56  ;;  %v2251_v17 = vmax.f32 %v2235_v20, 0.0 }
 0x249   : > { %v2252_v1 = vmax.f32 %v2236_v41, 0.0 }
 0x24a   : > { %v2267_v52 = vmin.f32 %v2251_v17, 6.0 }
 0x24b   : > { %v2268_v53 = vmin.f32 %v2252_v1, 6.0 }
 0x24d   : > { %v2276_v51 = vpack.c.bf16 %v2268_v53, %v2267_v52 }
 0x24f   : > { %3122 = vmatmul.mubr.msk.bf16.gmra.mxu1 %vm2300_vm6, %v2276_v51 }
 0x2ea   : > { %v3111_v61 = vpop.f32.mrf.mxu1 }
 0x2eb   : > { %v2368_v58 = vadd.f32 %v3111_v61, %v2985_v8  ;;  %v5443_v61 = vld [vmem:[#allocation34_spill] sm:$0xff] }
 0x2ec   : > { %v2359_v27 = vpop.f32.mrf.mxu1 }
 0x2ed   : > { %v2360_v55 = vadd.f32 %v2985_v8, %v2359_v27  ;;  %v2424_v63 = vadd.f32 %v2368_v58, %v5434_v5 }
 0x2ee   : > { %v3112_v16 = vpop.f32.mrf.mxu1 }
 0x2ef   : > { %v2371_v60 = vadd.f32 %v3112_v16, %v2985_v8  ;;  %v2422_v21 = vadd.f32 %v2360_v55, %v5432_v13  ;;  %v5444_v16 = vld [vmem:[#allocation35_spill] sm:$0xff]  ;;  %v3213_v13 = vmov 0.0  }
 0x2f0   : > { %v2362_v62 = vpop.f32.mrf.mxu1  ;;  %3143 = vmatprep.subr.bf16.mxu1 %v3213_v13  ;;  %3163 = vmatprep.subr.bf16.mxu0 %v3213_v13 }
 0x2f1   : > { %v2363_v35 = vadd.f32 %v2985_v8, %v2362_v62  ;;  %v2425_v34 = vadd.f32 %v2371_v60, %v5431_v24  ;;  %v5445_v60 = vld [vmem:[#allocation36_spill] sm:$0xff]  ;;  %v5446_v62 = vld [vmem:[#allocation38_spill] sm:$0xff]  ;;  %3159 = vmatprep.mubr.msk.bf16.mxu1 %vm3214_vm7, %v3213_v13 }
 0x2f3   : > { %v2423_v49 = vadd.f32 %v2363_v35, %v5433_v11  ;;  %v2439_v12 = vpack.c.bf16 %v2425_v34, %v2424_v63  ;;  %v3198_v11 = vld [vmem:[%s5085_s13 + $0x8] sm:$0xff]  }
 0x2f5   : > { %v2438_v47 = vpack.c.bf16 %v2423_v49, %v2422_v21  ;;  %v3197_v21 = vld [vmem:[%s5085_s13 + $0x10] sm:$0xff]   ;;  %v3199_v49 = vld [vmem:[%s5085_s13] sm:$0xff]  }
 0x2f6   : > { %v3115_v15 = vpop.f32.mrf.mxu1 }
 0x2f7   : > { %3127 = vmatprep.mubr.msk.bf16.mxu0 %vm730_vm3, %v2438_v47  ;;  %v2384_v59 = vadd.f32 %v3115_v15, %v2985_v8 }
 0x2f8   : > { %v2375_v10 = vpop.f32.mrf.mxu1  ;;  %3128 = vmatmul.mubr.msk.bf16.vlgmr.msra.gmra.mxu0 %vm730_vm3, %v2439_v12 }
 0x2f9   : > { %v2376_v37 = vadd.f32 %v2985_v8, %v2375_v10  ;;  %v2428_v42 = vadd.f32 %v2384_v59, %v5438_v36 }
 0x2fa   : > { %v3116_v30 = vpop.f32.mrf.mxu1 }
 0x2fb   : > { %v2387_v32 = vadd.f32 %v3116_v30, %v2985_v8  ;;  %v2426_v4 = vadd.f32 %v2376_v37, %v5436_v43 }
 0x2fc   : > { %v2378_v48 = vpop.f32.mrf.mxu1 }
 0x2fd   : > { %v2379_v33 = vadd.f32 %v2985_v8, %v2378_v48  ;;  %v2429_v23 = vadd.f32 %v2387_v32, %v5435_v2  ;;  %v2996_v2 = vld [vmem:[%s5083_s11] ss:$0 sm:$0xff] }
 0x2ff   : > { %v2427_v40 = vadd.f32 %v2379_v33, %v5437_v9  ;;  %v2441_v26 = vpack.c.bf16 %v2429_v23, %v2428_v42 }
 0x301   : > { %v2440_v7 = vpack.c.bf16 %v2427_v40, %v2426_v4  ;;  %v3119_v28 = vpop.f32.mrf.mxu1 }
 0x302   : > { %v2400_v39 = vadd.f32 %v3119_v28, %v2985_v8 }
 0x303   : > { %v2391_v44 = vpop.f32.mrf.mxu1  ;;  %3131 = vmatprep.mubr.msk.bf16.mxu0 %vm730_vm3, %v2440_v7 }
 0x304   : > { %3132 = vmatmul.mubr.msk.bf16.gmra.mxu0 %vm730_vm3, %v2441_v26  ;;  %v2392_v38 = vadd.f32 %v2985_v8, %v2391_v44  ;;  %v2432_v25 = vadd.f32 %v2400_v39, %v5442_v45 }
 0x305   : > { %v3120_v14 = vpop.f32.mrf.mxu1 }
 0x306   : > { %v2403_v3 = vadd.f32 %v3120_v14, %v2985_v8  ;;  %v2430_v19 = vadd.f32 %v2392_v38, %v5440_v31 }
 0x307   : > { %v2394_v6 = vpop.f32.mrf.mxu1 }
 0x308   : > { %v2395_v0 = vadd.f32 %v2985_v8, %v2394_v6  ;;  %v2433_v46 = vadd.f32 %v2403_v3, %v5439_v29 }
 0x30a   : > { %v2431_v18 = vadd.f32 %v2395_v0, %v5441_v50  ;;  %v2443_v57 = vpack.c.bf16 %v2433_v46, %v2432_v25 }
 0x30c   : > { %v2442_v22 = vpack.c.bf16 %v2431_v18, %v2430_v19 }
 0x30e   : > { %3135 = vmatprep.mubr.msk.bf16.mxu0 %vm730_vm3, %v2442_v22 }
 0x30f   : > { %v3123_v56 = vpop.f32.mrf.mxu1  ;;  %3136 = vmatmul.mubr.msk.bf16.gmra.mxu0 %vm730_vm3, %v2443_v57 }
 0x310   : > { %v2416_v52 = vadd.f32 %v3123_v56, %v2985_v8 }
 0x311   : > { %v2407_v20 = vpop.f32.mrf.mxu1 }
 0x312   : > { %v2408_v17 = vadd.f32 %v2985_v8, %v2407_v20  ;;  %v2436_v35 = vadd.f32 %v2416_v52, %v5446_v62 }
 0x313   : > { %v3124_v41 = vpop.f32.mrf.mxu1 }
 0x314   : > { %v2419_v1 = vadd.f32 %v3124_v41, %v2985_v8  ;;  %v2434_v55 = vadd.f32 %v2408_v17, %v5444_v16 }
 0x315   : > { %v2410_v53 = vpop.f32.mrf.mxu1 }
 0x316   : > { %v2411_v51 = vadd.f32 %v2985_v8, %v2410_v53  ;;  %v2437_v27 = vadd.f32 %v2419_v1, %v5443_v61  ;;  %v3196_v8 = vld [vmem:[%s5085_s13 + $0x18] sm:$0xff]  }
 0x317   : > { %3164 = vmatpush3.bf16.msra.mxu0 %v3196_v8 }
 0x318   : > { %v2435_v58 = vadd.f32 %v2411_v51, %v5445_v60  ;;  %v2445_v34 = vpack.c.bf16 %v2437_v27, %v2436_v35  ;;  %3165 = vmatprep.subr.bf16.mxu0 %v3213_v13 }
 0x31a   : > { %v2444_v24 = vpack.c.bf16 %v2435_v58, %v2434_v55 }
 0x31b   : > { %3166 = vmatpush3.bf16.msra.mxu0 %v3197_v21 }
 0x31c   : > { %3139 = vmatprep.mubr.msk.bf16.mxu0 %vm730_vm3, %v2444_v24  ;;  %3167 = vmatprep.subr.bf16.mxu0 %v3213_v13 }
 0x31d   : > { %3140 = vmatmul.mubr.msk.bf16.gmra.mxu0 %vm730_vm3, %v2445_v34 }
 0x31e   : > { %3171 = vmatprep.mubr.msk.bf16.mxu0 %vm3214_vm7, %v3213_v13 }
 0x31f   : > { %3168 = vmatpush3.bf16.msra.mxu0 %v3198_v11 }
 0x320   : > { %3169 = vmatprep.subr.bf16.mxu0 %v3213_v13 }
 0x323   : > { %3170 = vmatpush3.bf16.msra.mxu0 %v3199_v49 }
 0x3b8   : > { %v3129_v5 = vpop.f32.mrf.mxu0 }
 0x3b9   : > { %v2528_v62 = vadd.f32 %v3129_v5, %v2996_v2 }
 0x3ba   : > { %v5042_v63 = vpop.f32.mrf.mxu0 }
 0x3bb   : > { %v2584_v49 = vmax.f32 %v2528_v62, 0.0 }
 0x3bc   : > { %v3130_v47 = vpop.f32.mrf.mxu0 }
 0x3bd   : > { %v2531_v16 = vadd.f32 %v3130_v47, %v2996_v2 }
 0x3be   : > { %v5044_v15 = vpop.f32.mrf.mxu0 }
 0x3bf   : > { %v2585_v34 = vmax.f32 %v2531_v16, 0.0  ;;  %v2523_v8 = vadd.f32 %v2996_v2, %v5044_v15 }
 0x3c1   : > { %v2601_v47 = vmin.f32 %v2585_v34, 6.0 }
 0x3c4   : > { %v3133_v12 = vpop.f32.mrf.mxu0 }
 0x3c5   : > { %v2544_v56 = vadd.f32 %v3133_v12, %v2996_v2  ;;  %v2520_v12 = vadd.f32 %v2996_v2, %v5042_v63  ;;  %v2614_v63 = vld [vmem:[%s5084_s12] sm:$0x1] }
 0x3c6   : > { %v2535_v10 = vpop.f32.mrf.mxu0 }
 0x3c7   : > { %v2588_v51 = vmax.f32 %v2544_v56, 0.0  ;;  %v2536_v61 = vadd.f32 %v2996_v2, %v2535_v10 }
 0x3c8   : > { %v3134_v30 = vpop.f32.mrf.mxu0 }
 0x3c9   : > { %v2547_v45 = vadd.f32 %v3134_v30, %v2996_v2  ;;  %v2604_v35 = vmin.f32 %v2588_v51, 6.0  ;;  %v2586_v24 = vmax.f32 %v2536_v61, 0.0  ;;  %v2583_v30 = vmax.f32 %v2523_v8, 0.0 }
 0x3ca   : > { %v2538_v37 = vpop.f32.mrf.mxu0 }
 0x3cb   : > { %v2589_v17 = vmax.f32 %v2547_v45, 0.0  ;;  %v2539_v1 = vadd.f32 %v2996_v2, %v2538_v37  ;;  %v2602_v10 = vmin.f32 %v2586_v24, 6.0  ;;  %v2600_v37 = vmin.f32 %v2584_v49, 6.0 }
 0x3cd   : > { %v2605_v55 = vmin.f32 %v2589_v17, 6.0  ;;  %v2587_v60 = vmax.f32 %v2539_v1, 0.0 }
 0x3cf   : > { %v3137_v32 = vpop.f32.mrf.mxu0  ;;  %v2618_v21 = vpack.c.bf16 %v2605_v55, %v2604_v35  ;;  %v2603_v11 = vmin.f32 %v2587_v60, 6.0 }
 0x3d0   : > { %v2560_v14 = vadd.f32 %v3137_v32, %v2996_v2  ;;  %v2582_v32 = vmax.f32 %v2520_v12, 0.0 }
 0x3d1   : > { %v2551_v59 = vpop.f32.mrf.mxu0  ;;  %v2617_v5 = vpack.c.bf16 %v2603_v11, %v2602_v10 }
 0x3d2   : > { %v2592_v19 = vmax.f32 %v2560_v14, 0.0  ;;  %v2552_v50 = vadd.f32 %v2996_v2, %v2551_v59  ;;  %v2616_v59 = vpack.c.bf16 %v2601_v47, %v2600_v37  ;;  %v2598_v15 = vmin.f32 %v2582_v32, 6.0 }
 0x3d3   : > { %v3138_v48 = vpop.f32.mrf.mxu0 }
 0x3d4   : > { %v2563_v28 = vadd.f32 %v3138_v48, %v2996_v2  ;;  %v2608_v20 = vmin.f32 %v2592_v19, 6.0  ;;  %v2590_v41 = vmax.f32 %v2552_v50, 0.0  ;;  %v2599_v48 = vmin.f32 %v2583_v30, 6.0 }
 0x3d5   : > { %v2554_v33 = vpop.f32.mrf.mxu0 }
 0x3d6   : > { %v2593_v0 = vmax.f32 %v2563_v28, 0.0  ;;  %v2555_v29 = vadd.f32 %v2996_v2, %v2554_v33  ;;  %v2606_v27 = vmin.f32 %v2590_v41, 6.0  ;;  %v2615_v33 = vpack.c.bf16 %v2599_v48, %v2598_v15 }
 0x3d8   : > { %v2609_v25 = vmin.f32 %v2593_v0, 6.0  ;;  %v2591_v22 = vmax.f32 %v2555_v29, 0.0 }
 0x3da   : > { %v2620_v52 = vpack.c.bf16 %v2609_v25, %v2608_v20  ;;  %v2607_v53 = vmin.f32 %v2591_v22, 6.0 }
 0x3dc   : > { %v2619_v58 = vpack.c.bf16 %v2607_v53, %v2606_v27 }
 0x3dd   : > { %v3141_v23 = vpop.f32.mrf.mxu0 }
 0x3de   : > { %v2576_v43 = vadd.f32 %v3141_v23, %v2996_v2 }
 0x3df   : > { %v2567_v4 = vpop.f32.mrf.mxu0 }
 0x3e0   : > { %v2596_v40 = vmax.f32 %v2576_v43, 0.0  ;;  %v2568_v36 = vadd.f32 %v2996_v2, %v2567_v4 }
 0x3e1   : > { %v3142_v9 = vpop.f32.mrf.mxu0 }
 0x3e2   : > { %v2579_v42 = vadd.f32 %v3142_v9, %v2996_v2  ;;  %v2612_v38 = vmin.f32 %v2596_v40, 6.0  ;;  %v2594_v3 = vmax.f32 %v2568_v36, 0.0  ;;  %v3215_v40 = vmov 1966171168  }
 0x3e3   : > { %v2570_v7 = vpop.f32.mrf.mxu0  ;;  %v2749_v36 = vunpack.c.l.s4 %v3215_v40 }
 0x3e4   : > { %v2597_v26 = vmax.f32 %v2579_v42, 0.0  ;;  %v2571_v44 = vadd.f32 %v2996_v2, %v2570_v7  ;;  %v2610_v18 = vmin.f32 %v2594_v3, 6.0 }
 0x3e5   : > { %v2750_v42 = vunpack.c.0.s8 %v2749_v36 }
 0x3e6   : > { %v2613_v39 = vmin.f32 %v2597_v26, 6.0  ;;  %v2595_v6 = vmax.f32 %v2571_v44, 0.0 }
 0x3e7   : > { %v2753_v7 = vsub.s32 %v2750_v42, %v4038_v54 }
 0x3e8   : > { %v2622_v46 = vpack.c.bf16 %v2613_v39, %v2612_v38  ;;  %v2611_v31 = vmin.f32 %v2595_v6, 6.0 }
 0x3ea   : > { %3144 = vmatpush3.bf16.msra.mxu1 %v2622_v46  ;;  %v2621_v57 = vpack.c.bf16 %v2611_v31, %v2610_v18 }
 0x3eb   : > { %3145 = vmatprep.subr.bf16.mxu1 %v3213_v13 }
 0x3ee   : > { %3146 = vmatpush3.bf16.msra.mxu1 %v2621_v57 }
 0x3ef   : > { %3147 = vmatprep.subr.bf16.mxu1 %v3213_v13 }
 0x3f2   : > { %3148 = vmatpush3.bf16.msra.mxu1 %v2620_v52 }
 0x3f3   : > { %3149 = vmatprep.subr.bf16.mxu1 %v3213_v13 }
 0x3f6   : > { %3150 = vmatpush3.bf16.msra.mxu1 %v2619_v58 }
 0x3f7   : > { %3151 = vmatprep.subr.bf16.mxu1 %v3213_v13 }
 0x3fa   : > { %3152 = vmatpush3.bf16.msra.mxu1 %v2618_v21 }
 0x3fb   : > { %3153 = vmatprep.subr.bf16.mxu1 %v3213_v13 }
 0x3fe   : > { %3154 = vmatpush3.bf16.msra.mxu1 %v2617_v5 }
 0x3ff   : > { %3155 = vmatprep.subr.bf16.mxu1 %v3213_v13 }
 0x402   : > { %3156 = vmatpush3.bf16.msra.mxu1 %v2616_v59 }
 0x403   : > { %3157 = vmatprep.subr.bf16.mxu1 %v3213_v13  ;;  %v3006_v13 = vld [vmem:[%s5086_s14] ss:$0 sm:$0xff] }
 0x406   : > { %3158 = vmatpush3.bf16.msra.mxu1 %v2615_v33 }
 0x409   : > { %3160 = vmatmul.mubr.bf16.vlgmr.msra.gmra.mxu1 %v2614_v63 }
 0x4c9   : > { %v2657_v2 = vpop.f32.mrf.mxu1 }
 0x4ca   : > { %v2663_v23 = vpack.c.bf16 %v2657_v2, %v2657_v2 }
 0x4cb   : > { %v3161_v43 = vpop.f32.mrf.mxu1 }
 0x4cc   : > { %3172 = vmatmul.mubr.msk.bf16.vlgmr.msra.gmra.mxu0 %vm2703_vm8, %v2663_v23 }
 0x4cd   : > { %v2660_v4 = vpop.f32.mrf.mxu1 }
 0x4cf   : > { %v3162_v9 = vpop.f32.mrf.mxu1 }
 0x58c   : > { %v2741_v28 = vpop.f32.mrf.mxu0 }
 0x58d   : > { %v2742_v26 = vadd.f32 %v3006_v13, %v2741_v28 }
 0x58e   : > { %v3173_v44 = vpop.f32.mrf.mxu0 }
 0x58f   : > { %v2754_v14 = vrot.slane %v2742_v26, %v2753_v7 }
 0x590   : > { %v2744_v38 = vpop.f32.mrf.mxu0 }
 0x591   : > { %v2755_v3 = vcombine.high %v2754_v14, %v2754_v14  ;;  %v2762_v39 = vrot.slane %v2754_v14, %v2753_v7 }
 0x592   : > { %v3174_v6 = vpop.f32.mrf.mxu0 }
 0x593   : > { %v2769_v0 = vrot.slane %v2755_v3, %v2753_v7  ;;  %2773 = vst.msk [vmem:[%s497_s16] sm:$0x1] %vm2772_vm9, %v2762_v39 }
 0x595   : > { %2774 = vst.msk [vmem:[%s497_s16 + $0x1] sm:$0x1] %vm2772_vm9, %v2769_v0 }
 0x596 PF: > { %s25_s18 = sadd.s32 1, %s3209_s18  }
 0x597   : > { %p22_p4 = scmp.ge.s32.totalorder %s25_s18, 4  }
 0x599   :  { %24 = sbr.rel (!%p22_p4) target bundleno = 1 (0x1), region = 125 }

</bundles_post_ra>
